<compile_context>
chip_gen: v7x
topology: tpu7x:2x2x1
jax: 0.10.0
libtpu: 0.0.40
codegen_flags: <defaults>
</compile_context>

<pallas_src>
import functools

import jax
import jax.numpy as jnp
import numpy as np
from jax.experimental import pallas as pl
from jax.experimental.pallas import tpu as pltpu

_EPS = 1e-5
_VMEM_LIMIT = 32 * 1024 * 1024  # explicit scoped-VMEM budget (fits v5e/v6e/v7x)


def _pick_tile_h(h, w, cin, cout, budget_bytes=2 << 20):
    """Largest divisor of H whose per-step f32 working set stays small.

    Rough per-row footprint: staged halo block + center input tile (~2*Cin)
    plus output tile + accumulator (~2*Cout), x4 bytes, x2 for the
    double-buffered pipeline stages.
    """
    per_row = 2 * 4 * w * (2 * cin + 2 * cout)
    target = max(1, budget_bytes // max(per_row, 1))
    target = min(target, max(h // 2, 1))  # keep >=2 row tiles when possible
    th = 1
    for d in range(1, h + 1):
        if h % d == 0 and d <= target:
            th = d
    return th


def _conv_kernel(scale_ref, shift_ref, xc_ref, xt_ref, xb_ref, w_ref,
                 y_ref, sum_ref, ssq_ref, xpad_ref, *, th, fuse_bn_relu):
    # scale/shift: (1, Cin) per-channel input normalization (used when
    #              fuse_bn_relu=True to apply the previous BN+ReLU on load).
    # xc_ref: (1, th, W, Cin) center rows;  xt_ref/xb_ref: (1, 1, W, Cin) halo rows.
    # w_ref : (9, Cin, Cout) conv taps.
    # y_ref : (1, th, W, Cout) raw conv output tile.
    # sum_ref/ssq_ref: (1, 1, Cout) per-image BN-stat accumulators (f32).
    # xpad_ref: (th+2, W+2, Cin) VMEM scratch holding the zero-bordered block.
    j = pl.program_id(1)
    last = pl.num_programs(1) - 1
    _, w2, cin = xpad_ref.shape
    w = w2 - 2
    cout = y_ref.shape[-1]

    def act(v):
        v = v.astype(jnp.float32)
        if fuse_bn_relu:
            # previous layer's BatchNorm (batch stats) + ReLU, folded into the load
            v = jnp.maximum(v * scale_ref[0] + shift_ref[0], 0.0)
        return v

    # ---- stage the zero-bordered (th+2, W+2, Cin) input block in VMEM ----
    zcol = jnp.zeros((th + 2, 1, cin), jnp.float32)
    xpad_ref[:, 0:1, :] = zcol                      # left pad column
    xpad_ref[:, w + 1:w + 2, :] = zcol              # right pad column
    xpad_ref[1:th + 1, 1:w + 1, :] = act(xc_ref[0])  # interior rows

    zrow = jnp.zeros((1, w, cin), jnp.float32)

    @pl.when(j == 0)
    def _():
        xpad_ref[0:1, 1:w + 1, :] = zrow            # image-top zero pad

    @pl.when(j > 0)
    def _():
        xpad_ref[0:1, 1:w + 1, :] = act(xt_ref[0])  # halo row above the tile

    @pl.when(j == last)
    def _():
        xpad_ref[th + 1:th + 2, 1:w + 1, :] = zrow  # image-bottom zero pad

    @pl.when(j < last)
    def _():
        xpad_ref[th + 1:th + 2, 1:w + 1, :] = act(xb_ref[0])  # halo row below

    # ---- 3x3 conv: 9 accumulating MXU matmuls over contiguous W-windows ----
    acc = jnp.zeros((th * w, cout), jnp.float32)
    for dy in range(3):
        for dx in range(3):
            slab = xpad_ref[dy:dy + th, dx:dx + w, :]        # (th, W, Cin)
            acc = acc + jnp.dot(slab.reshape(th * w, cin), w_ref[3 * dy + dx],
                                preferred_element_type=jnp.float32)

    y_ref[0] = acc.reshape(th, w, cout).astype(y_ref.dtype)

    # ---- per-channel BatchNorm batch statistics (f32 accumulation) ----
    tile_sum = jnp.sum(acc, axis=0, keepdims=True)          # (1, Cout)
    tile_ssq = jnp.sum(acc * acc, axis=0, keepdims=True)     # (1, Cout)

    @pl.when(j == 0)
    def _():
        sum_ref[0] = tile_sum
        ssq_ref[0] = tile_ssq

    @pl.when(j > 0)
    def _():
        sum_ref[0] = sum_ref[0] + tile_sum
        ssq_ref[0] = ssq_ref[0] + tile_ssq


def _bn_relu_kernel(scale_ref, shift_ref, y_ref, o_ref):
    # Tiled normalize + ReLU using precomputed per-channel scale/shift.
    y = y_ref[...].astype(jnp.float32)
    o_ref[...] = jnp.maximum(y * scale_ref[0] + shift_ref[0], 0.0).astype(o_ref.dtype)


def _conv3x3_bn_stats(x_nhwc, w9, scale_in, shift_in, *, fuse_bn_relu, th):
    """3x3 same-conv (+ optional fused input BN+ReLU) + per-image BN stats."""
    n, h, w, cin = x_nhwc.shape
    cout = w9.shape[-1]
    ntiles = h // th
    kernel = functools.partial(_conv_kernel, th=th, fuse_bn_relu=fuse_bn_relu)

    y, s, ss = pl.pallas_call(
        kernel,
        grid=(n, ntiles),
        in_specs=[
            pl.BlockSpec((1, cin), lambda i, j: (0, 0)),          # scale
            pl.BlockSpec((1, cin), lambda i, j: (0, 0)),          # shift
            pl.BlockSpec((1, th, w, cin), lambda i, j: (i, j, 0, 0)),   # center rows
            pl.BlockSpec((1, 1, w, cin),                                # halo above
                         lambda i, j: (i, jnp.maximum(j * th - 1, 0), 0, 0)),
            pl.BlockSpec((1, 1, w, cin),                                # halo below
                         lambda i, j: (i, jnp.minimum((j + 1) * th, h - 1), 0, 0)),
            pl.BlockSpec((9, cin, cout), lambda i, j: (0, 0, 0)),  # weights
        ],
        out_specs=[
            pl.BlockSpec((1, th, w, cout), lambda i, j: (i, j, 0, 0)),  # conv out
            pl.BlockSpec((1, 1, cout), lambda i, j: (i, 0, 0)),         # sum acc
            pl.BlockSpec((1, 1, cout), lambda i, j: (i, 0, 0)),         # sumsq acc
        ],
        out_shape=[
            jax.ShapeDtypeStruct((n, h, w, cout), jnp.float32),
            jax.ShapeDtypeStruct((n, 1, cout), jnp.float32),
            jax.ShapeDtypeStruct((n, 1, cout), jnp.float32),
        ],
        scratch_shapes=[pltpu.VMEM((th + 2, w + 2, cin), jnp.float32)],
        compiler_params=pltpu.CompilerParams(
            dimension_semantics=("parallel", "arbitrary"),
            vmem_limit_bytes=_VMEM_LIMIT),
    )(scale_in, shift_in, x_nhwc, x_nhwc, x_nhwc, w9)
    return y, s, ss


def _bn_relu(y_nhwc, scale, shift, th):
    n, h, w, c = y_nhwc.shape
    return pl.pallas_call(
        _bn_relu_kernel,
        grid=(n, h // th),
        in_specs=[
            pl.BlockSpec((1, c), lambda i, j: (0, 0)),
            pl.BlockSpec((1, c), lambda i, j: (0, 0)),
            pl.BlockSpec((1, th, w, c), lambda i, j: (i, j, 0, 0)),
        ],
        out_specs=pl.BlockSpec((1, th, w, c), lambda i, j: (i, j, 0, 0)),
        out_shape=jax.ShapeDtypeStruct((n, h, w, c), y_nhwc.dtype),
        compiler_params=pltpu.CompilerParams(
            dimension_semantics=("parallel", "parallel"),
            vmem_limit_bytes=_VMEM_LIMIT),
    )(scale, shift, y_nhwc)


def _bn_scale_shift(sum_acc, ssq_acc, count, gamma, beta):
    """Training-mode BN: batch mean / biased variance -> per-channel scale/shift."""
    s = jnp.sum(sum_acc, axis=0).reshape(-1)    # (C,) f32
    sq = jnp.sum(ssq_acc, axis=0).reshape(-1)   # (C,) f32
    mean = s / count
    var = jnp.maximum(sq / count - mean * mean, 0.0)
    scale = gamma.astype(jnp.float32) * jax.lax.rsqrt(var + _EPS)
    shift = beta.astype(jnp.float32) - mean * scale
    return scale.reshape(1, -1), shift.reshape(1, -1)


@jax.jit
def double_conv(x_nchw, w1, g1, b1, w2, g2, b2):
    """Pallas DoubleConv forward.  x_nchw: (N, Cin, H, W) -> (N, Cout, H, W)."""
    n, cin, h, w = x_nchw.shape
    cout = w1.shape[0]
    x = jnp.transpose(x_nchw, (0, 2, 3, 1)).astype(jnp.float32)        # NCHW -> NHWC
    w1_9 = jnp.transpose(w1, (2, 3, 1, 0)).reshape(9, cin, cout).astype(jnp.float32)
    w2_9 = jnp.transpose(w2, (2, 3, 1, 0)).reshape(9, cout, cout).astype(jnp.float32)

    th1 = _pick_tile_h(h, w, cin, cout)
    th2 = _pick_tile_h(h, w, cout, cout)
    count = n * h * w

    # conv1 (+ fused BN1 batch-stat accumulation)
    ones = jnp.ones((1, cin), jnp.float32)
    zeros = jnp.zeros((1, cin), jnp.float32)
    y1, s1, ss1 = _conv3x3_bn_stats(x, w1_9, ones, zeros,
                                    fuse_bn_relu=False, th=th1)
    scale1, shift1 = _bn_scale_shift(s1, ss1, count, g1, b1)

    # BN1+ReLU fused into conv2's input read; conv2 (+ BN2 stats)
    y2, s2, ss2 = _conv3x3_bn_stats(y1, w2_9, scale1, shift1,
                                    fuse_bn_relu=True, th=th2)
    scale2, shift2 = _bn_scale_shift(s2, ss2, count, g2, b2)

    # final BN2 + ReLU (tiled)
    z2 = _bn_relu(y2, scale2, shift2, th2)
    return jnp.transpose(z2, (0, 3, 1, 2))                             # NHWC -> NCHW
    # TODO(synk): BatchNorm running_mean/running_var bookkeeping is training
    # state, not part of the forward output, so it is not reproduced here.


def ref_double_conv(x_nchw, w1, g1, b1, w2, g2, b2):
    """Pure-JAX reference mirroring PyTorch training-mode forward (NCHW)."""
    def conv(x, w):
        return jax.lax.conv_general_dilated(
            x, w, window_strides=(1, 1), padding="SAME",
            dimension_numbers=("NCHW", "OIHW", "NCHW"))

    def bn_relu_ref(y, g, b):
        mean = jnp.mean(y, axis=(0, 2, 3), keepdims=True)
        var = jnp.mean(jnp.square(y - mean), axis=(0, 2, 3), keepdims=True)
        yn = (y - mean) * jax.lax.rsqrt(var + _EPS)
        yn = yn * g.reshape(1, -1, 1, 1) + b.reshape(1, -1, 1, 1)
        return jnp.maximum(yn, 0.0)

    y = bn_relu_ref(conv(x_nchw, w1), g1, b1)
    return bn_relu_ref(conv(y, w2), g2, b2)


if __name__ == "__main__":
    N, Cin, Cout, H, W = 2, 4, 8, 16, 16
    key = jax.random.PRNGKey(0)
    kx, kw1, kw2 = jax.random.split(key, 3)

    x = jax.random.normal(kx, (N, Cin, H, W), jnp.float32)
    # Conv2d weights (OIHW, bias=False); deterministic init.
    w1 = jax.random.normal(kw1, (Cout, Cin, 3, 3), jnp.float32) * 0.1
    w2 = jax.random.normal(kw2, (Cout, Cout, 3, 3), jnp.float32) * 0.1
    # BatchNorm2d affine params: PyTorch default init (gamma=1, beta=0).
    g1 = jnp.ones((Cout,), jnp.float32)
    b1 = jnp.zeros((Cout,), jnp.float32)
    g2 = jnp.ones((Cout,), jnp.float32)
    b2 = jnp.zeros((Cout,), jnp.float32)

    out = jax.block_until_ready(double_conv(x, w1, g1, b1, w2, g2, b2))
    ref = ref_double_conv(x, w1, g1, b1, w2, g2, b2)
    assert out.shape == (N, Cout, H, W), out.shape
    np.testing.assert_allclose(np.asarray(out), np.asarray(ref),
                               atol=1e-4, rtol=1e-4)
    print("KERNEL_OK")
</pallas_src>

<mosaic_0001>
module attributes {stable_mosaic.version = 11 : i64} {
  func.func @_conv_kernel(%arg0: i32, %arg1: i32, %arg2: memref<1x4xf32, #tpu.memory_space<vmem>>, %arg3: memref<1x4xf32, #tpu.memory_space<vmem>>, %arg4: memref<1x8x16x4xf32, #tpu.memory_space<vmem>>, %arg5: memref<1x1x16x4xf32, #tpu.memory_space<vmem>>, %arg6: memref<1x1x16x4xf32, #tpu.memory_space<vmem>>, %arg7: memref<9x4x8xf32, #tpu.memory_space<vmem>>, %arg8: memref<1x8x16x8xf32, #tpu.memory_space<vmem>>, %arg9: memref<1x1x8xf32, #tpu.memory_space<vmem>>, %arg10: memref<1x1x8xf32, #tpu.memory_space<vmem>>, %arg11: memref<10x18x4xf32, #tpu.memory_space<vmem>>) attributes {dimension_semantics = [#tpu.dimension_semantics<parallel>, #tpu.dimension_semantics<arbitrary>], iteration_bounds = array<i64: 2, 2>, scalar_prefetch = 0 : i64, scratch_operands = 1 : i64, tpu.core_type = #tpu.core_type<tc>, window_params = [{pipeline_mode = #tpu.pipeline_mode<synchronous>, transform_indices = @transform_0, window_bounds = array<i64: 1, 4>}, {pipeline_mode = #tpu.pipeline_mode<synchronous>, transform_indices = @transform_1, window_bounds = array<i64: 1, 4>}, {transform_indices = @transform_2, window_bounds = array<i64: 1, 8, 16, 4>}, {transform_indices = @transform_3, window_bounds = array<i64: 1, 1, 16, 4>}, {transform_indices = @transform_4, window_bounds = array<i64: 1, 1, 16, 4>}, {pipeline_mode = #tpu.pipeline_mode<synchronous>, transform_indices = @transform_5, window_bounds = array<i64: 9, 4, 8>}, {transform_indices = @transform_6, window_bounds = array<i64: 1, 8, 16, 8>}, {transform_indices = @transform_7, window_bounds = array<i64: 1, 1, 8>}, {transform_indices = @transform_8, window_bounds = array<i64: 1, 1, 8>}]} {
    %cst = arith.constant 0.000000e+00 : f32
    %0 = vector.broadcast %cst : f32 to vector<10x1x4xf32>
    %c0 = arith.constant 0 : index
    %c0_0 = arith.constant 0 : index
    %c0_1 = arith.constant 0 : index
    %1 = vector.load %arg11[%c0, %c0_0, %c0_1] : memref<10x18x4xf32, #tpu.memory_space<vmem>>, vector<10x1x4xf32>
    tpu.vector_store %arg11[%c0, %c0_0, %c0_1], %0 {strides = array<i32>} : memref<10x18x4xf32, #tpu.memory_space<vmem>>, vector<10x1x4xf32>,
    %c0_2 = arith.constant 0 : index
    %c17 = arith.constant 17 : index
    %c0_3 = arith.constant 0 : index
    %2 = vector.load %arg11[%c0_2, %c17, %c0_3] : memref<10x18x4xf32, #tpu.memory_space<vmem>>, vector<10x1x4xf32>
    tpu.vector_store %arg11[%c0_2, %c17, %c0_3], %0 {strides = array<i32>} : memref<10x18x4xf32, #tpu.memory_space<vmem>>, vector<10x1x4xf32>,
    %c0_4 = arith.constant 0 : index
    %c0_5 = arith.constant 0 : index
    %c0_6 = arith.constant 0 : index
    %c0_7 = arith.constant 0 : index
    %3 = vector.load %arg4[%c0_4, %c0_5, %c0_6, %c0_7] : memref<1x8x16x4xf32, #tpu.memory_space<vmem>>, vector<1x8x16x4xf32>
    %4 = vector.shape_cast %3 : vector<1x8x16x4xf32> to vector<8x16x4xf32>
    %c1 = arith.constant 1 : index
    %c1_8 = arith.constant 1 : index
    %c0_9 = arith.constant 0 : index
    %5 = vector.load %arg11[%c1, %c1_8, %c0_9] : memref<10x18x4xf32, #tpu.memory_space<vmem>>, vector<8x16x4xf32>
    tpu.vector_store %arg11[%c1, %c1_8, %c0_9], %4 {strides = array<i32>} : memref<10x18x4xf32, #tpu.memory_space<vmem>>, vector<8x16x4xf32>,
    %cst_10 = arith.constant 0.000000e+00 : f32
    %6 = vector.broadcast %cst_10 : f32 to vector<1x16x4xf32>
    %c0_i32 = arith.constant 0 : i32
    %7 = arith.cmpi eq, %arg1, %c0_i32 : i32
    %8 = arith.extui %7 : i1 to i32
    %c0_i32_11 = arith.constant 0 : i32
    %9 = arith.cmpi ne, %8, %c0_i32_11 : i32
    scf.if %9 {
      %c0_84 = arith.constant 0 : index
      %c1_85 = arith.constant 1 : index
      %c0_86 = arith.constant 0 : index
      %89 = vector.load %arg11[%c0_84, %c1_85, %c0_86] : memref<10x18x4xf32, #tpu.memory_space<vmem>>, vector<1x16x4xf32>
      tpu.vector_store %arg11[%c0_84, %c1_85, %c0_86], %6 {strides = array<i32>} : memref<10x18x4xf32, #tpu.memory_space<vmem>>, vector<1x16x4xf32>,
    } else {
    }
    %c0_i32_12 = arith.constant 0 : i32
    %10 = arith.cmpi sgt, %arg1, %c0_i32_12 : i32
    %11 = arith.extui %10 : i1 to i32
    %c0_i32_13 = arith.constant 0 : i32
    %12 = arith.cmpi ne, %11, %c0_i32_13 : i32
    scf.if %12 {
      %c0_84 = arith.constant 0 : index
      %c0_85 = arith.constant 0 : index
      %c0_86 = arith.constant 0 : index
      %c0_87 = arith.constant 0 : index
      %89 = vector.load %arg5[%c0_84, %c0_85, %c0_86, %c0_87] : memref<1x1x16x4xf32, #tpu.memory_space<vmem>>, vector<1x1x16x4xf32>
      %90 = vector.shape_cast %89 : vector<1x1x16x4xf32> to vector<1x16x4xf32>
      %c0_88 = arith.constant 0 : index
      %c1_89 = arith.constant 1 : index
      %c0_90 = arith.constant 0 : index
      %91 = vector.load %arg11[%c0_88, %c1_89, %c0_90] : memref<10x18x4xf32, #tpu.memory_space<vmem>>, vector<1x16x4xf32>
      tpu.vector_store %arg11[%c0_88, %c1_89, %c0_90], %90 {strides = array<i32>} : memref<10x18x4xf32, #tpu.memory_space<vmem>>, vector<1x16x4xf32>,
    } else {
    }
    %c1_i32 = arith.constant 1 : i32
    %13 = arith.cmpi eq, %arg1, %c1_i32 : i32
    %14 = arith.extui %13 : i1 to i32
    %c0_i32_14 = arith.constant 0 : i32
    %15 = arith.cmpi ne, %14, %c0_i32_14 : i32
    scf.if %15 {
      %c9 = arith.constant 9 : index
      %c1_84 = arith.constant 1 : index
      %c0_85 = arith.constant 0 : index
      %89 = vector.load %arg11[%c9, %c1_84, %c0_85] : memref<10x18x4xf32, #tpu.memory_space<vmem>>, vector<1x16x4xf32>
      tpu.vector_store %arg11[%c9, %c1_84, %c0_85], %6 {strides = array<i32>} : memref<10x18x4xf32, #tpu.memory_space<vmem>>, vector<1x16x4xf32>,
    } else {
    }
    %c1_i32_15 = arith.constant 1 : i32
    %16 = arith.cmpi slt, %arg1, %c1_i32_15 : i32
    %17 = arith.extui %16 : i1 to i32
    %c0_i32_16 = arith.constant 0 : i32
    %18 = arith.cmpi ne, %17, %c0_i32_16 : i32
    scf.if %18 {
      %c0_84 = arith.constant 0 : index
      %c0_85 = arith.constant 0 : index
      %c0_86 = arith.constant 0 : index
      %c0_87 = arith.constant 0 : index
      %89 = vector.load %arg6[%c0_84, %c0_85, %c0_86, %c0_87] : memref<1x1x16x4xf32, #tpu.memory_space<vmem>>, vector<1x1x16x4xf32>
      %90 = vector.shape_cast %89 : vector<1x1x16x4xf32> to vector<1x16x4xf32>
      %c9 = arith.constant 9 : index
      %c1_88 = arith.constant 1 : index
      %c0_89 = arith.constant 0 : index
      %91 = vector.load %arg11[%c9, %c1_88, %c0_89] : memref<10x18x4xf32, #tpu.memory_space<vmem>>, vector<1x16x4xf32>
      tpu.vector_store %arg11[%c9, %c1_88, %c0_89], %90 {strides = array<i32>} : memref<10x18x4xf32, #tpu.memory_space<vmem>>, vector<1x16x4xf32>,
    } else {
    }
    %cst_17 = arith.constant 0.000000e+00 : f32
    %19 = vector.broadcast %cst_17 : f32 to vector<128x8xf32>
    %c0_18 = arith.constant 0 : index
    %c0_19 = arith.constant 0 : index
    %c0_20 = arith.constant 0 : index
    %20 = vector.load %arg11[%c0_18, %c0_19, %c0_20] : memref<10x18x4xf32, #tpu.memory_space<vmem>>, vector<8x16x4xf32>
    %21 = vector.shape_cast %20 : vector<8x16x4xf32> to vector<128x4xf32>
    %c0_21 = arith.constant 0 : index
    %c0_22 = arith.constant 0 : index
    %c0_23 = arith.constant 0 : index
    %22 = vector.load %arg7[%c0_21, %c0_22, %c0_23] : memref<9x4x8xf32, #tpu.memory_space<vmem>>, vector<1x4x8xf32>
    %23 = vector.shape_cast %22 : vector<1x4x8xf32> to vector<4x8xf32>
    %cst_24 = arith.constant dense<0.000000e+00> : vector<128x8xf32>
    %24 = tpu.matmul %21, %23, %cst_24 {dimension_numbers = #tpu.dot_dimension_numbers<[1], [0], [0], [1], [0, 0, 1, 1], [], []>} : vector<128x4xf32>, vector<4x8xf32>, vector<128x8xf32> -> vector<128x8xf32>
    %25 = arith.addf %19, %24 : vector<128x8xf32>
    %c0_25 = arith.constant 0 : index
    %c1_26 = arith.constant 1 : index
    %c0_27 = arith.constant 0 : index
    %26 = vector.load %arg11[%c0_25, %c1_26, %c0_27] : memref<10x18x4xf32, #tpu.memory_space<vmem>>, vector<8x16x4xf32>
    %27 = vector.shape_cast %26 : vector<8x16x4xf32> to vector<128x4xf32>
    %c1_28 = arith.constant 1 : index
    %c0_29 = arith.constant 0 : index
    %c0_30 = arith.constant 0 : index
    %28 = vector.load %arg7[%c1_28, %c0_29, %c0_30] : memref<9x4x8xf32, #tpu.memory_space<vmem>>, vector<1x4x8xf32>
    %29 = vector.shape_cast %28 : vector<1x4x8xf32> to vector<4x8xf32>
    %cst_31 = arith.constant dense<0.000000e+00> : vector<128x8xf32>
    %30 = tpu.matmul %27, %29, %cst_31 {dimension_numbers = #tpu.dot_dimension_numbers<[1], [0], [0], [1], [0, 0, 1, 1], [], []>} : vector<128x4xf32>, vector<4x8xf32>, vector<128x8xf32> -> vector<128x8xf32>
    %31 = arith.addf %25, %30 : vector<128x8xf32>
    %c0_32 = arith.constant 0 : index
    %c2 = arith.constant 2 : index
    %c0_33 = arith.constant 0 : index
    %32 = vector.load %arg11[%c0_32, %c2, %c0_33] : memref<10x18x4xf32, #tpu.memory_space<vmem>>, vector<8x16x4xf32>
    %33 = vector.shape_cast %32 : vector<8x16x4xf32> to vector<128x4xf32>
    %c2_34 = arith.constant 2 : index
    %c0_35 = arith.constant 0 : index
    %c0_36 = arith.constant 0 : index
    %34 = vector.load %arg7[%c2_34, %c0_35, %c0_36] : memref<9x4x8xf32, #tpu.memory_space<vmem>>, vector<1x4x8xf32>
    %35 = vector.shape_cast %34 : vector<1x4x8xf32> to vector<4x8xf32>
    %cst_37 = arith.constant dense<0.000000e+00> : vector<128x8xf32>
    %36 = tpu.matmul %33, %35, %cst_37 {dimension_numbers = #tpu.dot_dimension_numbers<[1], [0], [0], [1], [0, 0, 1, 1], [], []>} : vector<128x4xf32>, vector<4x8xf32>, vector<128x8xf32> -> vector<128x8xf32>
    %37 = arith.addf %31, %36 : vector<128x8xf32>
    %c1_38 = arith.constant 1 : index
    %c0_39 = arith.constant 0 : index
    %c0_40 = arith.constant 0 : index
    %38 = vector.load %arg11[%c1_38, %c0_39, %c0_40] : memref<10x18x4xf32, #tpu.memory_space<vmem>>, vector<8x16x4xf32>
    %39 = vector.shape_cast %38 : vector<8x16x4xf32> to vector<128x4xf32>
    %c3 = arith.constant 3 : index
    %c0_41 = arith.constant 0 : index
    %c0_42 = arith.constant 0 : index
    %40 = vector.load %arg7[%c3, %c0_41, %c0_42] : memref<9x4x8xf32, #tpu.memory_space<vmem>>, vector<1x4x8xf32>
    %41 = vector.shape_cast %40 : vector<1x4x8xf32> to vector<4x8xf32>
    %cst_43 = arith.constant dense<0.000000e+00> : vector<128x8xf32>
    %42 = tpu.matmul %39, %41, %cst_43 {dimension_numbers = #tpu.dot_dimension_numbers<[1], [0], [0], [1], [0, 0, 1, 1], [], []>} : vector<128x4xf32>, vector<4x8xf32>, vector<128x8xf32> -> vector<128x8xf32>
    %43 = arith.addf %37, %42 : vector<128x8xf32>
    %c1_44 = arith.constant 1 : index
    %c1_45 = arith.constant 1 : index
    %c0_46 = arith.constant 0 : index
    %44 = vector.load %arg11[%c1_44, %c1_45, %c0_46] : memref<10x18x4xf32, #tpu.memory_space<vmem>>, vector<8x16x4xf32>
    %45 = vector.shape_cast %44 : vector<8x16x4xf32> to vector<128x4xf32>
    %c4 = arith.constant 4 : index
    %c0_47 = arith.constant 0 : index
    %c0_48 = arith.constant 0 : index
    %46 = vector.load %arg7[%c4, %c0_47, %c0_48] : memref<9x4x8xf32, #tpu.memory_space<vmem>>, vector<1x4x8xf32>
    %47 = vector.shape_cast %46 : vector<1x4x8xf32> to vector<4x8xf32>
    %cst_49 = arith.constant dense<0.000000e+00> : vector<128x8xf32>
    %48 = tpu.matmul %45, %47, %cst_49 {dimension_numbers = #tpu.dot_dimension_numbers<[1], [0], [0], [1], [0, 0, 1, 1], [], []>} : vector<128x4xf32>, vector<4x8xf32>, vector<128x8xf32> -> vector<128x8xf32>
    %49 = arith.addf %43, %48 : vector<128x8xf32>
    %c1_50 = arith.constant 1 : index
    %c2_51 = arith.constant 2 : index
    %c0_52 = arith.constant 0 : index
    %50 = vector.load %arg11[%c1_50, %c2_51, %c0_52] : memref<10x18x4xf32, #tpu.memory_space<vmem>>, vector<8x16x4xf32>
    %51 = vector.shape_cast %50 : vector<8x16x4xf32> to vector<128x4xf32>
    %c5 = arith.constant 5 : index
    %c0_53 = arith.constant 0 : index
    %c0_54 = arith.constant 0 : index
    %52 = vector.load %arg7[%c5, %c0_53, %c0_54] : memref<9x4x8xf32, #tpu.memory_space<vmem>>, vector<1x4x8xf32>
    %53 = vector.shape_cast %52 : vector<1x4x8xf32> to vector<4x8xf32>
    %cst_55 = arith.constant dense<0.000000e+00> : vector<128x8xf32>
    %54 = tpu.matmul %51, %53, %cst_55 {dimension_numbers = #tpu.dot_dimension_numbers<[1], [0], [0], [1], [0, 0, 1, 1], [], []>} : vector<128x4xf32>, vector<4x8xf32>, vector<128x8xf32> -> vector<128x8xf32>
    %55 = arith.addf %49, %54 : vector<128x8xf32>
    %c2_56 = arith.constant 2 : index
    %c0_57 = arith.constant 0 : index
    %c0_58 = arith.constant 0 : index
    %56 = vector.load %arg11[%c2_56, %c0_57, %c0_58] : memref<10x18x4xf32, #tpu.memory_space<vmem>>, vector<8x16x4xf32>
    %57 = vector.shape_cast %56 : vector<8x16x4xf32> to vector<128x4xf32>
    %c6 = arith.constant 6 : index
    %c0_59 = arith.constant 0 : index
    %c0_60 = arith.constant 0 : index
    %58 = vector.load %arg7[%c6, %c0_59, %c0_60] : memref<9x4x8xf32, #tpu.memory_space<vmem>>, vector<1x4x8xf32>
    %59 = vector.shape_cast %58 : vector<1x4x8xf32> to vector<4x8xf32>
    %cst_61 = arith.constant dense<0.000000e+00> : vector<128x8xf32>
    %60 = tpu.matmul %57, %59, %cst_61 {dimension_numbers = #tpu.dot_dimension_numbers<[1], [0], [0], [1], [0, 0, 1, 1], [], []>} : vector<128x4xf32>, vector<4x8xf32>, vector<128x8xf32> -> vector<128x8xf32>
    %61 = arith.addf %55, %60 : vector<128x8xf32>
    %c2_62 = arith.constant 2 : index
    %c1_63 = arith.constant 1 : index
    %c0_64 = arith.constant 0 : index
    %62 = vector.load %arg11[%c2_62, %c1_63, %c0_64] : memref<10x18x4xf32, #tpu.memory_space<vmem>>, vector<8x16x4xf32>
    %63 = vector.shape_cast %62 : vector<8x16x4xf32> to vector<128x4xf32>
    %c7 = arith.constant 7 : index
    %c0_65 = arith.constant 0 : index
    %c0_66 = arith.constant 0 : index
    %64 = vector.load %arg7[%c7, %c0_65, %c0_66] : memref<9x4x8xf32, #tpu.memory_space<vmem>>, vector<1x4x8xf32>
    %65 = vector.shape_cast %64 : vector<1x4x8xf32> to vector<4x8xf32>
    %cst_67 = arith.constant dense<0.000000e+00> : vector<128x8xf32>
    %66 = tpu.matmul %63, %65, %cst_67 {dimension_numbers = #tpu.dot_dimension_numbers<[1], [0], [0], [1], [0, 0, 1, 1], [], []>} : vector<128x4xf32>, vector<4x8xf32>, vector<128x8xf32> -> vector<128x8xf32>
    %67 = arith.addf %61, %66 : vector<128x8xf32>
    %c2_68 = arith.constant 2 : index
    %c2_69 = arith.constant 2 : index
    %c0_70 = arith.constant 0 : index
    %68 = vector.load %arg11[%c2_68, %c2_69, %c0_70] : memref<10x18x4xf32, #tpu.memory_space<vmem>>, vector<8x16x4xf32>
    %69 = vector.shape_cast %68 : vector<8x16x4xf32> to vector<128x4xf32>
    %c8 = arith.constant 8 : index
    %c0_71 = arith.constant 0 : index
    %c0_72 = arith.constant 0 : index
    %70 = vector.load %arg7[%c8, %c0_71, %c0_72] : memref<9x4x8xf32, #tpu.memory_space<vmem>>, vector<1x4x8xf32>
    %71 = vector.shape_cast %70 : vector<1x4x8xf32> to vector<4x8xf32>
    %cst_73 = arith.constant dense<0.000000e+00> : vector<128x8xf32>
    %72 = tpu.matmul %69, %71, %cst_73 {dimension_numbers = #tpu.dot_dimension_numbers<[1], [0], [0], [1], [0, 0, 1, 1], [], []>} : vector<128x4xf32>, vector<4x8xf32>, vector<128x8xf32> -> vector<128x8xf32>
    %73 = arith.addf %67, %72 : vector<128x8xf32>
    %74 = vector.shape_cast %73 : vector<128x8xf32> to vector<8x16x8xf32>
    %c0_74 = arith.constant 0 : index
    %c0_75 = arith.constant 0 : index
    %c0_76 = arith.constant 0 : index
    %c0_77 = arith.constant 0 : index
    %75 = vector.load %arg8[%c0_74, %c0_75, %c0_76, %c0_77] : memref<1x8x16x8xf32, #tpu.memory_space<vmem>>, vector<1x8x16x8xf32>
    %76 = vector.shape_cast %75 : vector<1x8x16x8xf32> to vector<8x16x8xf32>
    %77 = vector.shape_cast %74 : vector<8x16x8xf32> to vector<1x8x16x8xf32>
    tpu.vector_store %arg8[%c0_74, %c0_75, %c0_76, %c0_77], %77 {strides = array<i32>} : memref<1x8x16x8xf32, #tpu.memory_space<vmem>>, vector<1x8x16x8xf32>,
    %cst_78 = arith.constant dense<0.000000e+00> : vector<8xf32>
    %78 = vector.multi_reduction <add>, %73, %cst_78 [0] : vector<128x8xf32> to vector<8xf32>
    %79 = vector.shape_cast %78 : vector<8xf32> to vector<1x8xf32>
    %80 = arith.mulf %73, %73 : vector<128x8xf32>
    %cst_79 = arith.constant dense<0.000000e+00> : vector<8xf32>
    %81 = vector.multi_reduction <add>, %80, %cst_79 [0] : vector<128x8xf32> to vector<8xf32>
    %82 = vector.shape_cast %81 : vector<8xf32> to vector<1x8xf32>
    %c0_i32_80 = arith.constant 0 : i32
    %83 = arith.cmpi eq, %arg1, %c0_i32_80 : i32
    %84 = arith.extui %83 : i1 to i32
    %c0_i32_81 = arith.constant 0 : i32
    %85 = arith.cmpi ne, %84, %c0_i32_81 : i32
    scf.if %85 {
      %c0_84 = arith.constant 0 : index
      %c0_85 = arith.constant 0 : index
      %c0_86 = arith.constant 0 : index
      %89 = vector.load %arg9[%c0_84, %c0_85, %c0_86] : memref<1x1x8xf32, #tpu.memory_space<vmem>>, vector<1x1x8xf32>
      %90 = vector.shape_cast %89 : vector<1x1x8xf32> to vector<1x8xf32>
      %91 = vector.shape_cast %79 : vector<1x8xf32> to vector<1x1x8xf32>
      tpu.vector_store %arg9[%c0_84, %c0_85, %c0_86], %91 {strides = array<i32>} : memref<1x1x8xf32, #tpu.memory_space<vmem>>, vector<1x1x8xf32>,
      %c0_87 = arith.constant 0 : index
      %c0_88 = arith.constant 0 : index
      %c0_89 = arith.constant 0 : index
      %92 = vector.load %arg10[%c0_87, %c0_88, %c0_89] : memref<1x1x8xf32, #tpu.memory_space<vmem>>, vector<1x1x8xf32>
      %93 = vector.shape_cast %92 : vector<1x1x8xf32> to vector<1x8xf32>
      %94 = vector.shape_cast %82 : vector<1x8xf32> to vector<1x1x8xf32>
      tpu.vector_store %arg10[%c0_87, %c0_88, %c0_89], %94 {strides = array<i32>} : memref<1x1x8xf32, #tpu.memory_space<vmem>>, vector<1x1x8xf32>,
    } else {
    }
    %c0_i32_82 = arith.constant 0 : i32
    %86 = arith.cmpi sgt, %arg1, %c0_i32_82 : i32
    %87 = arith.extui %86 : i1 to i32
    %c0_i32_83 = arith.constant 0 : i32
    %88 = arith.cmpi ne, %87, %c0_i32_83 : i32
    scf.if %88 {
      %c0_84 = arith.constant 0 : index
      %c0_85 = arith.constant 0 : index
      %c0_86 = arith.constant 0 : index
      %89 = vector.load %arg9[%c0_84, %c0_85, %c0_86] : memref<1x1x8xf32, #tpu.memory_space<vmem>>, vector<1x1x8xf32>
      %90 = vector.shape_cast %89 : vector<1x1x8xf32> to vector<1x8xf32>
      %91 = arith.addf %90, %79 : vector<1x8xf32>
      %c0_87 = arith.constant 0 : index
      %c0_88 = arith.constant 0 : index
      %c0_89 = arith.constant 0 : index
      %92 = vector.load %arg9[%c0_87, %c0_88, %c0_89] : memref<1x1x8xf32, #tpu.memory_space<vmem>>, vector<1x1x8xf32>
      %93 = vector.shape_cast %92 : vector<1x1x8xf32> to vector<1x8xf32>
      %94 = vector.shape_cast %91 : vector<1x8xf32> to vector<1x1x8xf32>
      tpu.vector_store %arg9[%c0_87, %c0_88, %c0_89], %94 {strides = array<i32>} : memref<1x1x8xf32, #tpu.memory_space<vmem>>, vector<1x1x8xf32>,
      %c0_90 = arith.constant 0 : index
      %c0_91 = arith.constant 0 : index
      %c0_92 = arith.constant 0 : index
      %95 = vector.load %arg10[%c0_90, %c0_91, %c0_92] : memref<1x1x8xf32, #tpu.memory_space<vmem>>, vector<1x1x8xf32>
      %96 = vector.shape_cast %95 : vector<1x1x8xf32> to vector<1x8xf32>
      %97 = arith.addf %96, %82 : vector<1x8xf32>
      %c0_93 = arith.constant 0 : index
      %c0_94 = arith.constant 0 : index
      %c0_95 = arith.constant 0 : index
      %98 = vector.load %arg10[%c0_93, %c0_94, %c0_95] : memref<1x1x8xf32, #tpu.memory_space<vmem>>, vector<1x1x8xf32>
      %99 = vector.shape_cast %98 : vector<1x1x8xf32> to vector<1x8xf32>
      %100 = vector.shape_cast %97 : vector<1x8xf32> to vector<1x1x8xf32>
      tpu.vector_store %arg10[%c0_93, %c0_94, %c0_95], %100 {strides = array<i32>} : memref<1x1x8xf32, #tpu.memory_space<vmem>>, vector<1x1x8xf32>,
    } else {
    }
    return
  }
  func.func @transform_0(%arg0: i32, %arg1: i32) -> (i32, i32) {
    %c0_i32 = arith.constant 0 : i32
    %c0_i32_0 = arith.constant 0 : i32
    %c0_i32_1 = arith.constant 0 : i32
    return %c0_i32, %c0_i32_0 : i32, i32
  }
  func.func @transform_1(%arg0: i32, %arg1: i32) -> (i32, i32) {
    %c0_i32 = arith.constant 0 : i32
    %c0_i32_0 = arith.constant 0 : i32
    %c0_i32_1 = arith.constant 0 : i32
    return %c0_i32, %c0_i32_0 : i32, i32
  }
  func.func @transform_2(%arg0: i32, %arg1: i32) -> (i32, i32, i32, i32) {
    %c0_i32 = arith.constant 0 : i32
    %c0_i32_0 = arith.constant 0 : i32
    %c0_i32_1 = arith.constant 0 : i32
    return %arg0, %arg1, %c0_i32, %c0_i32_0 : i32, i32, i32, i32
  }
  func.func @transform_3(%arg0: i32, %arg1: i32) -> (i32, i32, i32, i32) {
    %c8_i32 = arith.constant 8 : i32
    %0 = arith.muli %arg1, %c8_i32 : i32
    %c1_i32 = arith.constant 1 : i32
    %1 = arith.subi %0, %c1_i32 : i32
    %c0_i32 = arith.constant 0 : i32
    %2 = arith.maxsi %1, %c0_i32 : i32
    %c0_i32_0 = arith.constant 0 : i32
    %c0_i32_1 = arith.constant 0 : i32
    %c0_i32_2 = arith.constant 0 : i32
    return %arg0, %2, %c0_i32_0, %c0_i32_1 : i32, i32, i32, i32
  }
  func.func @transform_4(%arg0: i32, %arg1: i32) -> (i32, i32, i32, i32) {
    %c1_i32 = arith.constant 1 : i32
    %0 = arith.addi %arg1, %c1_i32 : i32
    %c8_i32 = arith.constant 8 : i32
    %1 = arith.muli %0, %c8_i32 : i32
    %c15_i32 = arith.constant 15 : i32
    %2 = arith.minsi %1, %c15_i32 : i32
    %c0_i32 = arith.constant 0 : i32
    %c0_i32_0 = arith.constant 0 : i32
    %c0_i32_1 = arith.constant 0 : i32
    return %arg0, %2, %c0_i32, %c0_i32_0 : i32, i32, i32, i32
  }
  func.func @transform_5(%arg0: i32, %arg1: i32) -> (i32, i32, i32) {
    %c0_i32 = arith.constant 0 : i32
    %c0_i32_0 = arith.constant 0 : i32
    %c0_i32_1 = arith.constant 0 : i32
    %c0_i32_2 = arith.constant 0 : i32
    return %c0_i32, %c0_i32_0, %c0_i32_1 : i32, i32, i32
  }
  func.func @transform_6(%arg0: i32, %arg1: i32) -> (i32, i32, i32, i32) {
    %c0_i32 = arith.constant 0 : i32
    %c0_i32_0 = arith.constant 0 : i32
    %c0_i32_1 = arith.constant 0 : i32
    return %arg0, %arg1, %c0_i32, %c0_i32_0 : i32, i32, i32, i32
  }
  func.func @transform_7(%arg0: i32, %arg1: i32) -> (i32, i32, i32) {
    %c0_i32 = arith.constant 0 : i32
    %c0_i32_0 = arith.constant 0 : i32
    %c0_i32_1 = arith.constant 0 : i32
    return %arg0, %c0_i32, %c0_i32_0 : i32, i32, i32
  }
  func.func @transform_8(%arg0: i32, %arg1: i32) -> (i32, i32, i32) {
    %c0_i32 = arith.constant 0 : i32
    %c0_i32_0 = arith.constant 0 : i32
    %c0_i32_1 = arith.constant 0 : i32
    return %arg0, %c0_i32, %c0_i32_0 : i32, i32, i32
  }
}

module attributes {stable_mosaic.version = 11 : i64} {
  func.func @_bn_relu_kernel(%arg0: i32, %arg1: i32, %arg2: memref<1x8xf32, #tpu.memory_space<vmem>>, %arg3: memref<1x8xf32, #tpu.memory_space<vmem>>, %arg4: memref<1x8x16x8xf32, #tpu.memory_space<vmem>>, %arg5: memref<1x8x16x8xf32, #tpu.memory_space<vmem>>) attributes {dimension_semantics = [#tpu.dimension_semantics<parallel>, #tpu.dimension_semantics<parallel>], iteration_bounds = array<i64: 2, 2>, scalar_prefetch = 0 : i64, scratch_operands = 0 : i64, tpu.core_type = #tpu.core_type<tc>, window_params = [{pipeline_mode = #tpu.pipeline_mode<synchronous>, transform_indices = @transform_0, window_bounds = array<i64: 1, 8>}, {pipeline_mode = #tpu.pipeline_mode<synchronous>, transform_indices = @transform_1, window_bounds = array<i64: 1, 8>}, {transform_indices = @transform_2, window_bounds = array<i64: 1, 8, 16, 8>}, {transform_indices = @transform_3, window_bounds = array<i64: 1, 8, 16, 8>}]} {
    %c0 = arith.constant 0 : index
    %c0_0 = arith.constant 0 : index
    %c0_1 = arith.constant 0 : index
    %c0_2 = arith.constant 0 : index
    %0 = vector.load %arg4[%c0, %c0_0, %c0_1, %c0_2] : memref<1x8x16x8xf32, #tpu.memory_space<vmem>>, vector<1x8x16x8xf32>
    %c0_3 = arith.constant 0 : index
    %c0_4 = arith.constant 0 : index
    %1 = vector.load %arg2[%c0_3, %c0_4] : memref<1x8xf32, #tpu.memory_space<vmem>>, vector<1x8xf32>
    %2 = vector.shape_cast %1 : vector<1x8xf32> to vector<8xf32>
    %3 = vector.shape_cast %2 : vector<8xf32> to vector<1x1x1x8xf32>
    %4 = vector.broadcast %3 : vector<1x1x1x8xf32> to vector<1x8x16x8xf32>
    %5 = arith.mulf %0, %4 : vector<1x8x16x8xf32>
    %c0_5 = arith.constant 0 : index
    %c0_6 = arith.constant 0 : index
    %6 = vector.load %arg3[%c0_5, %c0_6] : memref<1x8xf32, #tpu.memory_space<vmem>>, vector<1x8xf32>
    %7 = vector.shape_cast %6 : vector<1x8xf32> to vector<8xf32>
    %8 = vector.shape_cast %7 : vector<8xf32> to vector<1x1x1x8xf32>
    %9 = vector.broadcast %8 : vector<1x1x1x8xf32> to vector<1x8x16x8xf32>
    %10 = arith.addf %5, %9 : vector<1x8x16x8xf32>
    %cst = arith.constant 0.000000e+00 : f32
    %11 = vector.broadcast %cst : f32 to vector<1x8x16x8xf32>
    %12 = arith.maximumf %10, %11 : vector<1x8x16x8xf32>
    %c0_7 = arith.constant 0 : index
    %c0_8 = arith.constant 0 : index
    %c0_9 = arith.constant 0 : index
    %c0_10 = arith.constant 0 : index
    %13 = vector.load %arg5[%c0_7, %c0_8, %c0_9, %c0_10] : memref<1x8x16x8xf32, #tpu.memory_space<vmem>>, vector<1x8x16x8xf32>
    tpu.vector_store %arg5[%c0_7, %c0_8, %c0_9, %c0_10], %12 {strides = array<i32>} : memref<1x8x16x8xf32, #tpu.memory_space<vmem>>, vector<1x8x16x8xf32>,
    return
  }
  func.func @transform_0(%arg0: i32, %arg1: i32) -> (i32, i32) {
    %c0_i32 = arith.constant 0 : i32
    %c0_i32_0 = arith.constant 0 : i32
    %c0_i32_1 = arith.constant 0 : i32
    return %c0_i32, %c0_i32_0 : i32, i32
  }
  func.func @transform_1(%arg0: i32, %arg1: i32) -> (i32, i32) {
    %c0_i32 = arith.constant 0 : i32
    %c0_i32_0 = arith.constant 0 : i32
    %c0_i32_1 = arith.constant 0 : i32
    return %c0_i32, %c0_i32_0 : i32, i32
  }
  func.func @transform_2(%arg0: i32, %arg1: i32) -> (i32, i32, i32, i32) {
    %c0_i32 = arith.constant 0 : i32
    %c0_i32_0 = arith.constant 0 : i32
    %c0_i32_1 = arith.constant 0 : i32
    return %arg0, %arg1, %c0_i32, %c0_i32_0 : i32, i32, i32, i32
  }
  func.func @transform_3(%arg0: i32, %arg1: i32) -> (i32, i32, i32, i32) {
    %c0_i32 = arith.constant 0 : i32
    %c0_i32_0 = arith.constant 0 : i32
    %c0_i32_1 = arith.constant 0 : i32
    return %arg0, %arg1, %c0_i32, %c0_i32_0 : i32, i32, i32, i32
  }
}

module attributes {stable_mosaic.version = 11 : i64} {
  func.func @_conv_kernel(%arg0: i32, %arg1: i32, %arg2: memref<1x8xf32, #tpu.memory_space<vmem>>, %arg3: memref<1x8xf32, #tpu.memory_space<vmem>>, %arg4: memref<1x8x16x8xf32, #tpu.memory_space<vmem>>, %arg5: memref<1x1x16x8xf32, #tpu.memory_space<vmem>>, %arg6: memref<1x1x16x8xf32, #tpu.memory_space<vmem>>, %arg7: memref<9x8x8xf32, #tpu.memory_space<vmem>>, %arg8: memref<1x8x16x8xf32, #tpu.memory_space<vmem>>, %arg9: memref<1x1x8xf32, #tpu.memory_space<vmem>>, %arg10: memref<1x1x8xf32, #tpu.memory_space<vmem>>, %arg11: memref<10x18x8xf32, #tpu.memory_space<vmem>>) attributes {dimension_semantics = [#tpu.dimension_semantics<parallel>, #tpu.dimension_semantics<arbitrary>], iteration_bounds = array<i64: 2, 2>, scalar_prefetch = 0 : i64, scratch_operands = 1 : i64, tpu.core_type = #tpu.core_type<tc>, window_params = [{pipeline_mode = #tpu.pipeline_mode<synchronous>, transform_indices = @transform_0, window_bounds = array<i64: 1, 8>}, {pipeline_mode = #tpu.pipeline_mode<synchronous>, transform_indices = @transform_1, window_bounds = array<i64: 1, 8>}, {transform_indices = @transform_2, window_bounds = array<i64: 1, 8, 16, 8>}, {transform_indices = @transform_3, window_bounds = array<i64: 1, 1, 16, 8>}, {transform_indices = @transform_4, window_bounds = array<i64: 1, 1, 16, 8>}, {pipeline_mode = #tpu.pipeline_mode<synchronous>, transform_indices = @transform_5, window_bounds = array<i64: 9, 8, 8>}, {transform_indices = @transform_6, window_bounds = array<i64: 1, 8, 16, 8>}, {transform_indices = @transform_7, window_bounds = array<i64: 1, 1, 8>}, {transform_indices = @transform_8, window_bounds = array<i64: 1, 1, 8>}]} {
    %cst = arith.constant 0.000000e+00 : f32
    %0 = vector.broadcast %cst : f32 to vector<10x1x8xf32>
    %c0 = arith.constant 0 : index
    %c0_0 = arith.constant 0 : index
    %c0_1 = arith.constant 0 : index
    %1 = vector.load %arg11[%c0, %c0_0, %c0_1] : memref<10x18x8xf32, #tpu.memory_space<vmem>>, vector<10x1x8xf32>
    tpu.vector_store %arg11[%c0, %c0_0, %c0_1], %0 {strides = array<i32>} : memref<10x18x8xf32, #tpu.memory_space<vmem>>, vector<10x1x8xf32>,
    %c0_2 = arith.constant 0 : index
    %c17 = arith.constant 17 : index
    %c0_3 = arith.constant 0 : index
    %2 = vector.load %arg11[%c0_2, %c17, %c0_3] : memref<10x18x8xf32, #tpu.memory_space<vmem>>, vector<10x1x8xf32>
    tpu.vector_store %arg11[%c0_2, %c17, %c0_3], %0 {strides = array<i32>} : memref<10x18x8xf32, #tpu.memory_space<vmem>>, vector<10x1x8xf32>,
    %c0_4 = arith.constant 0 : index
    %c0_5 = arith.constant 0 : index
    %c0_6 = arith.constant 0 : index
    %c0_7 = arith.constant 0 : index
    %3 = vector.load %arg4[%c0_4, %c0_5, %c0_6, %c0_7] : memref<1x8x16x8xf32, #tpu.memory_space<vmem>>, vector<1x8x16x8xf32>
    %4 = vector.shape_cast %3 : vector<1x8x16x8xf32> to vector<8x16x8xf32>
    %c0_8 = arith.constant 0 : index
    %c0_9 = arith.constant 0 : index
    %5 = vector.load %arg2[%c0_8, %c0_9] : memref<1x8xf32, #tpu.memory_space<vmem>>, vector<1x8xf32>
    %6 = vector.shape_cast %5 : vector<1x8xf32> to vector<8xf32>
    %7 = vector.shape_cast %6 : vector<8xf32> to vector<1x1x8xf32>
    %8 = vector.broadcast %7 : vector<1x1x8xf32> to vector<8x16x8xf32>
    %9 = arith.mulf %4, %8 : vector<8x16x8xf32>
    %c0_10 = arith.constant 0 : index
    %c0_11 = arith.constant 0 : index
    %10 = vector.load %arg3[%c0_10, %c0_11] : memref<1x8xf32, #tpu.memory_space<vmem>>, vector<1x8xf32>
    %11 = vector.shape_cast %10 : vector<1x8xf32> to vector<8xf32>
    %12 = vector.shape_cast %11 : vector<8xf32> to vector<1x1x8xf32>
    %13 = vector.broadcast %12 : vector<1x1x8xf32> to vector<8x16x8xf32>
    %14 = arith.addf %9, %13 : vector<8x16x8xf32>
    %cst_12 = arith.constant 0.000000e+00 : f32
    %15 = vector.broadcast %cst_12 : f32 to vector<8x16x8xf32>
    %16 = arith.maximumf %14, %15 : vector<8x16x8xf32>
    %c1 = arith.constant 1 : index
    %c1_13 = arith.constant 1 : index
    %c0_14 = arith.constant 0 : index
    %17 = vector.load %arg11[%c1, %c1_13, %c0_14] : memref<10x18x8xf32, #tpu.memory_space<vmem>>, vector<8x16x8xf32>
    tpu.vector_store %arg11[%c1, %c1_13, %c0_14], %16 {strides = array<i32>} : memref<10x18x8xf32, #tpu.memory_space<vmem>>, vector<8x16x8xf32>,
    %cst_15 = arith.constant 0.000000e+00 : f32
    %18 = vector.broadcast %cst_15 : f32 to vector<1x16x8xf32>
    %c0_i32 = arith.constant 0 : i32
    %19 = arith.cmpi eq, %arg1, %c0_i32 : i32
    %20 = arith.extui %19 : i1 to i32
    %c0_i32_16 = arith.constant 0 : i32
    %21 = arith.cmpi ne, %20, %c0_i32_16 : i32
    scf.if %21 {
      %c0_89 = arith.constant 0 : index
      %c1_90 = arith.constant 1 : index
      %c0_91 = arith.constant 0 : index
      %101 = vector.load %arg11[%c0_89, %c1_90, %c0_91] : memref<10x18x8xf32, #tpu.memory_space<vmem>>, vector<1x16x8xf32>
      tpu.vector_store %arg11[%c0_89, %c1_90, %c0_91], %18 {strides = array<i32>} : memref<10x18x8xf32, #tpu.memory_space<vmem>>, vector<1x16x8xf32>,
    } else {
    }
    %c0_i32_17 = arith.constant 0 : i32
    %22 = arith.cmpi sgt, %arg1, %c0_i32_17 : i32
    %23 = arith.extui %22 : i1 to i32
    %c0_i32_18 = arith.constant 0 : i32
    %24 = arith.cmpi ne, %23, %c0_i32_18 : i32
    scf.if %24 {
      %c0_89 = arith.constant 0 : index
      %c0_90 = arith.constant 0 : index
      %c0_91 = arith.constant 0 : index
      %c0_92 = arith.constant 0 : index
      %101 = vector.load %arg5[%c0_89, %c0_90, %c0_91, %c0_92] : memref<1x1x16x8xf32, #tpu.memory_space<vmem>>, vector<1x1x16x8xf32>
      %102 = vector.shape_cast %101 : vector<1x1x16x8xf32> to vector<1x16x8xf32>
      %c0_93 = arith.constant 0 : index
      %c0_94 = arith.constant 0 : index
      %103 = vector.load %arg2[%c0_93, %c0_94] : memref<1x8xf32, #tpu.memory_space<vmem>>, vector<1x8xf32>
      %104 = vector.shape_cast %103 : vector<1x8xf32> to vector<8xf32>
      %105 = vector.shape_cast %104 : vector<8xf32> to vector<1x1x8xf32>
      %106 = vector.broadcast %105 : vector<1x1x8xf32> to vector<1x16x8xf32>
      %107 = arith.mulf %102, %106 : vector<1x16x8xf32>
      %c0_95 = arith.constant 0 : index
      %c0_96 = arith.constant 0 : index
      %108 = vector.load %arg3[%c0_95, %c0_96] : memref<1x8xf32, #tpu.memory_space<vmem>>, vector<1x8xf32>
      %109 = vector.shape_cast %108 : vector<1x8xf32> to vector<8xf32>
      %110 = vector.shape_cast %109 : vector<8xf32> to vector<1x1x8xf32>
      %111 = vector.broadcast %110 : vector<1x1x8xf32> to vector<1x16x8xf32>
      %112 = arith.addf %107, %111 : vector<1x16x8xf32>
      %cst_97 = arith.constant 0.000000e+00 : f32
      %113 = vector.broadcast %cst_97 : f32 to vector<1x16x8xf32>
      %114 = arith.maximumf %112, %113 : vector<1x16x8xf32>
      %c0_98 = arith.constant 0 : index
      %c1_99 = arith.constant 1 : index
      %c0_100 = arith.constant 0 : index
      %115 = vector.load %arg11[%c0_98, %c1_99, %c0_100] : memref<10x18x8xf32, #tpu.memory_space<vmem>>, vector<1x16x8xf32>
      tpu.vector_store %arg11[%c0_98, %c1_99, %c0_100], %114 {strides = array<i32>} : memref<10x18x8xf32, #tpu.memory_space<vmem>>, vector<1x16x8xf32>,
    } else {
    }
    %c1_i32 = arith.constant 1 : i32
    %25 = arith.cmpi eq, %arg1, %c1_i32 : i32
    %26 = arith.extui %25 : i1 to i32
    %c0_i32_19 = arith.constant 0 : i32
    %27 = arith.cmpi ne, %26, %c0_i32_19 : i32
    scf.if %27 {
      %c9 = arith.constant 9 : index
      %c1_89 = arith.constant 1 : index
      %c0_90 = arith.constant 0 : index
      %101 = vector.load %arg11[%c9, %c1_89, %c0_90] : memref<10x18x8xf32, #tpu.memory_space<vmem>>, vector<1x16x8xf32>
      tpu.vector_store %arg11[%c9, %c1_89, %c0_90], %18 {strides = array<i32>} : memref<10x18x8xf32, #tpu.memory_space<vmem>>, vector<1x16x8xf32>,
    } else {
    }
    %c1_i32_20 = arith.constant 1 : i32
    %28 = arith.cmpi slt, %arg1, %c1_i32_20 : i32
    %29 = arith.extui %28 : i1 to i32
    %c0_i32_21 = arith.constant 0 : i32
    %30 = arith.cmpi ne, %29, %c0_i32_21 : i32
    scf.if %30 {
      %c0_89 = arith.constant 0 : index
      %c0_90 = arith.constant 0 : index
      %c0_91 = arith.constant 0 : index
      %c0_92 = arith.constant 0 : index
      %101 = vector.load %arg6[%c0_89, %c0_90, %c0_91, %c0_92] : memref<1x1x16x8xf32, #tpu.memory_space<vmem>>, vector<1x1x16x8xf32>
      %102 = vector.shape_cast %101 : vector<1x1x16x8xf32> to vector<1x16x8xf32>
      %c0_93 = arith.constant 0 : index
      %c0_94 = arith.constant 0 : index
      %103 = vector.load %arg2[%c0_93, %c0_94] : memref<1x8xf32, #tpu.memory_space<vmem>>, vector<1x8xf32>
      %104 = vector.shape_cast %103 : vector<1x8xf32> to vector<8xf32>
      %105 = vector.shape_cast %104 : vector<8xf32> to vector<1x1x8xf32>
      %106 = vector.broadcast %105 : vector<1x1x8xf32> to vector<1x16x8xf32>
      %107 = arith.mulf %102, %106 : vector<1x16x8xf32>
      %c0_95 = arith.constant 0 : index
      %c0_96 = arith.constant 0 : index
      %108 = vector.load %arg3[%c0_95, %c0_96] : memref<1x8xf32, #tpu.memory_space<vmem>>, vector<1x8xf32>
      %109 = vector.shape_cast %108 : vector<1x8xf32> to vector<8xf32>
      %110 = vector.shape_cast %109 : vector<8xf32> to vector<1x1x8xf32>
      %111 = vector.broadcast %110 : vector<1x1x8xf32> to vector<1x16x8xf32>
      %112 = arith.addf %107, %111 : vector<1x16x8xf32>
      %cst_97 = arith.constant 0.000000e+00 : f32
      %113 = vector.broadcast %cst_97 : f32 to vector<1x16x8xf32>
      %114 = arith.maximumf %112, %113 : vector<1x16x8xf32>
      %c9 = arith.constant 9 : index
      %c1_98 = arith.constant 1 : index
      %c0_99 = arith.constant 0 : index
      %115 = vector.load %arg11[%c9, %c1_98, %c0_99] : memref<10x18x8xf32, #tpu.memory_space<vmem>>, vector<1x16x8xf32>
      tpu.vector_store %arg11[%c9, %c1_98, %c0_99], %114 {strides = array<i32>} : memref<10x18x8xf32, #tpu.memory_space<vmem>>, vector<1x16x8xf32>,
    } else {
    }
    %cst_22 = arith.constant 0.000000e+00 : f32
    %31 = vector.broadcast %cst_22 : f32 to vector<128x8xf32>
    %c0_23 = arith.constant 0 : index
    %c0_24 = arith.constant 0 : index
    %c0_25 = arith.constant 0 : index
    %32 = vector.load %arg11[%c0_23, %c0_24, %c0_25] : memref<10x18x8xf32, #tpu.memory_space<vmem>>, vector<8x16x8xf32>
    %33 = vector.shape_cast %32 : vector<8x16x8xf32> to vector<128x8xf32>
    %c0_26 = arith.constant 0 : index
    %c0_27 = arith.constant 0 : index
    %c0_28 = arith.constant 0 : index
    %34 = vector.load %arg7[%c0_26, %c0_27, %c0_28] : memref<9x8x8xf32, #tpu.memory_space<vmem>>, vector<1x8x8xf32>
    %35 = vector.shape_cast %34 : vector<1x8x8xf32> to vector<8x8xf32>
    %cst_29 = arith.constant dense<0.000000e+00> : vector<128x8xf32>
    %36 = tpu.matmul %33, %35, %cst_29 {dimension_numbers = #tpu.dot_dimension_numbers<[1], [0], [0], [1], [0, 0, 1, 1], [], []>} : vector<128x8xf32>, vector<8x8xf32>, vector<128x8xf32> -> vector<128x8xf32>
    %37 = arith.addf %31, %36 : vector<128x8xf32>
    %c0_30 = arith.constant 0 : index
    %c1_31 = arith.constant 1 : index
    %c0_32 = arith.constant 0 : index
    %38 = vector.load %arg11[%c0_30, %c1_31, %c0_32] : memref<10x18x8xf32, #tpu.memory_space<vmem>>, vector<8x16x8xf32>
    %39 = vector.shape_cast %38 : vector<8x16x8xf32> to vector<128x8xf32>
    %c1_33 = arith.constant 1 : index
    %c0_34 = arith.constant 0 : index
    %c0_35 = arith.constant 0 : index
    %40 = vector.load %arg7[%c1_33, %c0_34, %c0_35] : memref<9x8x8xf32, #tpu.memory_space<vmem>>, vector<1x8x8xf32>
    %41 = vector.shape_cast %40 : vector<1x8x8xf32> to vector<8x8xf32>
    %cst_36 = arith.constant dense<0.000000e+00> : vector<128x8xf32>
    %42 = tpu.matmul %39, %41, %cst_36 {dimension_numbers = #tpu.dot_dimension_numbers<[1], [0], [0], [1], [0, 0, 1, 1], [], []>} : vector<128x8xf32>, vector<8x8xf32>, vector<128x8xf32> -> vector<128x8xf32>
    %43 = arith.addf %37, %42 : vector<128x8xf32>
    %c0_37 = arith.constant 0 : index
    %c2 = arith.constant 2 : index
    %c0_38 = arith.constant 0 : index
    %44 = vector.load %arg11[%c0_37, %c2, %c0_38] : memref<10x18x8xf32, #tpu.memory_space<vmem>>, vector<8x16x8xf32>
    %45 = vector.shape_cast %44 : vector<8x16x8xf32> to vector<128x8xf32>
    %c2_39 = arith.constant 2 : index
    %c0_40 = arith.constant 0 : index
    %c0_41 = arith.constant 0 : index
    %46 = vector.load %arg7[%c2_39, %c0_40, %c0_41] : memref<9x8x8xf32, #tpu.memory_space<vmem>>, vector<1x8x8xf32>
    %47 = vector.shape_cast %46 : vector<1x8x8xf32> to vector<8x8xf32>
    %cst_42 = arith.constant dense<0.000000e+00> : vector<128x8xf32>
    %48 = tpu.matmul %45, %47, %cst_42 {dimension_numbers = #tpu.dot_dimension_numbers<[1], [0], [0], [1], [0, 0, 1, 1], [], []>} : vector<128x8xf32>, vector<8x8xf32>, vector<128x8xf32> -> vector<128x8xf32>
    %49 = arith.addf %43, %48 : vector<128x8xf32>
    %c1_43 = arith.constant 1 : index
    %c0_44 = arith.constant 0 : index
    %c0_45 = arith.constant 0 : index
    %50 = vector.load %arg11[%c1_43, %c0_44, %c0_45] : memref<10x18x8xf32, #tpu.memory_space<vmem>>, vector<8x16x8xf32>
    %51 = vector.shape_cast %50 : vector<8x16x8xf32> to vector<128x8xf32>
    %c3 = arith.constant 3 : index
    %c0_46 = arith.constant 0 : index
    %c0_47 = arith.constant 0 : index
    %52 = vector.load %arg7[%c3, %c0_46, %c0_47] : memref<9x8x8xf32, #tpu.memory_space<vmem>>, vector<1x8x8xf32>
    %53 = vector.shape_cast %52 : vector<1x8x8xf32> to vector<8x8xf32>
    %cst_48 = arith.constant dense<0.000000e+00> : vector<128x8xf32>
    %54 = tpu.matmul %51, %53, %cst_48 {dimension_numbers = #tpu.dot_dimension_numbers<[1], [0], [0], [1], [0, 0, 1, 1], [], []>} : vector<128x8xf32>, vector<8x8xf32>, vector<128x8xf32> -> vector<128x8xf32>
    %55 = arith.addf %49, %54 : vector<128x8xf32>
    %c1_49 = arith.constant 1 : index
    %c1_50 = arith.constant 1 : index
    %c0_51 = arith.constant 0 : index
    %56 = vector.load %arg11[%c1_49, %c1_50, %c0_51] : memref<10x18x8xf32, #tpu.memory_space<vmem>>, vector<8x16x8xf32>
    %57 = vector.shape_cast %56 : vector<8x16x8xf32> to vector<128x8xf32>
    %c4 = arith.constant 4 : index
    %c0_52 = arith.constant 0 : index
    %c0_53 = arith.constant 0 : index
    %58 = vector.load %arg7[%c4, %c0_52, %c0_53] : memref<9x8x8xf32, #tpu.memory_space<vmem>>, vector<1x8x8xf32>
    %59 = vector.shape_cast %58 : vector<1x8x8xf32> to vector<8x8xf32>
    %cst_54 = arith.constant dense<0.000000e+00> : vector<128x8xf32>
    %60 = tpu.matmul %57, %59, %cst_54 {dimension_numbers = #tpu.dot_dimension_numbers<[1], [0], [0], [1], [0, 0, 1, 1], [], []>} : vector<128x8xf32>, vector<8x8xf32>, vector<128x8xf32> -> vector<128x8xf32>
    %61 = arith.addf %55, %60 : vector<128x8xf32>
    %c1_55 = arith.constant 1 : index
    %c2_56 = arith.constant 2 : index
    %c0_57 = arith.constant 0 : index
    %62 = vector.load %arg11[%c1_55, %c2_56, %c0_57] : memref<10x18x8xf32, #tpu.memory_space<vmem>>, vector<8x16x8xf32>
    %63 = vector.shape_cast %62 : vector<8x16x8xf32> to vector<128x8xf32>
    %c5 = arith.constant 5 : index
    %c0_58 = arith.constant 0 : index
    %c0_59 = arith.constant 0 : index
    %64 = vector.load %arg7[%c5, %c0_58, %c0_59] : memref<9x8x8xf32, #tpu.memory_space<vmem>>, vector<1x8x8xf32>
    %65 = vector.shape_cast %64 : vector<1x8x8xf32> to vector<8x8xf32>
    %cst_60 = arith.constant dense<0.000000e+00> : vector<128x8xf32>
    %66 = tpu.matmul %63, %65, %cst_60 {dimension_numbers = #tpu.dot_dimension_numbers<[1], [0], [0], [1], [0, 0, 1, 1], [], []>} : vector<128x8xf32>, vector<8x8xf32>, vector<128x8xf32> -> vector<128x8xf32>
    %67 = arith.addf %61, %66 : vector<128x8xf32>
    %c2_61 = arith.constant 2 : index
    %c0_62 = arith.constant 0 : index
    %c0_63 = arith.constant 0 : index
    %68 = vector.load %arg11[%c2_61, %c0_62, %c0_63] : memref<10x18x8xf32, #tpu.memory_space<vmem>>, vector<8x16x8xf32>
    %69 = vector.shape_cast %68 : vector<8x16x8xf32> to vector<128x8xf32>
    %c6 = arith.constant 6 : index
    %c0_64 = arith.constant 0 : index
    %c0_65 = arith.constant 0 : index
    %70 = vector.load %arg7[%c6, %c0_64, %c0_65] : memref<9x8x8xf32, #tpu.memory_space<vmem>>, vector<1x8x8xf32>
    %71 = vector.shape_cast %70 : vector<1x8x8xf32> to vector<8x8xf32>
    %cst_66 = arith.constant dense<0.000000e+00> : vector<128x8xf32>
    %72 = tpu.matmul %69, %71, %cst_66 {dimension_numbers = #tpu.dot_dimension_numbers<[1], [0], [0], [1], [0, 0, 1, 1], [], []>} : vector<128x8xf32>, vector<8x8xf32>, vector<128x8xf32> -> vector<128x8xf32>
    %73 = arith.addf %67, %72 : vector<128x8xf32>
    %c2_67 = arith.constant 2 : index
    %c1_68 = arith.constant 1 : index
    %c0_69 = arith.constant 0 : index
    %74 = vector.load %arg11[%c2_67, %c1_68, %c0_69] : memref<10x18x8xf32, #tpu.memory_space<vmem>>, vector<8x16x8xf32>
    %75 = vector.shape_cast %74 : vector<8x16x8xf32> to vector<128x8xf32>
    %c7 = arith.constant 7 : index
    %c0_70 = arith.constant 0 : index
    %c0_71 = arith.constant 0 : index
    %76 = vector.load %arg7[%c7, %c0_70, %c0_71] : memref<9x8x8xf32, #tpu.memory_space<vmem>>, vector<1x8x8xf32>
    %77 = vector.shape_cast %76 : vector<1x8x8xf32> to vector<8x8xf32>
    %cst_72 = arith.constant dense<0.000000e+00> : vector<128x8xf32>
    %78 = tpu.matmul %75, %77, %cst_72 {dimension_numbers = #tpu.dot_dimension_numbers<[1], [0], [0], [1], [0, 0, 1, 1], [], []>} : vector<128x8xf32>, vector<8x8xf32>, vector<128x8xf32> -> vector<128x8xf32>
    %79 = arith.addf %73, %78 : vector<128x8xf32>
    %c2_73 = arith.constant 2 : index
    %c2_74 = arith.constant 2 : index
    %c0_75 = arith.constant 0 : index
    %80 = vector.load %arg11[%c2_73, %c2_74, %c0_75] : memref<10x18x8xf32, #tpu.memory_space<vmem>>, vector<8x16x8xf32>
    %81 = vector.shape_cast %80 : vector<8x16x8xf32> to vector<128x8xf32>
    %c8 = arith.constant 8 : index
    %c0_76 = arith.constant 0 : index
    %c0_77 = arith.constant 0 : index
    %82 = vector.load %arg7[%c8, %c0_76, %c0_77] : memref<9x8x8xf32, #tpu.memory_space<vmem>>, vector<1x8x8xf32>
    %83 = vector.shape_cast %82 : vector<1x8x8xf32> to vector<8x8xf32>
    %cst_78 = arith.constant dense<0.000000e+00> : vector<128x8xf32>
    %84 = tpu.matmul %81, %83, %cst_78 {dimension_numbers = #tpu.dot_dimension_numbers<[1], [0], [0], [1], [0, 0, 1, 1], [], []>} : vector<128x8xf32>, vector<8x8xf32>, vector<128x8xf32> -> vector<128x8xf32>
    %85 = arith.addf %79, %84 : vector<128x8xf32>
    %86 = vector.shape_cast %85 : vector<128x8xf32> to vector<8x16x8xf32>
    %c0_79 = arith.constant 0 : index
    %c0_80 = arith.constant 0 : index
    %c0_81 = arith.constant 0 : index
    %c0_82 = arith.constant 0 : index
    %87 = vector.load %arg8[%c0_79, %c0_80, %c0_81, %c0_82] : memref<1x8x16x8xf32, #tpu.memory_space<vmem>>, vector<1x8x16x8xf32>
    %88 = vector.shape_cast %87 : vector<1x8x16x8xf32> to vector<8x16x8xf32>
    %89 = vector.shape_cast %86 : vector<8x16x8xf32> to vector<1x8x16x8xf32>
    tpu.vector_store %arg8[%c0_79, %c0_80, %c0_81, %c0_82], %89 {strides = array<i32>} : memref<1x8x16x8xf32, #tpu.memory_space<vmem>>, vector<1x8x16x8xf32>,
    %cst_83 = arith.constant dense<0.000000e+00> : vector<8xf32>
    %90 = vector.multi_reduction <add>, %85, %cst_83 [0] : vector<128x8xf32> to vector<8xf32>
    %91 = vector.shape_cast %90 : vector<8xf32> to vector<1x8xf32>
    %92 = arith.mulf %85, %85 : vector<128x8xf32>
    %cst_84 = arith.constant dense<0.000000e+00> : vector<8xf32>
    %93 = vector.multi_reduction <add>, %92, %cst_84 [0] : vector<128x8xf32> to vector<8xf32>
    %94 = vector.shape_cast %93 : vector<8xf32> to vector<1x8xf32>
    %c0_i32_85 = arith.constant 0 : i32
    %95 = arith.cmpi eq, %arg1, %c0_i32_85 : i32
    %96 = arith.extui %95 : i1 to i32
    %c0_i32_86 = arith.constant 0 : i32
    %97 = arith.cmpi ne, %96, %c0_i32_86 : i32
    scf.if %97 {
      %c0_89 = arith.constant 0 : index
      %c0_90 = arith.constant 0 : index
      %c0_91 = arith.constant 0 : index
      %101 = vector.load %arg9[%c0_89, %c0_90, %c0_91] : memref<1x1x8xf32, #tpu.memory_space<vmem>>, vector<1x1x8xf32>
      %102 = vector.shape_cast %101 : vector<1x1x8xf32> to vector<1x8xf32>
      %103 = vector.shape_cast %91 : vector<1x8xf32> to vector<1x1x8xf32>
      tpu.vector_store %arg9[%c0_89, %c0_90, %c0_91], %103 {strides = array<i32>} : memref<1x1x8xf32, #tpu.memory_space<vmem>>, vector<1x1x8xf32>,
      %c0_92 = arith.constant 0 : index
      %c0_93 = arith.constant 0 : index
      %c0_94 = arith.constant 0 : index
      %104 = vector.load %arg10[%c0_92, %c0_93, %c0_94] : memref<1x1x8xf32, #tpu.memory_space<vmem>>, vector<1x1x8xf32>
      %105 = vector.shape_cast %104 : vector<1x1x8xf32> to vector<1x8xf32>
      %106 = vector.shape_cast %94 : vector<1x8xf32> to vector<1x1x8xf32>
      tpu.vector_store %arg10[%c0_92, %c0_93, %c0_94], %106 {strides = array<i32>} : memref<1x1x8xf32, #tpu.memory_space<vmem>>, vector<1x1x8xf32>,
    } else {
    }
    %c0_i32_87 = arith.constant 0 : i32
    %98 = arith.cmpi sgt, %arg1, %c0_i32_87 : i32
    %99 = arith.extui %98 : i1 to i32
    %c0_i32_88 = arith.constant 0 : i32
    %100 = arith.cmpi ne, %99, %c0_i32_88 : i32
    scf.if %100 {
      %c0_89 = arith.constant 0 : index
      %c0_90 = arith.constant 0 : index
      %c0_91 = arith.constant 0 : index
      %101 = vector.load %arg9[%c0_89, %c0_90, %c0_91] : memref<1x1x8xf32, #tpu.memory_space<vmem>>, vector<1x1x8xf32>
      %102 = vector.shape_cast %101 : vector<1x1x8xf32> to vector<1x8xf32>
      %103 = arith.addf %102, %91 : vector<1x8xf32>
      %c0_92 = arith.constant 0 : index
      %c0_93 = arith.constant 0 : index
      %c0_94 = arith.constant 0 : index
      %104 = vector.load %arg9[%c0_92, %c0_93, %c0_94] : memref<1x1x8xf32, #tpu.memory_space<vmem>>, vector<1x1x8xf32>
      %105 = vector.shape_cast %104 : vector<1x1x8xf32> to vector<1x8xf32>
      %106 = vector.shape_cast %103 : vector<1x8xf32> to vector<1x1x8xf32>
      tpu.vector_store %arg9[%c0_92, %c0_93, %c0_94], %106 {strides = array<i32>} : memref<1x1x8xf32, #tpu.memory_space<vmem>>, vector<1x1x8xf32>,
      %c0_95 = arith.constant 0 : index
      %c0_96 = arith.constant 0 : index
      %c0_97 = arith.constant 0 : index
      %107 = vector.load %arg10[%c0_95, %c0_96, %c0_97] : memref<1x1x8xf32, #tpu.memory_space<vmem>>, vector<1x1x8xf32>
      %108 = vector.shape_cast %107 : vector<1x1x8xf32> to vector<1x8xf32>
      %109 = arith.addf %108, %94 : vector<1x8xf32>
      %c0_98 = arith.constant 0 : index
      %c0_99 = arith.constant 0 : index
      %c0_100 = arith.constant 0 : index
      %110 = vector.load %arg10[%c0_98, %c0_99, %c0_100] : memref<1x1x8xf32, #tpu.memory_space<vmem>>, vector<1x1x8xf32>
      %111 = vector.shape_cast %110 : vector<1x1x8xf32> to vector<1x8xf32>
      %112 = vector.shape_cast %109 : vector<1x8xf32> to vector<1x1x8xf32>
      tpu.vector_store %arg10[%c0_98, %c0_99, %c0_100], %112 {strides = array<i32>} : memref<1x1x8xf32, #tpu.memory_space<vmem>>, vector<1x1x8xf32>,
    } else {
    }
    return
  }
  func.func @transform_0(%arg0: i32, %arg1: i32) -> (i32, i32) {
    %c0_i32 = arith.constant 0 : i32
    %c0_i32_0 = arith.constant 0 : i32
    %c0_i32_1 = arith.constant 0 : i32
    return %c0_i32, %c0_i32_0 : i32, i32
  }
  func.func @transform_1(%arg0: i32, %arg1: i32) -> (i32, i32) {
    %c0_i32 = arith.constant 0 : i32
    %c0_i32_0 = arith.constant 0 : i32
    %c0_i32_1 = arith.constant 0 : i32
    return %c0_i32, %c0_i32_0 : i32, i32
  }
  func.func @transform_2(%arg0: i32, %arg1: i32) -> (i32, i32, i32, i32) {
    %c0_i32 = arith.constant 0 : i32
    %c0_i32_0 = arith.constant 0 : i32
    %c0_i32_1 = arith.constant 0 : i32
    return %arg0, %arg1, %c0_i32, %c0_i32_0 : i32, i32, i32, i32
  }
  func.func @transform_3(%arg0: i32, %arg1: i32) -> (i32, i32, i32, i32) {
    %c8_i32 = arith.constant 8 : i32
    %0 = arith.muli %arg1, %c8_i32 : i32
    %c1_i32 = arith.constant 1 : i32
    %1 = arith.subi %0, %c1_i32 : i32
    %c0_i32 = arith.constant 0 : i32
    %2 = arith.maxsi %1, %c0_i32 : i32
    %c0_i32_0 = arith.constant 0 : i32
    %c0_i32_1 = arith.constant 0 : i32
    %c0_i32_2 = arith.constant 0 : i32
    return %arg0, %2, %c0_i32_0, %c0_i32_1 : i32, i32, i32, i32
  }
  func.func @transform_4(%arg0: i32, %arg1: i32) -> (i32, i32, i32, i32) {
    %c1_i32 = arith.constant 1 : i32
    %0 = arith.addi %arg1, %c1_i32 : i32
    %c8_i32 = arith.constant 8 : i32
    %1 = arith.muli %0, %c8_i32 : i32
    %c15_i32 = arith.constant 15 : i32
    %2 = arith.minsi %1, %c15_i32 : i32
    %c0_i32 = arith.constant 0 : i32
    %c0_i32_0 = arith.constant 0 : i32
    %c0_i32_1 = arith.constant 0 : i32
    return %arg0, %2, %c0_i32, %c0_i32_0 : i32, i32, i32, i32
  }
  func.func @transform_5(%arg0: i32, %arg1: i32) -> (i32, i32, i32) {
    %c0_i32 = arith.constant 0 : i32
    %c0_i32_0 = arith.constant 0 : i32
    %c0_i32_1 = arith.constant 0 : i32
    %c0_i32_2 = arith.constant 0 : i32
    return %c0_i32, %c0_i32_0, %c0_i32_1 : i32, i32, i32
  }
  func.func @transform_6(%arg0: i32, %arg1: i32) -> (i32, i32, i32, i32) {
    %c0_i32 = arith.constant 0 : i32
    %c0_i32_0 = arith.constant 0 : i32
    %c0_i32_1 = arith.constant 0 : i32
    return %arg0, %arg1, %c0_i32, %c0_i32_0 : i32, i32, i32, i32
  }
  func.func @transform_7(%arg0: i32, %arg1: i32) -> (i32, i32, i32) {
    %c0_i32 = arith.constant 0 : i32
    %c0_i32_0 = arith.constant 0 : i32
    %c0_i32_1 = arith.constant 0 : i32
    return %arg0, %c0_i32, %c0_i32_0 : i32, i32, i32
  }
  func.func @transform_8(%arg0: i32, %arg1: i32) -> (i32, i32, i32) {
    %c0_i32 = arith.constant 0 : i32
    %c0_i32_0 = arith.constant 0 : i32
    %c0_i32_1 = arith.constant 0 : i32
    return %arg0, %c0_i32, %c0_i32_0 : i32, i32, i32
  }
}

</mosaic_0001>

<bundles_post_ra>
// kernel: double_conv.5
= control target key start
LH: loop header
LB: loop body
LE: loop exit
PB: predicated region body
PF: predicated region fallthrough
CT: control target
= control target key end

     0   :  { %s526_s12 = smov 0   ;;  %s528_s13 = smov 0   ;;  %s671_s0 = inlined_call_operand.vmem [shape: f32[1,8], index: 0, kind: input, shape index: {}]   ;;  %s672_s1 = inlined_call_operand.vmem [shape: f32[1,8], index: 1, kind: input, shape index: {}]   ;;  %s673_s2 = inlined_call_operand.vmem [shape: f32[2,16,16,8], index: 2, kind: input, shape index: {}]   ;;  %s674_s3 = inlined_call_operand.vmem [shape: f32[2,16,16,8], index: 3, kind: output, shape index: {}]  }
   0x1   :  { %s530_s14 = smov 0   ;;  %s532_s15 = smov 0  }
   0x2   :  { %s534_s16 = smov 0  }
   0x3 LB: > { %s22_s17 = sadd.s32 1, %s496_s14  ;;  %s25_s18 = sadd.s32 1, %s500_s15  ;;  %s504_s16 = sphi %s534_s16, %s13_s16   ;;  %s500_s15 = sphi %s532_s15, %s678_s15   ;;  %s496_s14 = sphi %s530_s14, %s677_s14   ;;  %s492_s13 = sphi %s528_s13, %s676_s13   ;;  %s488_s12 = sphi %s526_s12, %s675_s12  }
   0x4   : > { %p23_p0 = scmp.ge.s32.totalorder %s22_s17, 2  ;;  %p413_p1 = scmp.ge.s32.totalorder %s504_s16, 1 }
   0x5   : > { %p159_p2 = scmp.lt.s32.totalorder %s504_s16, 5 }
   0x6   : > { %s680_s17 = smov (%p23_p0, %s22_s17), 0  ;;  %s682_s18 = smov (!%p23_p0, %s25_s18), %s500_s15 }
   0x7   : > { %p160_p3 = pnand %p413_p1, %p159_p2  ;;  %p27_p4 = scmp.ge.s32.totalorder %s682_s18, 2 }
   0x8   : > { %s414_s19 = sshll.u32 (!%p160_p3), %s488_s12, 3  ;;  %p194_p5 = scmp.lt.s32.totalorder (!%p160_p3), %s492_s13, 1  ;;  %v559_v0 = vld [vmem:[%s671_s0] ss:$0 sm:$0xff] (!%p160_p3)  ;;  %vm293_vm0 = vcmask (!%p160_p3), 64512  }
   0x9   : > { %s684_s18 = smov (%p27_p4, %s682_s18), 0  ;;  %163 = sbr.rel (%p160_p3) target bundleno = 39 (0x27), region = 32 }
   0xa   : > { %p196_p6 = scmp.lt.s32.totalorder (!%p160_p3), %s414_s19, 15  ;;  %v569_v1 = vld [vmem:[%s672_s1] ss:$0 sm:$0xff] (!%p160_p3) }
  0x10   : > { %s686_s13 = smov (!%p194_p5, %s492_s13), 1  ;;  %s688_s19 = smov (!%p196_p6, %s414_s19), 15 }
  0x11   : > { %s416_s20 = sshll.u32 %s686_s13, 5  ;;  %s415_s21 = sshll.u32 %s688_s19, 1 }
  0x12   : > { %s200_s22 = sadd.s32 %s416_s20, %s415_s21 }
  0x13   : > { %s417_s23 = sshll.u32 %s200_s22, 3 }
  0x14   : > { %s564_s28 = scalar_lea.vmem %s673_s2, %s417_s23  ;;  %s592_s6 = scalar_lea.vmem %s674_s3, %s417_s23 }
  0x15   : > { %v215_v2 = vld [vmem:[%s564_s28] sm:$0xff]  ;;  %v216_v3 = vld [vmem:[%s564_s28 + $0x8] sm:$0xff]  ;;  %v217_v4 = vld [vmem:[%s564_s28 + $0x10] sm:$0xff] }
  0x16   : > { %v238_v5 = vmul.f32 %v559_v0, %v215_v2  ;;  %v239_v6 = vmul.f32 %v559_v0, %v216_v3  ;;  %v240_v7 = vmul.f32 %v559_v0, %v217_v4  ;;  %v218_v8 = vld [vmem:[%s564_s28 + $0x18] sm:$0xff]  ;;  %v219_v9 = vld [vmem:[%s564_s28 + $0x20] sm:$0xff]  ;;  %v220_v10 = vld [vmem:[%s564_s28 + $0x28] sm:$0xff] }
  0x17   : > { %v241_v11 = vmul.f32 %v559_v0, %v218_v8  ;;  %v242_v12 = vmul.f32 %v559_v0, %v219_v9  ;;  %v243_v13 = vmul.f32 %v559_v0, %v220_v10  ;;  %v221_v14 = vld [vmem:[%s564_s28 + $0x30] sm:$0xff]  ;;  %v222_v15 = vld [vmem:[%s564_s28 + $0x38] sm:$0xff]  ;;  %v223_v24 = vld [vmem:[%s564_s28 + $0x40] sm:$0xff] }
  0x18   : > { %v261_v16 = vadd.f32 %v569_v1, %v238_v5  ;;  %v262_v17 = vadd.f32 %v569_v1, %v239_v6  ;;  %v263_v18 = vadd.f32 %v569_v1, %v240_v7  ;;  %v244_v19 = vmul.f32 %v559_v0, %v221_v14  ;;  %v224_v25 = vld [vmem:[%s564_s28 + $0x48] sm:$0xff]  ;;  %v225_v26 = vld [vmem:[%s564_s28 + $0x50] sm:$0xff]  ;;  %v226_v31 = vld [vmem:[%s564_s28 + $0x58] sm:$0xff] }
  0x19   : > { %v264_v20 = vadd.f32 %v569_v1, %v241_v11  ;;  %v265_v21 = vadd.f32 %v569_v1, %v242_v12  ;;  %v266_v22 = vadd.f32 %v569_v1, %v243_v13  ;;  %v245_v23 = vmul.f32 %v559_v0, %v222_v15  ;;  %v227_v32 = vld [vmem:[%s564_s28 + $0x60] sm:$0xff]  ;;  %v228_v33 = vld [vmem:[%s564_s28 + $0x68] sm:$0xff]  ;;  %v229_v38 = vld [vmem:[%s564_s28 + $0x70] sm:$0xff] }
  0x1a   : > { %v277_v27 = vmax.f32 %v261_v16, 0.0  ;;  %v278_v28 = vmax.f32 %v262_v17, 0.0  ;;  %v279_v29 = vmax.f32 %v263_v18, 0.0  ;;  %v267_v30 = vadd.f32 %v569_v1, %v244_v19  ;;  %v230_v43 = vld [vmem:[%s564_s28 + $0x78] sm:$0xff] }
  0x1b   : > { %v280_v34 = vmax.f32 %v264_v20, 0.0  ;;  %v281_v35 = vmax.f32 %v265_v21, 0.0  ;;  %v282_v36 = vmax.f32 %v266_v22, 0.0  ;;  %v268_v37 = vadd.f32 %v569_v1, %v245_v23 }
  0x1c   : > { %294 = vst.msk [vmem:[%s592_s6] sm:$0xff] %vm293_vm0, %v277_v27  ;;  %295 = vst.msk [vmem:[%s592_s6 + $0x8] sm:$0xff] %vm293_vm0, %v278_v28  ;;  %v283_v39 = vmax.f32 %v267_v30, 0.0  ;;  %v246_v40 = vmul.f32 %v559_v0, %v223_v24  ;;  %v247_v41 = vmul.f32 %v559_v0, %v224_v25  ;;  %v248_v42 = vmul.f32 %v559_v0, %v225_v26 }
  0x1d   : > { %296 = vst.msk [vmem:[%s592_s6 + $0x10] sm:$0xff] %vm293_vm0, %v279_v29  ;;  %297 = vst.msk [vmem:[%s592_s6 + $0x18] sm:$0xff] %vm293_vm0, %v280_v34  ;;  %v284_v44 = vmax.f32 %v268_v37, 0.0  ;;  %v249_v45 = vmul.f32 %v559_v0, %v226_v31  ;;  %v250_v46 = vmul.f32 %v559_v0, %v227_v32  ;;  %v251_v47 = vmul.f32 %v559_v0, %v228_v33 }
  0x1e   : > { %298 = vst.msk [vmem:[%s592_s6 + $0x20] sm:$0xff] %vm293_vm0, %v281_v35  ;;  %299 = vst.msk [vmem:[%s592_s6 + $0x28] sm:$0xff] %vm293_vm0, %v282_v36  ;;  %v269_v48 = vadd.f32 %v569_v1, %v246_v40  ;;  %v270_v49 = vadd.f32 %v569_v1, %v247_v41  ;;  %v271_v50 = vadd.f32 %v569_v1, %v248_v42 }
  0x1f   : > { %300 = vst.msk [vmem:[%s592_s6 + $0x30] sm:$0xff] %vm293_vm0, %v283_v39  ;;  %v252_v51 = vmul.f32 %v559_v0, %v229_v38  ;;  %301 = vst.msk [vmem:[%s592_s6 + $0x38] sm:$0xff] %vm293_vm0, %v284_v44  ;;  %v272_v52 = vadd.f32 %v569_v1, %v249_v45  ;;  %v273_v53 = vadd.f32 %v569_v1, %v250_v46 }
  0x20   : > { %v274_v54 = vadd.f32 %v569_v1, %v251_v47  ;;  %v253_v55 = vmul.f32 %v559_v0, %v230_v43  ;;  %v285_v56 = vmax.f32 %v269_v48, 0.0  ;;  %v286_v57 = vmax.f32 %v270_v49, 0.0 }
  0x21   : > { %v287_v58 = vmax.f32 %v271_v50, 0.0  ;;  %v275_v59 = vadd.f32 %v569_v1, %v252_v51  ;;  %v288_v60 = vmax.f32 %v272_v52, 0.0  ;;  %v289_v61 = vmax.f32 %v273_v53, 0.0 }
  0x22   : > { %v290_v62 = vmax.f32 %v274_v54, 0.0  ;;  %v276_v63 = vadd.f32 %v569_v1, %v253_v55  ;;  %302 = vst.msk [vmem:[%s592_s6 + $0x40] sm:$0xff] %vm293_vm0, %v285_v56  ;;  %303 = vst.msk [vmem:[%s592_s6 + $0x48] sm:$0xff] %vm293_vm0, %v286_v57 }
  0x23   : > { %304 = vst.msk [vmem:[%s592_s6 + $0x50] sm:$0xff] %vm293_vm0, %v287_v58  ;;  %v291_v2 = vmax.f32 %v275_v59, 0.0  ;;  %305 = vst.msk [vmem:[%s592_s6 + $0x58] sm:$0xff] %vm293_vm0, %v288_v60 }
  0x24   : > { %306 = vst.msk [vmem:[%s592_s6 + $0x60] sm:$0xff] %vm293_vm0, %v289_v61  ;;  %307 = vst.msk [vmem:[%s592_s6 + $0x68] sm:$0xff] %vm293_vm0, %v290_v62  ;;  %v292_v0 = vmax.f32 %v276_v63, 0.0 }
  0x25   : > { %308 = vst.msk [vmem:[%s592_s6 + $0x70] sm:$0xff] %vm293_vm0, %v291_v2 }
  0x26   : > { %309 = vst.msk [vmem:[%s592_s6 + $0x78] sm:$0xff] %vm293_vm0, %v292_v0 }
  0x27 PF: > { %s13_s16 = sadd.s32 1, %s504_s16   ;;  %s675_s12 = smov %s496_s14 }
  0x28   : > { %p10_p7 = scmp.ge.s32.totalorder %s13_s16, 6   ;;  %s676_s13 = smov %s500_s15 }
  0x29   : > { %s677_s14 = smov %s680_s17  ;;  %s678_s15 = smov %s684_s18 }
  0x2a   :  { %12 = sbr.rel (!%p10_p7) target bundleno = 3 (0x3), region = 62 }

// kernel: double_conv.4
= control target key start
LH: loop header
LB: loop body
LE: loop exit
PB: predicated region body
PF: predicated region fallthrough
CT: control target
= control target key end

     0   :  { %s3858_s27 = smov 0   ;;  %s3860_s28 = smov 0   ;;  %s4563_s0 = inlined_call_operand.vmem [shape: f32[1,8], index: 0, kind: input, shape index: {}]   ;;  %s4564_s1 = inlined_call_operand.vmem [shape: f32[1,8], index: 1, kind: input, shape index: {}]   ;;  %s4565_s2 = inlined_call_operand.vmem [shape: f32[2,16,16,8], index: 2, kind: input, shape index: {}, may-alias: {2,3,4}]   ;;  %s4566_s3 = inlined_call_operand.vmem [shape: f32[2,16,16,8], index: 3, kind: input, shape index: {}, may-alias: {2,3,4}]   ;;  %s4567_s4 = inlined_call_operand.vmem [shape: f32[2,16,16,8], index: 4, kind: input, shape index: {}, may-alias: {2,3,4}]   ;;  %s4568_s5 = inlined_call_operand.vmem [shape: f32[9,8,8], index: 5, kind: input, shape index: {}]   ;;  %s4569_s6 = inlined_call_operand.vmem [shape: f32[2,16,16,8], index: 6, kind: output, shape index: {0}]   ;;  %s4570_s7 = inlined_call_operand.vmem [shape: f32[2,1,8], index: 7, kind: output, shape index: {1}]   ;;  %s4571_s8 = inlined_call_operand.vmem [shape: f32[2,1,8], index: 8, kind: output, shape index: {2}]  }
   0x1   :  { %s3862_s29 = smov 0   ;;  %s3864_s30 = smov 0  }
   0x2   :  { %s3866_s9 = smov 0  }
   0x3 LB: > { %s28_s10 = sadd.s32 1, %s3800_s29  ;;  %s31_s11 = sadd.s32 1, %s3804_s30  ;;  %s3808_s9 = sphi %s3866_s9, %s19_s9   ;;  %s3804_s30 = sphi %s3864_s30, %s4576_s30   ;;  %s3800_s29 = sphi %s3862_s29, %s4575_s29   ;;  %s3796_s28 = sphi %s3860_s28, %s4574_s28   ;;  %s3792_s27 = sphi %s3858_s27, %s4573_s27  }
   0x4   : > { %p29_p0 = scmp.ge.s32.totalorder %s28_s10, 2  ;;  %p3010_p1 = scmp.ge.s32.totalorder %s3808_s9, 1 }
   0x5   : > { %p353_p2 = scmp.lt.s32.totalorder %s3808_s9, 5 }
   0x6   : > { %s4578_s10 = smov (%p29_p0, %s28_s10), 0  ;;  %s4580_s11 = smov (!%p29_p0, %s31_s11), %s3804_s30 }
   0x7   : > { %p354_p3 = pnand %p3010_p1, %p353_p2  ;;  %p33_p4 = scmp.ge.s32.totalorder %s4580_s11, 2 }
   0x8   : > { %vm491_vm0 = vcmask (!%p354_p3), 57344   ;;  %s3893_s12 = sshll.u32 (!%p354_p3), %s3792_s27, 3  ;;  %p430_p5 = scmp.lt.s32.totalorder (!%p354_p3), %s3796_s28, 1  ;;  %v3810_v0 = vmov (!%p354_p3), 0.0   ;;  %v3936_v1 = vld [vmem:[%s4563_s0] ss:$0 sm:$0xff] (!%p354_p3) }
   0x9   : > { %s4582_s11 = smov (%p33_p4, %s4580_s11), 0  ;;  %357 = sbr.rel (%p354_p3) target bundleno = 461 (0x1cd), region = 44 }
   0xa   : > { %492 = vst.msk [vmem:[#allocation2] sm:$0x1] (!%p354_p3), %vm491_vm0, %v3810_v0  ;;  %493 = vst.msk [vmem:[#allocation2 + $0x18] sm:$0x1] (!%p354_p3), %vm491_vm0, %v3810_v0  ;;  %p432_p6 = scmp.lt.s32.totalorder (!%p354_p3), %s3893_s12, 15  ;;  %s3016_s13 = sadd.s32 (!%p354_p3), 4294967295, %s3893_s12 }
   0xb   : > { %494 = vst.msk [vmem:[#allocation2 + $0x30] sm:$0x1] (!%p354_p3), %vm491_vm0, %v3810_v0  ;;  %495 = vst.msk [vmem:[#allocation2 + $0x48] sm:$0x1] (!%p354_p3), %vm491_vm0, %v3810_v0  ;;  %p442_p7 = scmp.gt.s32.totalorder (!%p354_p3), %s3016_s13, 0  ;;  %p3017_p8 = scmp.lt.s32.totalorder (!%p354_p3), %s3016_s13, 15 }
   0xc   : > { %496 = vst.msk [vmem:[#allocation2 + $0x60] sm:$0x1] (!%p354_p3), %vm491_vm0, %v3810_v0  ;;  %497 = vst.msk [vmem:[#allocation2 + $0x78] sm:$0x1] (!%p354_p3), %vm491_vm0, %v3810_v0  ;;  %s3209_s18 = sadd.s32 (!%p354_p3), 8, %s3893_s12  ;;  %vm591_vm1 = vcmask (!%p354_p3), 64512  }
   0xd   : > { %498 = vst.msk [vmem:[#allocation2 + $0x90] sm:$0x1] (!%p354_p3), %vm491_vm0, %v3810_v0  ;;  %499 = vst.msk [vmem:[#allocation2 + $0xa8] sm:$0x1] (!%p354_p3), %vm491_vm0, %v3810_v0  ;;  %p3929_p9 = scmp.lt.s32.totalorder (!%p354_p3), %s3209_s18, 15  ;;  %p3038_p10 = scmp.ne.s32.totalorder (!%p354_p3), %s3792_s27, 0 }
   0xe   : > { %500 = vst.msk [vmem:[#allocation2 + $0xc0] sm:$0x1] (!%p354_p3), %vm491_vm0, %v3810_v0  ;;  %501 = vst.msk [vmem:[#allocation2 + $0xd8] sm:$0x1] (!%p354_p3), %vm491_vm0, %v3810_v0  ;;  %v3951_v2 = vld [vmem:[%s4564_s1] ss:$0 sm:$0xff] (!%p354_p3) }
   0xf   : > { %502 = vst.msk [vmem:[#allocation2 + $0x11] sm:$0x1] (!%p354_p3), %vm491_vm0, %v3810_v0  ;;  %503 = vst.msk [vmem:[#allocation2 + $0x29] sm:$0x1] (!%p354_p3), %vm491_vm0, %v3810_v0 }
  0x10   : > { %504 = vst.msk [vmem:[#allocation2 + $0x41] sm:$0x1] %vm491_vm0, %v3810_v0  ;;  %505 = vst.msk [vmem:[#allocation2 + $0x59] sm:$0x1] %vm491_vm0, %v3810_v0  ;;  %s4584_s28 = smov (!%p430_p5, %s3796_s28), 1  ;;  %s4586_s18 = smov (!%p3929_p9, %s3209_s18), 15 }
  0x11   : > { %506 = vst.msk [vmem:[#allocation2 + $0x71] sm:$0x1] %vm491_vm0, %v3810_v0  ;;  %507 = vst.msk [vmem:[#allocation2 + $0x89] sm:$0x1] %vm491_vm0, %v3810_v0  ;;  %s433_s14 = scalar_select %p432_p6, %s3893_s12, 15 }
  0x12   : > { %508 = vst.msk [vmem:[#allocation2 + $0xa1] sm:$0x1] %vm491_vm0, %v3810_v0  ;;  %509 = vst.msk [vmem:[#allocation2 + $0xb9] sm:$0x1] %vm491_vm0, %v3810_v0  ;;  %s3925_s15 = sshll.u32 %s4584_s28, 5  ;;  %s4590_s18 = smov (!%p3929_p9, %s4586_s18), 15 }
  0x13   : > { %510 = vst.msk [vmem:[#allocation2 + $0xd1] sm:$0x1] %vm491_vm0, %v3810_v0  ;;  %511 = vst.msk [vmem:[#allocation2 + $0xe9] sm:$0x1] %vm491_vm0, %v3810_v0  ;;  %s3012_s16 = sshll.u32 %s433_s14, 1  ;;  %s3984_s23 = scalar_lea.vmem %s4570_s7, %s4584_s28 }
  0x14   : > { %s436_s17 = sadd.s32 %s3925_s15, %s3012_s16  ;;  %s3029_s24 = sshll.u32 %s4590_s18, 1 }
  0x15   : > { %s3014_s19 = sshll.u32 %s436_s17, 3  ;;  %s467_s14 = sadd.s32 %s3029_s24, %s3925_s15 }
  0x16   : > { %s3941_s25 = scalar_lea.vmem %s4565_s2, %s3014_s19  ;;  %s3946_s12 = scalar_lea.vmem %s4569_s6, %s3014_s19 }
  0x17   : > { %s443_s21 = scalar_select %p442_p7, %s3016_s13, 0  ;;  %v512_v3 = vld [vmem:[%s3941_s25] sm:$0xff]  ;;  %v513_v4 = vld [vmem:[%s3941_s25 + $0x8] sm:$0xff]  ;;  %v514_v5 = vld [vmem:[%s3941_s25 + $0x10] sm:$0xff] }
  0x18   : > { %v535_v6 = vmul.f32 %v3936_v1, %v512_v3  ;;  %v536_v7 = vmul.f32 %v3936_v1, %v513_v4  ;;  %v537_v8 = vmul.f32 %v3936_v1, %v514_v5  ;;  %v515_v9 = vld [vmem:[%s3941_s25 + $0x18] sm:$0xff]  ;;  %v516_v10 = vld [vmem:[%s3941_s25 + $0x20] sm:$0xff]  ;;  %v517_v11 = vld [vmem:[%s3941_s25 + $0x28] sm:$0xff]  ;;  %s4021_s24 = scalar_lea.vmem %s4571_s8, %s4584_s28 }
  0x19   : > { %s4588_s21 = smov (!%p3017_p8, %s443_s21), 15  ;;  %v538_v12 = vmul.f32 %v3936_v1, %v515_v9  ;;  %v539_v13 = vmul.f32 %v3936_v1, %v516_v10  ;;  %v540_v14 = vmul.f32 %v3936_v1, %v517_v11  ;;  %v518_v15 = vld [vmem:[%s3941_s25 + $0x30] sm:$0xff]  ;;  %v519_v16 = vld [vmem:[%s3941_s25 + $0x38] sm:$0xff]  ;;  %v520_v21 = vld [vmem:[%s3941_s25 + $0x40] sm:$0xff] }
  0x1a   : > { %v558_v17 = vadd.f32 %v3951_v2, %v535_v6  ;;  %v559_v18 = vadd.f32 %v3951_v2, %v536_v7  ;;  %v560_v19 = vadd.f32 %v3951_v2, %v537_v8  ;;  %v541_v20 = vmul.f32 %v3936_v1, %v518_v15  ;;  %s3022_s13 = sshll.u32 %s4588_s21, 1  ;;  %v521_v26 = vld [vmem:[%s3941_s25 + $0x48] sm:$0xff]  ;;  %v522_v27 = vld [vmem:[%s3941_s25 + $0x50] sm:$0xff]  ;;  %v523_v28 = vld [vmem:[%s3941_s25 + $0x58] sm:$0xff]  ;;  %s3031_s21 = sshll.u32 %s467_s14, 3 }
  0x1b   : > { %v561_v22 = vadd.f32 %v3951_v2, %v538_v12  ;;  %v562_v23 = vadd.f32 %v3951_v2, %v539_v13  ;;  %v563_v24 = vadd.f32 %v3951_v2, %v540_v14  ;;  %v542_v25 = vmul.f32 %v3936_v1, %v519_v16  ;;  %s450_s20 = sadd.s32 %s3022_s13, %s3925_s15  ;;  %v524_v33 = vld [vmem:[%s3941_s25 + $0x60] sm:$0xff]  ;;  %v525_v34 = vld [vmem:[%s3941_s25 + $0x68] sm:$0xff]  ;;  %v526_v39 = vld [vmem:[%s3941_s25 + $0x70] sm:$0xff]  ;;  %s4015_s19 = scalar_lea.vmem %s4567_s4, %s3031_s21 }
  0x1c   : > { %v574_v29 = vmax.f32 %v558_v17, 0.0  ;;  %v575_v30 = vmax.f32 %v559_v18, 0.0  ;;  %v576_v31 = vmax.f32 %v560_v19, 0.0  ;;  %v564_v32 = vadd.f32 %v3951_v2, %v541_v20  ;;  %s3024_s26 = sshll.u32 %s450_s20, 3  ;;  %v527_v44 = vld [vmem:[%s3941_s25 + $0x78] sm:$0xff] }
  0x1d   : > { %v577_v35 = vmax.f32 %v561_v22, 0.0  ;;  %v578_v36 = vmax.f32 %v562_v23, 0.0  ;;  %v579_v37 = vmax.f32 %v563_v24, 0.0  ;;  %v565_v38 = vadd.f32 %v3951_v2, %v542_v25  ;;  %s4003_s18 = scalar_lea.vmem %s4566_s3, %s3024_s26 }
  0x1e   : > { %592 = vst.msk [vmem:[#allocation2 + $0x19] sm:$0xff] %vm591_vm1, %v574_v29  ;;  %593 = vst.msk [vmem:[#allocation2 + $0x21] sm:$0xff] %vm591_vm1, %v575_v30  ;;  %v580_v40 = vmax.f32 %v564_v32, 0.0  ;;  %v543_v41 = vmul.f32 %v3936_v1, %v520_v21  ;;  %v544_v42 = vmul.f32 %v3936_v1, %v521_v26  ;;  %v545_v43 = vmul.f32 %v3936_v1, %v522_v27 }
  0x1f   : > { %594 = vst.msk [vmem:[#allocation2 + $0x31] sm:$0xff] %vm591_vm1, %v576_v31  ;;  %595 = vst.msk [vmem:[#allocation2 + $0x39] sm:$0xff] %vm591_vm1, %v577_v35  ;;  %v581_v45 = vmax.f32 %v565_v38, 0.0  ;;  %v546_v46 = vmul.f32 %v3936_v1, %v523_v28  ;;  %v547_v47 = vmul.f32 %v3936_v1, %v524_v33  ;;  %v548_v48 = vmul.f32 %v3936_v1, %v525_v34 }
  0x20   : > { %596 = vst.msk [vmem:[#allocation2 + $0x49] sm:$0xff] %vm591_vm1, %v578_v36  ;;  %597 = vst.msk [vmem:[#allocation2 + $0x51] sm:$0xff] %vm591_vm1, %v579_v37  ;;  %v566_v49 = vadd.f32 %v3951_v2, %v543_v41  ;;  %v567_v50 = vadd.f32 %v3951_v2, %v544_v42  ;;  %v568_v51 = vadd.f32 %v3951_v2, %v545_v43 }
  0x21   : > { %598 = vst.msk [vmem:[#allocation2 + $0x61] sm:$0xff] %vm591_vm1, %v580_v40  ;;  %v549_v52 = vmul.f32 %v3936_v1, %v526_v39  ;;  %599 = vst.msk [vmem:[#allocation2 + $0x69] sm:$0xff] %vm591_vm1, %v581_v45  ;;  %v569_v53 = vadd.f32 %v3951_v2, %v546_v46  ;;  %v570_v54 = vadd.f32 %v3951_v2, %v547_v47 }
  0x22   : > { %v571_v55 = vadd.f32 %v3951_v2, %v548_v48  ;;  %v550_v56 = vmul.f32 %v3936_v1, %v527_v44  ;;  %v582_v57 = vmax.f32 %v566_v49, 0.0  ;;  %v583_v58 = vmax.f32 %v567_v50, 0.0  ;;  %611 = sbr.rel (%p3038_p10) target bundleno = 41 (0x29), region = 48 }
  0x23   : > { %v584_v59 = vmax.f32 %v568_v51, 0.0  ;;  %v572_v60 = vadd.f32 %v3951_v2, %v549_v52  ;;  %v585_v61 = vmax.f32 %v569_v53, 0.0  ;;  %v586_v62 = vmax.f32 %v570_v54, 0.0 }
  0x24   : > { %v587_v63 = vmax.f32 %v571_v55, 0.0  ;;  %v573_v0 = vadd.f32 %v3951_v2, %v550_v56  ;;  %600 = vst.msk [vmem:[#allocation2 + $0x79] sm:$0xff] %vm591_vm1, %v582_v57  ;;  %601 = vst.msk [vmem:[#allocation2 + $0x81] sm:$0xff] %vm591_vm1, %v583_v58  ;;  %v3811_v2 = vmov (!%p3038_p10), 0.0  }
  0x25   : > { %602 = vst.msk [vmem:[#allocation2 + $0x91] sm:$0xff] %vm591_vm1, %v584_v59  ;;  %v588_v3 = vmax.f32 %v572_v60, 0.0  ;;  %603 = vst.msk [vmem:[#allocation2 + $0x99] sm:$0xff] %vm591_vm1, %v585_v61 }
  0x26   : > { %604 = vst.msk [vmem:[#allocation2 + $0xa9] sm:$0xff] %vm591_vm1, %v586_v62  ;;  %605 = vst.msk [vmem:[#allocation2 + $0xb1] sm:$0xff] %vm591_vm1, %v587_v63  ;;  %v589_v1 = vmax.f32 %v573_v0, 0.0 }
  0x27   : > { %606 = vst.msk [vmem:[#allocation2 + $0xc1] sm:$0xff] %vm591_vm1, %v588_v3  ;;  %612 = vst.msk [vmem:[#allocation2 + $0x1] sm:$0xff] (!%p3038_p10), %vm591_vm1, %v3811_v2 }
  0x28   : > { %607 = vst.msk [vmem:[#allocation2 + $0xc9] sm:$0xff] %vm591_vm1, %v589_v1  ;;  %613 = vst.msk [vmem:[#allocation2 + $0x9] sm:$0xff] (!%p3038_p10), %vm591_vm1, %v3811_v2 }
  0x29 PF: > { %p3039_p11 = scmp.le.s32.totalorder %s3792_s27, 0 }
  0x2a   : > { %v618_v4 = vld [vmem:[%s4003_s18] sm:$0xff] (!%p3039_p11)  ;;  %v619_v8 = vld [vmem:[%s4003_s18 + $0x8] sm:$0xff] (!%p3039_p11) }
  0x2b   : > { %617 = sbr.rel (%p3039_p11) target bundleno = 51 (0x33), region = 52  ;;  %v3040_v5 = vld [vmem:[%s4563_s0] ss:$0 sm:$0xff] (!%p3039_p11) }
  0x2c   : > { %v3041_v6 = vld [vmem:[%s4564_s1] ss:$0 sm:$0xff] (!%p3039_p11)  ;;  %v627_v7 = vmul.f32 (!%p3039_p11), %v3040_v5, %v618_v4  ;;  %v628_v9 = vmul.f32 (!%p3039_p11), %v3040_v5, %v619_v8 }
  0x2e   : > { %v636_v10 = vadd.f32 (!%p3039_p11), %v3041_v6, %v627_v7  ;;  %v637_v11 = vadd.f32 (!%p3039_p11), %v3041_v6, %v628_v9 }
  0x30   : > { %v638_v12 = vmax.f32 (!%p3039_p11), %v636_v10, 0.0  ;;  %v639_v13 = vmax.f32 (!%p3039_p11), %v637_v11, 0.0 }
  0x32   : > { %640 = vst.msk [vmem:[#allocation2 + $0x1] sm:$0xff] %vm591_vm1, %v638_v12  ;;  %641 = vst.msk [vmem:[#allocation2 + $0x9] sm:$0xff] %vm591_vm1, %v639_v13 }
  0x33 PF: > { %p3042_p12 = scmp.ne.s32.totalorder %s3792_s27, 1 }
  0x34   : > { %v3812_v14 = vmov (!%p3042_p12), 0.0  }
  0x35   : > { %645 = sbr.rel (%p3042_p12) target bundleno = 60 (0x3c), region = 56  ;;  %647 = vst.msk [vmem:[#allocation2 + $0xd9] sm:$0xff] (!%p3042_p12), %vm591_vm1, %v3812_v14  ;;  %648 = vst.msk [vmem:[#allocation2 + $0xe1] sm:$0xff] (!%p3042_p12), %vm591_vm1, %v3812_v14 }
  0x3c PF: > { %p3043_p13 = scmp.ge.s32.totalorder %s3792_s27, 1 }
  0x3d   : > { %v653_v15 = vld [vmem:[%s4015_s19] sm:$0xff] (!%p3043_p13)  ;;  %v654_v19 = vld [vmem:[%s4015_s19 + $0x8] sm:$0xff] (!%p3043_p13) }
  0x3e   : > { %652 = sbr.rel (%p3043_p13) target bundleno = 70 (0x46), region = 60  ;;  %v3044_v16 = vld [vmem:[%s4563_s0] ss:$0 sm:$0xff] (!%p3043_p13) }
  0x3f   : > { %v3045_v17 = vld [vmem:[%s4564_s1] ss:$0 sm:$0xff] (!%p3043_p13)  ;;  %v662_v18 = vmul.f32 (!%p3043_p13), %v3044_v16, %v653_v15  ;;  %v663_v20 = vmul.f32 (!%p3043_p13), %v3044_v16, %v654_v19 }
  0x41   : > { %v671_v21 = vadd.f32 (!%p3043_p13), %v3045_v17, %v662_v18  ;;  %v672_v22 = vadd.f32 (!%p3043_p13), %v3045_v17, %v663_v20 }
  0x43   : > { %v673_v23 = vmax.f32 (!%p3043_p13), %v671_v21, 0.0  ;;  %v674_v24 = vmax.f32 (!%p3043_p13), %v672_v22, 0.0 }
  0x45   : > { %676 = vst.msk [vmem:[#allocation2 + $0xd9] sm:$0xff] %vm591_vm1, %v673_v23  ;;  %677 = vst.msk [vmem:[#allocation2 + $0xe1] sm:$0xff] %vm591_vm1, %v674_v24 }
  0x46 PF: > { %v3046_v25 = vld [vmem:[%s4568_s5 + $0x8] sm:$0xff]  ;;  %v4087_v26 = vld [vmem:[%s4568_s5 + $0x20] sm:$0xff]  ;;  %v4100_v33 = vld [vmem:[#allocation2 + $0x31] sm:$0xff] }
  0x47   : > { %v695_v27 = vld [vmem:[#allocation2 + $0x1] sm:$0xff]  ;;  %3363 = vmatprep.subr.mxu1 %v3046_v25  ;;  %3467 = vmatprep.subr.mxu0 %v4087_v26  ;;  %v1553_v28 = vld [vmem:[#allocation2 + $0x19] sm:$0xff]  ;;  %v696_v29 = vld [vmem:[#allocation2 + $0x9] sm:$0xff] }
  0x48   : > { %v694_v30 = vld [vmem:[%s4568_s5] sm:$0xff]  ;;  %3364 = vmatpush3.msra.mxu1 %v3046_v25  ;;  %3365 = vmatprep.mubr.msk.f32.mxu1 %vm591_vm1, %v695_v27  ;;  %v3130_v32 = vld [vmem:[%s4568_s5 + $0x28] sm:$0xff]  ;;  %v3147_v34 = vld [vmem:[%s4568_s5 + $0x30] sm:$0xff] }
  0x49   : > { %v1554_v31 = vld [vmem:[#allocation2 + $0x21] sm:$0xff]  ;;  %3468 = vmatpush3.msra.mxu0 %v4087_v26  ;;  %3469 = vmatprep.mubr.msk.f32.mxu0 %vm591_vm1, %v1553_v28  ;;  %v4106_v35 = vld [vmem:[#allocation2 + $0x39] sm:$0xff]  ;;  %v4111_v36 = vld [vmem:[#allocation2 + $0x49] sm:$0xff] }
  0x4a   : > { %3366 = vmatmul.mubr.msk.f32.vlgmr.msra.gmra.mrb[0].mxu1 %vm591_vm1, %v696_v29  ;;  %3389 = vmatprep.subr.mxu1 %v694_v30  ;;  %v4120_v37 = vld [vmem:[#allocation2 + $0x51] sm:$0xff]  ;;  %v4125_v39 = vld [vmem:[#allocation2 + $0x61] sm:$0xff]  ;;  %v4135_v40 = vld [vmem:[#allocation2 + $0x69] sm:$0xff] }
  0x4b   : > { %3470 = vmatmul.mubr.msk.f32.vlgmr.msra.gmra.mrb[0].mxu0 %vm591_vm1, %v1554_v31  ;;  %3493 = vmatprep.subr.mxu0 %v3130_v32  ;;  %v3079_v38 = vld [vmem:[%s4568_s5 + $0x10] sm:$0xff]  ;;  %v4137_v41 = vld [vmem:[#allocation2 + $0x1a] sm:$0xff]  ;;  %v4147_v42 = vld [vmem:[#allocation2 + $0x22] sm:$0xff] }
  0x4c   : > { %3390 = vmatpush3.msra.mxu1 %v694_v30  ;;  %3494 = vmatpush3.msra.mxu0 %v3130_v32  ;;  %v4149_v43 = vld [vmem:[#allocation2 + $0x79] sm:$0xff]  ;;  %v4164_v46 = vld [vmem:[#allocation2 + $0x81] sm:$0xff]  ;;  %v4170_v48 = vld [vmem:[#allocation2 + $0x91] sm:$0xff] }
  0x4d   : > { %3368 = vmatprep.mubr.msk.f32.mxu1 %vm591_vm1, %v1553_v28  ;;  %3472 = vmatprep.mubr.msk.f32.mxu0 %vm591_vm1, %v4100_v33  ;;  %v4151_v44 = vld [vmem:[#allocation2 + $0x32] sm:$0xff]  ;;  %v4168_v47 = vld [vmem:[#allocation2 + $0x3a] sm:$0xff]  ;;  %v4172_v49 = vld [vmem:[#allocation2 + $0x4a] sm:$0xff] }
  0x4e   : > { %3369 = vmatmul.mubr.msk.f32.gmra.mrb[2].mxu1 %vm591_vm1, %v1554_v31  ;;  %3519 = vmatprep.subr.mxu0 %v3147_v34  ;;  %v4158_v45 = vld [vmem:[%s4568_s5 + $0x38] sm:$0xff]  ;;  %v4187_v52 = vld [vmem:[#allocation2 + $0xa9] sm:$0xff]  ;;  %v678_v56 = vld [vmem:[#allocation2] sm:$0xff] }
  0x4f   : > { %3473 = vmatmul.mubr.msk.f32.gmra.mrb[2].mxu0 %vm591_vm1, %v4106_v35  ;;  %3371 = vmatprep.mubr.msk.f32.mxu1 %vm591_vm1, %v4100_v33  ;;  %v4181_v50 = vld [vmem:[#allocation2 + $0x99] sm:$0xff]  ;;  %v4189_v53 = vld [vmem:[#allocation2 + $0x62] sm:$0xff]  ;;  %v4197_v54 = vld [vmem:[#allocation2 + $0xb1] sm:$0xff] }
  0x50   : > { %3475 = vmatprep.mubr.msk.f32.mxu0 %vm591_vm1, %v4111_v36  ;;  %3415 = vmatprep.subr.mxu1 %v3079_v38  ;;  %v4185_v51 = vld [vmem:[#allocation2 + $0x52] sm:$0xff]  ;;  %v4201_v55 = vld [vmem:[#allocation2 + $0x6a] sm:$0xff]  ;;  %v4203_v57 = vld [vmem:[#allocation2 + $0x7a] sm:$0xff] }
  0x51   : > { %v679_v58 = vld [vmem:[#allocation2 + $0x8] sm:$0xff]  ;;  %v4214_v60 = vld [vmem:[#allocation2 + $0x18] sm:$0xff]  ;;  %v4224_v63 = vld [vmem:[#allocation2 + $0x20] sm:$0xff] }
  0x52   : > { %3372 = vmatmul.mubr.msk.f32.gmra.mrb[4].mxu1 %vm591_vm1, %v4106_v35  ;;  %v4212_v59 = vld [vmem:[#allocation2 + $0x82] sm:$0xff]  ;;  %v4216_v61 = vld [vmem:[#allocation2 + $0x92] sm:$0xff]  ;;  %v4230_v0 = vld [vmem:[#allocation2 + $0x9a] sm:$0xff] }
  0x53   : > { %3476 = vmatmul.mubr.msk.f32.gmra.mrb[4].mxu0 %vm591_vm1, %v4120_v37  ;;  %3374 = vmatprep.mubr.msk.f32.mxu1 %vm591_vm1, %v4111_v36  ;;  %v3096_v62 = vld [vmem:[%s4568_s5 + $0x18] sm:$0xff]  ;;  %v4232_v3 = vld [vmem:[#allocation2 + $0x30] sm:$0xff]  ;;  %v4248_v5 = vld [vmem:[#allocation2 + $0x48] sm:$0xff] }
  0x54   : > { %3478 = vmatprep.mubr.msk.f32.mxu0 %vm591_vm1, %v4125_v39  ;;  %v4234_v1 = vld [vmem:[#allocation2 + $0xaa] sm:$0xff]  ;;  %v4242_v2 = vld [vmem:[#allocation2 + $0x38] sm:$0xff]  ;;  %v4250_v6 = vld [vmem:[#allocation2 + $0xc2] sm:$0xff] }
  0x55   : > { %v4246_v4 = vld [vmem:[#allocation2 + $0xb2] sm:$0xff]  ;;  %v4262_v8 = vld [vmem:[#allocation2 + $0xca] sm:$0xff]  ;;  %v4264_v9 = vld [vmem:[#allocation2 + $0x60] sm:$0xff] }
  0x56   : > { %3375 = vmatmul.mubr.msk.f32.gmra.mrb[6].mxu1 %vm591_vm1, %v4120_v37  ;;  %v4258_v7 = vld [vmem:[#allocation2 + $0x50] sm:$0xff]  ;;  %v4272_v10 = vld [vmem:[#allocation2 + $0x68] sm:$0xff]  ;;  %v4276_v11 = vld [vmem:[#allocation2 + $0x78] sm:$0xff] }
  0x57   : > { %3479 = vmatmul.mubr.msk.f32.gmra.mrb[6].mxu0 %vm591_vm1, %v4135_v40  ;;  %3377 = vmatprep.mubr.msk.f32.mxu1 %vm591_vm1, %v4125_v39  ;;  %v3181_v12 = vld [vmem:[%s4568_s5 + $0x40] sm:$0xff]  ;;  %v4292_v14 = vld [vmem:[#allocation2 + $0x90] sm:$0xff]  ;;  %v4300_v15 = vld [vmem:[#allocation2 + $0x98] sm:$0xff] }
  0x58   : > { %3495 = vmatprep.mubr.msk.f32.mxu0 %vm591_vm1, %v4137_v41  ;;  %v4287_v13 = vld [vmem:[#allocation2 + $0x80] sm:$0xff]  ;;  %v4304_v16 = vld [vmem:[#allocation2 + $0xa8] sm:$0xff]  ;;  %v4312_v17 = vld [vmem:[#allocation2 + $0xb0] sm:$0xff] }
  0x59   : > { %v1099_v18 = vld [vmem:[#allocation2 + $0x2] sm:$0xff]  ;;  %v1100_v19 = vld [vmem:[#allocation2 + $0xa] sm:$0xff]  ;;  %v2022_v22 = vld [vmem:[#allocation2 + $0xd8] sm:$0xff] }
  0x5a   : > { %3378 = vmatmul.mubr.msk.f32.gmra.mrb[8].mxu1 %vm591_vm1, %v4135_v40  ;;  %v4330_v20 = vld [vmem:[#allocation2 + $0xc0] sm:$0xff]  ;;  %v2021_v21 = vld [vmem:[#allocation2 + $0xc8] sm:$0xff] }
  0x5b   : > { %3496 = vmatmul.mubr.msk.f32.vlgmr.msra.gmra.mrb[0].mxu0 %vm591_vm1, %v4147_v42  ;;  %3380 = vmatprep.mubr.msk.f32.mxu1 %vm591_vm1, %v4149_v43  ;;  %v2023_v23 = vld [vmem:[#allocation2 + $0xe0] sm:$0xff]  ;;  %v2248_v25 = vld [vmem:[#allocation2 + $0xc9] sm:$0xff] }
  0x5c   : > { %3520 = vmatpush3.msra.mxu0 %v3147_v34  ;;  %3498 = vmatprep.mubr.msk.f32.mxu0 %vm591_vm1, %v4151_v44  ;;  %v2247_v24 = vld [vmem:[#allocation2 + $0xc1] sm:$0xff] }
  0x5d   : > { %3545 = vmatprep.subr.mxu0 %v4158_v45  ;;  %v2250_v27 = vld [vmem:[#allocation2 + $0xe1] sm:$0xff] }
  0x5e   : > { %3381 = vmatmul.mubr.msk.f32.gmra.mrb[10].mxu1 %vm591_vm1, %v4164_v46  ;;  %v2476_v28 = vld [vmem:[#allocation2 + $0xda] sm:$0xff]  ;;  %v2477_v29 = vld [vmem:[#allocation2 + $0xe2] sm:$0xff] }
  0x5f   : > { %3499 = vmatmul.mubr.msk.f32.gmra.mrb[2].mxu0 %vm591_vm1, %v4168_v47  ;;  %3383 = vmatprep.mubr.msk.f32.mxu1 %vm591_vm1, %v4170_v48 }
  0x60   : > { %3501 = vmatprep.mubr.msk.f32.mxu0 %vm591_vm1, %v4172_v49 }
  0x62   : > { %3384 = vmatmul.mubr.msk.f32.gmra.mrb[12].mxu1 %vm591_vm1, %v4181_v50 }
  0x63   : > { %3502 = vmatmul.mubr.msk.f32.gmra.mrb[4].mxu0 %vm591_vm1, %v4185_v51  ;;  %3386 = vmatprep.mubr.msk.f32.mxu1 %vm591_vm1, %v4187_v52 }
  0x64   : > { %3504 = vmatprep.mubr.msk.f32.mxu0 %vm591_vm1, %v4189_v53 }
  0x66   : > { %3387 = vmatmul.mubr.msk.f32.gmra.mrb[14].mxu1 %vm591_vm1, %v4197_v54 }
  0x67   : > { %3505 = vmatmul.mubr.msk.f32.gmra.mrb[6].mxu0 %vm591_vm1, %v4201_v55  ;;  %3391 = vmatprep.mubr.msk.f32.mxu1 %vm591_vm1, %v678_v56 }
  0x68   : > { %3507 = vmatprep.mubr.msk.f32.mxu0 %vm591_vm1, %v4203_v57 }
  0x6a   : > { %3392 = vmatmul.mubr.msk.f32.vlgmr.msra.gmra.mrb[0].mxu1 %vm591_vm1, %v679_v58 }
  0x6b   : > { %3508 = vmatmul.mubr.msk.f32.gmra.mrb[8].mxu0 %vm591_vm1, %v4212_v59  ;;  %3416 = vmatpush3.msra.mxu1 %v3079_v38 }
  0x6c   : > { %3394 = vmatprep.mubr.msk.f32.mxu1 %vm591_vm1, %v4214_v60  ;;  %3510 = vmatprep.mubr.msk.f32.mxu0 %vm591_vm1, %v4216_v61 }
  0x6d   : > { %3441 = vmatprep.subr.mxu1 %v3096_v62 }
  0x6e   : > { %3395 = vmatmul.mubr.msk.f32.gmra.mrb[2].mxu1 %vm591_vm1, %v4224_v63 }
  0x6f   : > { %3511 = vmatmul.mubr.msk.f32.gmra.mrb[10].mxu0 %vm591_vm1, %v4230_v0  ;;  %3397 = vmatprep.mubr.msk.f32.mxu1 %vm591_vm1, %v4232_v3 }
  0x70   : > { %3513 = vmatprep.mubr.msk.f32.mxu0 %vm591_vm1, %v4234_v1 }
  0x72   : > { %3398 = vmatmul.mubr.msk.f32.gmra.mrb[4].mxu1 %vm591_vm1, %v4242_v2 }
  0x73   : > { %3514 = vmatmul.mubr.msk.f32.gmra.mrb[12].mxu0 %vm591_vm1, %v4246_v4  ;;  %3400 = vmatprep.mubr.msk.f32.mxu1 %vm591_vm1, %v4248_v5 }
  0x74   : > { %3516 = vmatprep.mubr.msk.f32.mxu0 %vm591_vm1, %v4250_v6 }
  0x76   : > { %3401 = vmatmul.mubr.msk.f32.gmra.mrb[6].mxu1 %vm591_vm1, %v4258_v7 }
  0x77   : > { %3517 = vmatmul.mubr.msk.f32.gmra.mrb[14].mxu0 %vm591_vm1, %v4262_v8  ;;  %3403 = vmatprep.mubr.msk.f32.mxu1 %vm591_vm1, %v4264_v9 }
  0x78   : > { %3521 = vmatprep.mubr.msk.f32.mxu0 %vm591_vm1, %v4232_v3 }
  0x7a   : > { %3404 = vmatmul.mubr.msk.f32.gmra.mrb[8].mxu1 %vm591_vm1, %v4272_v10 }
  0x7b   : > { %3522 = vmatmul.mubr.msk.f32.vlgmr.msra.gmra.mrb[0].mxu0 %vm591_vm1, %v4242_v2  ;;  %3406 = vmatprep.mubr.msk.f32.mxu1 %vm591_vm1, %v4276_v11 }
  0x7c   : > { %3546 = vmatpush3.msra.mxu0 %v4158_v45  ;;  %3524 = vmatprep.mubr.msk.f32.mxu0 %vm591_vm1, %v4248_v5 }
  0x7d   : > { %3571 = vmatprep.subr.mxu0 %v3181_v12 }
  0x7e   : > { %3407 = vmatmul.mubr.msk.f32.gmra.mrb[10].mxu1 %vm591_vm1, %v4287_v13 }
  0x7f   : > { %3525 = vmatmul.mubr.msk.f32.gmra.mrb[2].mxu0 %vm591_vm1, %v4258_v7  ;;  %3409 = vmatprep.mubr.msk.f32.mxu1 %vm591_vm1, %v4292_v14 }
  0x80   : > { %3527 = vmatprep.mubr.msk.f32.mxu0 %vm591_vm1, %v4264_v9 }
  0x82   : > { %3410 = vmatmul.mubr.msk.f32.gmra.mrb[12].mxu1 %vm591_vm1, %v4300_v15 }
  0x83   : > { %3528 = vmatmul.mubr.msk.f32.gmra.mrb[4].mxu0 %vm591_vm1, %v4272_v10  ;;  %3412 = vmatprep.mubr.msk.f32.mxu1 %vm591_vm1, %v4304_v16 }
  0x84   : > { %3530 = vmatprep.mubr.msk.f32.mxu0 %vm591_vm1, %v4276_v11 }
  0x86   : > { %3413 = vmatmul.mubr.msk.f32.gmra.mrb[14].mxu1 %vm591_vm1, %v4312_v17 }
  0x87   : > { %3531 = vmatmul.mubr.msk.f32.gmra.mrb[6].mxu0 %vm591_vm1, %v4287_v13  ;;  %3417 = vmatprep.mubr.msk.f32.mxu1 %vm591_vm1, %v1099_v18 }
  0x88   : > { %3533 = vmatprep.mubr.msk.f32.mxu0 %vm591_vm1, %v4292_v14 }
  0x8a   : > { %3418 = vmatmul.mubr.msk.f32.vlgmr.msra.gmra.mrb[0].mxu1 %vm591_vm1, %v1100_v19 }
  0x8b   : > { %3534 = vmatmul.mubr.msk.f32.gmra.mrb[8].mxu0 %vm591_vm1, %v4300_v15  ;;  %3442 = vmatpush3.msra.mxu1 %v3096_v62 }
  0x8c   : > { %3420 = vmatprep.mubr.msk.f32.mxu1 %vm591_vm1, %v4137_v41  ;;  %3536 = vmatprep.mubr.msk.f32.mxu0 %vm591_vm1, %v4304_v16 }
  0x8d   : > { %3597 = vmatprep.subr.mxu1 %v4087_v26 }
  0x8e   : > { %3421 = vmatmul.mubr.msk.f32.gmra.mrb[2].mxu1 %vm591_vm1, %v4147_v42 }
  0x8f   : > { %3537 = vmatmul.mubr.msk.f32.gmra.mrb[10].mxu0 %vm591_vm1, %v4312_v17  ;;  %3423 = vmatprep.mubr.msk.f32.mxu1 %vm591_vm1, %v4151_v44 }
  0x90   : > { %3539 = vmatprep.mubr.msk.f32.mxu0 %vm591_vm1, %v4330_v20 }
  0x92   : > { %3424 = vmatmul.mubr.msk.f32.gmra.mrb[4].mxu1 %vm591_vm1, %v4168_v47 }
  0x93   : > { %3540 = vmatmul.mubr.msk.f32.gmra.mrb[12].mxu0 %vm591_vm1, %v2021_v21  ;;  %3426 = vmatprep.mubr.msk.f32.mxu1 %vm591_vm1, %v4172_v49 }
  0x94   : > { %3542 = vmatprep.mubr.msk.f32.mxu0 %vm591_vm1, %v2022_v22 }
  0x96   : > { %3427 = vmatmul.mubr.msk.f32.gmra.mrb[6].mxu1 %vm591_vm1, %v4185_v51 }
  0x97   : > { %3543 = vmatmul.mubr.msk.f32.gmra.mrb[14].mxu0 %vm591_vm1, %v2023_v23  ;;  %3429 = vmatprep.mubr.msk.f32.mxu1 %vm591_vm1, %v4189_v53 }
  0x98   : > { %3547 = vmatprep.mubr.msk.f32.mxu0 %vm591_vm1, %v4100_v33 }
  0x9a   : > { %3430 = vmatmul.mubr.msk.f32.gmra.mrb[8].mxu1 %vm591_vm1, %v4201_v55 }
  0x9b   : > { %3548 = vmatmul.mubr.msk.f32.vlgmr.msra.gmra.mrb[0].mxu0 %vm591_vm1, %v4106_v35  ;;  %3432 = vmatprep.mubr.msk.f32.mxu1 %vm591_vm1, %v4203_v57 }
  0x9c   : > { %3572 = vmatpush3.msra.mxu0 %v3181_v12  ;;  %3550 = vmatprep.mubr.msk.f32.mxu0 %vm591_vm1, %v4111_v36 }
  0x9e   : > { %3433 = vmatmul.mubr.msk.f32.gmra.mrb[10].mxu1 %vm591_vm1, %v4212_v59 }
  0x9f   : > { %3551 = vmatmul.mubr.msk.f32.gmra.mrb[2].mxu0 %vm591_vm1, %v4120_v37  ;;  %3435 = vmatprep.mubr.msk.f32.mxu1 %vm591_vm1, %v4216_v61 }
  0xa0   : > { %3553 = vmatprep.mubr.msk.f32.mxu0 %vm591_vm1, %v4125_v39 }
  0xa2   : > { %3436 = vmatmul.mubr.msk.f32.gmra.mrb[12].mxu1 %vm591_vm1, %v4230_v0 }
  0xa3   : > { %3554 = vmatmul.mubr.msk.f32.gmra.mrb[4].mxu0 %vm591_vm1, %v4135_v40  ;;  %3438 = vmatprep.mubr.msk.f32.mxu1 %vm591_vm1, %v4234_v1 }
  0xa4   : > { %3556 = vmatprep.mubr.msk.f32.mxu0 %vm591_vm1, %v4149_v43 }
  0xa6   : > { %3439 = vmatmul.mubr.msk.f32.gmra.mrb[14].mxu1 %vm591_vm1, %v4246_v4 }
  0xa7   : > { %3557 = vmatmul.mubr.msk.f32.gmra.mrb[6].mxu0 %vm591_vm1, %v4164_v46  ;;  %3443 = vmatprep.mubr.msk.f32.mxu1 %vm591_vm1, %v4214_v60 }
  0xa8   : > { %3559 = vmatprep.mubr.msk.f32.mxu0 %vm591_vm1, %v4170_v48 }
  0xaa   : > { %3444 = vmatmul.mubr.msk.f32.vlgmr.msra.gmra.mrb[0].mxu1 %vm591_vm1, %v4224_v63 }
  0xab   : > { %3560 = vmatmul.mubr.msk.f32.gmra.mrb[8].mxu0 %vm591_vm1, %v4181_v50  ;;  %3598 = vmatpush3.msra.mxu1 %v4087_v26  ;;  %v2249_v26 = vld [vmem:[#allocation2 + $0xd9] sm:$0xff] }
  0xac   : > { %3446 = vmatprep.mubr.msk.f32.mxu1 %vm591_vm1, %v4232_v3  ;;  %3562 = vmatprep.mubr.msk.f32.mxu0 %vm591_vm1, %v4187_v52 }
  0xae   : > { %3447 = vmatmul.mubr.msk.f32.gmra.mrb[2].mxu1 %vm591_vm1, %v4242_v2 }
  0xaf   : > { %3563 = vmatmul.mubr.msk.f32.gmra.mrb[10].mxu0 %vm591_vm1, %v4197_v54  ;;  %3449 = vmatprep.mubr.msk.f32.mxu1 %vm591_vm1, %v4248_v5 }
  0xb0   : > { %3565 = vmatprep.mubr.msk.f32.mxu0 %vm591_vm1, %v2247_v24 }
  0xb2   : > { %3450 = vmatmul.mubr.msk.f32.gmra.mrb[4].mxu1 %vm591_vm1, %v4258_v7 }
  0xb3   : > { %3566 = vmatmul.mubr.msk.f32.gmra.mrb[12].mxu0 %vm591_vm1, %v2248_v25  ;;  %3452 = vmatprep.mubr.msk.f32.mxu1 %vm591_vm1, %v4264_v9 }
  0xb4   : > { %3568 = vmatprep.mubr.msk.f32.mxu0 %vm591_vm1, %v2249_v26 }
  0xb6   : > { %3453 = vmatmul.mubr.msk.f32.gmra.mrb[6].mxu1 %vm591_vm1, %v4272_v10 }
  0xb7   : > { %3569 = vmatmul.mubr.msk.f32.gmra.mrb[14].mxu0 %vm591_vm1, %v2250_v27  ;;  %3455 = vmatprep.mubr.msk.f32.mxu1 %vm591_vm1, %v4276_v11 }
  0xb8   : > { %3573 = vmatprep.mubr.msk.f32.mxu0 %vm591_vm1, %v4151_v44 }
  0xba   : > { %3456 = vmatmul.mubr.msk.f32.gmra.mrb[8].mxu1 %vm591_vm1, %v4287_v13 }
  0xbb   : > { %3574 = vmatmul.mubr.msk.f32.vlgmr.msra.gmra.mrb[0].mxu0 %vm591_vm1, %v4168_v47  ;;  %3458 = vmatprep.mubr.msk.f32.mxu1 %vm591_vm1, %v4292_v14 }
  0xbc   : > { %3576 = vmatprep.mubr.msk.f32.mxu0 %vm591_vm1, %v4172_v49 }
  0xbe   : > { %3459 = vmatmul.mubr.msk.f32.gmra.mrb[10].mxu1 %vm591_vm1, %v4300_v15 }
  0xbf   : > { %3577 = vmatmul.mubr.msk.f32.gmra.mrb[2].mxu0 %vm591_vm1, %v4185_v51  ;;  %3461 = vmatprep.mubr.msk.f32.mxu1 %vm591_vm1, %v4304_v16 }
  0xc0   : > { %3579 = vmatprep.mubr.msk.f32.mxu0 %vm591_vm1, %v4189_v53 }
  0xc2   : > { %3462 = vmatmul.mubr.msk.f32.gmra.mrb[12].mxu1 %vm591_vm1, %v4312_v17 }
  0xc3   : > { %3580 = vmatmul.mubr.msk.f32.gmra.mrb[4].mxu0 %vm591_vm1, %v4201_v55  ;;  %3464 = vmatprep.mubr.msk.f32.mxu1 %vm591_vm1, %v4330_v20 }
  0xc4   : > { %3582 = vmatprep.mubr.msk.f32.mxu0 %vm591_vm1, %v4203_v57 }
  0xc6   : > { %3465 = vmatmul.mubr.msk.f32.gmra.mrb[14].mxu1 %vm591_vm1, %v2021_v21 }
  0xc7   : > { %3583 = vmatmul.mubr.msk.f32.gmra.mrb[6].mxu0 %vm591_vm1, %v4212_v59  ;;  %3481 = vmatprep.mubr.msk.f32.mxu1 %vm591_vm1, %v4149_v43 }
  0xc8   : > { %3585 = vmatprep.mubr.msk.f32.mxu0 %vm591_vm1, %v4216_v61 }
  0xca   : > { %3482 = vmatmul.mubr.msk.f32.vlgmr.msra.gmra.mrb[8].mxu1 %vm591_vm1, %v4164_v46 }
  0xcb   : > { %3586 = vmatmul.mubr.msk.f32.gmra.mrb[8].mxu0 %vm591_vm1, %v4230_v0  ;;  %3484 = vmatprep.mubr.msk.f32.mxu1 %vm591_vm1, %v4170_v48 }
  0xcc   : > { %3588 = vmatprep.mubr.msk.f32.mxu0 %vm591_vm1, %v4234_v1 }
  0xce   : > { %3485 = vmatmul.mubr.msk.f32.gmra.mrb[10].mxu1 %vm591_vm1, %v4181_v50 }
  0xcf   : > { %3589 = vmatmul.mubr.msk.f32.gmra.mrb[10].mxu0 %vm591_vm1, %v4246_v4  ;;  %3487 = vmatprep.mubr.msk.f32.mxu1 %vm591_vm1, %v4187_v52 }
  0xd0   : > { %3591 = vmatprep.mubr.msk.f32.mxu0 %vm591_vm1, %v4250_v6 }
  0xd2   : > { %3488 = vmatmul.mubr.msk.f32.gmra.mrb[12].mxu1 %vm591_vm1, %v4197_v54 }
  0xd3   : > { %3592 = vmatmul.mubr.msk.f32.gmra.mrb[12].mxu0 %vm591_vm1, %v4262_v8  ;;  %3490 = vmatprep.mubr.msk.f32.mxu1 %vm591_vm1, %v2247_v24 }
  0xd4   : > { %3594 = vmatprep.mubr.msk.f32.mxu0 %vm591_vm1, %v2476_v28 }
  0xd6   : > { %3491 = vmatmul.mubr.msk.f32.gmra.mrb[14].mxu1 %vm591_vm1, %v2248_v25 }
  0xd7   : > { %3595 = vmatmul.mubr.msk.f32.gmra.mrb[14].mxu0 %vm591_vm1, %v2477_v29 }
 0x17d   : > { %v3445_v30 = vpop.f32.mrb[0].mxu1 }
 0x17e   : > { %v1458_v31 = vpop.f32.mrb[1].mxu1 }
 0x181   : > { %v3448_v32 = vpop.f32.mrb[2].mxu1 }
 0x182   : > { %v1468_v33 = vpop.f32.mrb[3].mxu1 }
 0x185   : > { %v3451_v34 = vpop.f32.mrb[4].mxu1 }
 0x186   : > { %v1478_v35 = vpop.f32.mrb[5].mxu1 }
 0x189   : > { %v3454_v36 = vpop.f32.mrb[6].mxu1 }
 0x18a   : > { %v1488_v37 = vpop.f32.mrb[7].mxu1 }
 0x18e   : > { %v3575_v38 = vpop.f32.mrb[0].mxu0 }
 0x18f   : > { %v3599_v39 = vadd.f32 %v3575_v38, %v3445_v30  ;;  %v2594_v40 = vpop.f32.mrb[1].mxu0 }
 0x190   : > { %v3600_v41 = vadd.f32 %v2594_v40, %v1458_v31 }
 0x191   : > { %2690 = vst.msk [vmem:[%s3946_s12 + $0x8] sm:$0xff] %vm591_vm1, %v3599_v39  ;;  %v2706_v42 = vsel %vm591_vm1, %v3599_v39, 0.0  ;;  %v2743_v43 = vmul.f32 %v3599_v39, %v3599_v39 }
 0x192   : > { %2689 = vst.msk [vmem:[%s3946_s12] sm:$0xff] %vm591_vm1, %v3600_v41  ;;  %v2705_v44 = vsel %vm591_vm1, %v3600_v41, 0.0  ;;  %v2742_v45 = vmul.f32 %v3600_v41, %v3600_v41  ;;  %v3578_v46 = vpop.f32.mrb[2].mxu0 }
 0x193   : > { %v2759_v47 = vsel %vm591_vm1, %v2743_v43, 0.0  ;;  %v2707_v48 = vadd.f32 %v2706_v42, %v2705_v44  ;;  %v3601_v49 = vadd.f32 %v3578_v46, %v3448_v32  ;;  %v2604_v50 = vpop.f32.mrb[3].mxu0 }
 0x194   : > { %v2758_v51 = vsel %vm591_vm1, %v2742_v45, 0.0  ;;  %v3602_v52 = vadd.f32 %v2604_v50, %v1468_v33 }
 0x195   : > { %v2760_v53 = vadd.f32 %v2759_v47, %v2758_v51  ;;  %2692 = vst.msk [vmem:[%s3946_s12 + $0x18] sm:$0xff] %vm591_vm1, %v3601_v49  ;;  %v2745_v54 = vmul.f32 %v3601_v49, %v3601_v49  ;;  %v2710_v61 = vsel %vm591_vm1, %v3601_v49, 0.0 }
 0x196   : > { %2691 = vst.msk [vmem:[%s3946_s12 + $0x10] sm:$0xff] %vm591_vm1, %v3602_v52  ;;  %v2708_v55 = vsel %vm591_vm1, %v3602_v52, 0.0  ;;  %v2744_v56 = vmul.f32 %v3602_v52, %v3602_v52  ;;  %v3581_v57 = vpop.f32.mrb[4].mxu0 }
 0x197   : > { %v2709_v58 = vadd.f32 %v2708_v55, %v2707_v48  ;;  %v3603_v59 = vadd.f32 %v3581_v57, %v3451_v34  ;;  %v2614_v60 = vpop.f32.mrb[5].mxu0  ;;  %v2763_v1 = vsel %vm591_vm1, %v2745_v54, 0.0 }
 0x198   : > { %v2761_v62 = vsel %vm591_vm1, %v2744_v56, 0.0  ;;  %v3604_v63 = vadd.f32 %v2614_v60, %v1478_v35 }
 0x199   : > { %v2762_v0 = vadd.f32 %v2761_v62, %v2760_v53  ;;  %2694 = vst.msk [vmem:[%s3946_s12 + $0x28] sm:$0xff] %vm591_vm1, %v3603_v59  ;;  %v2711_v3 = vadd.f32 %v2710_v61, %v2709_v58  ;;  %v2747_v2 = vmul.f32 %v3603_v59, %v3603_v59  ;;  %v2714_v11 = vsel %vm591_vm1, %v3603_v59, 0.0 }
 0x19a   : > { %2693 = vst.msk [vmem:[%s3946_s12 + $0x20] sm:$0xff] %vm591_vm1, %v3604_v63  ;;  %v2712_v4 = vsel %vm591_vm1, %v3604_v63, 0.0  ;;  %v2746_v5 = vmul.f32 %v3604_v63, %v3604_v63  ;;  %v3584_v6 = vpop.f32.mrb[6].mxu0 }
 0x19b   : > { %v2713_v7 = vadd.f32 %v2712_v4, %v2711_v3  ;;  %v2764_v8 = vadd.f32 %v2763_v1, %v2762_v0  ;;  %v3605_v9 = vadd.f32 %v3584_v6, %v3454_v36  ;;  %v2624_v10 = vpop.f32.mrb[7].mxu0  ;;  %v2767_v17 = vsel %vm591_vm1, %v2747_v2, 0.0 }
 0x19c   : > { %v2765_v12 = vsel %vm591_vm1, %v2746_v5, 0.0  ;;  %v3606_v13 = vadd.f32 %v2624_v10, %v1488_v37 }
 0x19d   : > { %v2766_v14 = vadd.f32 %v2765_v12, %v2764_v8  ;;  %2696 = vst.msk [vmem:[%s3946_s12 + $0x38] sm:$0xff] %vm591_vm1, %v3605_v9  ;;  %v2715_v15 = vadd.f32 %v2714_v11, %v2713_v7  ;;  %v3483_v16 = vpop.f32.mrb[8].mxu1  ;;  %v2749_v18 = vmul.f32 %v3605_v9, %v3605_v9  ;;  %v2718_v27 = vsel %vm591_vm1, %v3605_v9, 0.0 }
 0x19e   : > { %2695 = vst.msk [vmem:[%s3946_s12 + $0x30] sm:$0xff] %vm591_vm1, %v3606_v13  ;;  %v2716_v19 = vsel %vm591_vm1, %v3606_v13, 0.0  ;;  %v2748_v20 = vmul.f32 %v3606_v13, %v3606_v13  ;;  %v3587_v21 = vpop.f32.mrb[8].mxu0  ;;  %v1725_v22 = vpop.f32.mrb[9].mxu1 }
 0x19f   : > { %v2717_v23 = vadd.f32 %v2716_v19, %v2715_v15  ;;  %v2768_v24 = vadd.f32 %v2767_v17, %v2766_v14  ;;  %v3607_v25 = vadd.f32 %v3587_v21, %v3483_v16  ;;  %v2634_v26 = vpop.f32.mrb[9].mxu0  ;;  %v2771_v33 = vsel %vm591_vm1, %v2749_v18, 0.0 }
 0x1a0   : > { %v2769_v28 = vsel %vm591_vm1, %v2748_v20, 0.0  ;;  %v3608_v29 = vadd.f32 %v2634_v26, %v1725_v22 }
 0x1a1   : > { %v2770_v30 = vadd.f32 %v2769_v28, %v2768_v24  ;;  %2698 = vst.msk [vmem:[%s3946_s12 + $0x48] sm:$0xff] %vm591_vm1, %v3607_v25  ;;  %v2719_v31 = vadd.f32 %v2718_v27, %v2717_v23  ;;  %v3486_v32 = vpop.f32.mrb[10].mxu1  ;;  %v2751_v34 = vmul.f32 %v3607_v25, %v3607_v25  ;;  %v2722_v43 = vsel %vm591_vm1, %v3607_v25, 0.0 }
 0x1a2   : > { %2697 = vst.msk [vmem:[%s3946_s12 + $0x40] sm:$0xff] %vm591_vm1, %v3608_v29  ;;  %v2720_v35 = vsel %vm591_vm1, %v3608_v29, 0.0  ;;  %v2750_v36 = vmul.f32 %v3608_v29, %v3608_v29  ;;  %v3590_v37 = vpop.f32.mrb[10].mxu0  ;;  %v1735_v38 = vpop.f32.mrb[11].mxu1 }
 0x1a3   : > { %v2721_v39 = vadd.f32 %v2720_v35, %v2719_v31  ;;  %v2772_v40 = vadd.f32 %v2771_v33, %v2770_v30  ;;  %v3609_v41 = vadd.f32 %v3590_v37, %v3486_v32  ;;  %v2644_v42 = vpop.f32.mrb[11].mxu0  ;;  %v2775_v49 = vsel %vm591_vm1, %v2751_v34, 0.0 }
 0x1a4   : > { %v2773_v44 = vsel %vm591_vm1, %v2750_v36, 0.0  ;;  %v3610_v45 = vadd.f32 %v2644_v42, %v1735_v38 }
 0x1a5   : > { %v2774_v46 = vadd.f32 %v2773_v44, %v2772_v40  ;;  %2700 = vst.msk [vmem:[%s3946_s12 + $0x58] sm:$0xff] %vm591_vm1, %v3609_v41  ;;  %v2723_v47 = vadd.f32 %v2722_v43, %v2721_v39  ;;  %v3489_v48 = vpop.f32.mrb[12].mxu1  ;;  %v2753_v50 = vmul.f32 %v3609_v41, %v3609_v41  ;;  %v2726_v59 = vsel %vm591_vm1, %v3609_v41, 0.0 }
 0x1a6   : > { %2699 = vst.msk [vmem:[%s3946_s12 + $0x50] sm:$0xff] %vm591_vm1, %v3610_v45  ;;  %v2724_v51 = vsel %vm591_vm1, %v3610_v45, 0.0  ;;  %v2752_v52 = vmul.f32 %v3610_v45, %v3610_v45  ;;  %v3593_v53 = vpop.f32.mrb[12].mxu0  ;;  %v1745_v54 = vpop.f32.mrb[13].mxu1 }
 0x1a7   : > { %v2725_v55 = vadd.f32 %v2724_v51, %v2723_v47  ;;  %v2776_v56 = vadd.f32 %v2775_v49, %v2774_v46  ;;  %v3611_v57 = vadd.f32 %v3593_v53, %v3489_v48  ;;  %v2654_v58 = vpop.f32.mrb[13].mxu0  ;;  %v2779_v3 = vsel %vm591_vm1, %v2753_v50, 0.0 }
 0x1a8   : > { %v2777_v60 = vsel %vm591_vm1, %v2752_v52, 0.0  ;;  %v3612_v61 = vadd.f32 %v2654_v58, %v1745_v54 }
 0x1a9   : > { %v2778_v62 = vadd.f32 %v2777_v60, %v2776_v56  ;;  %2702 = vst.msk [vmem:[%s3946_s12 + $0x68] sm:$0xff] %vm591_vm1, %v3611_v57  ;;  %v2727_v63 = vadd.f32 %v2726_v59, %v2725_v55  ;;  %v3492_v0 = vpop.f32.mrb[14].mxu1  ;;  %v2755_v1 = vmul.f32 %v3611_v57, %v3611_v57  ;;  %v2730_v11 = vsel %vm591_vm1, %v3611_v57, 0.0 }
 0x1aa   : > { %2701 = vst.msk [vmem:[%s3946_s12 + $0x60] sm:$0xff] %vm591_vm1, %v3612_v61  ;;  %v2728_v2 = vsel %vm591_vm1, %v3612_v61, 0.0  ;;  %v2754_v4 = vmul.f32 %v3612_v61, %v3612_v61  ;;  %v3596_v5 = vpop.f32.mrb[14].mxu0  ;;  %v1755_v6 = vpop.f32.mrb[15].mxu1 }
 0x1ab   : > { %v2729_v7 = vadd.f32 %v2728_v2, %v2727_v63  ;;  %v2780_v8 = vadd.f32 %v2779_v3, %v2778_v62  ;;  %v3613_v9 = vadd.f32 %v3596_v5, %v3492_v0  ;;  %v2664_v10 = vpop.f32.mrb[15].mxu0  ;;  %v2783_v16 = vsel %vm591_vm1, %v2755_v1, 0.0 }
 0x1ac   : > { %v2781_v12 = vsel %vm591_vm1, %v2754_v4, 0.0  ;;  %v3614_v13 = vadd.f32 %v2664_v10, %v1755_v6 }
 0x1ad   : > { %v2782_v14 = vadd.f32 %v2781_v12, %v2780_v8  ;;  %2704 = vst.msk [vmem:[%s3946_s12 + $0x78] sm:$0xff] %vm591_vm1, %v3613_v9  ;;  %v2731_v15 = vadd.f32 %v2730_v11, %v2729_v7  ;;  %v2757_v17 = vmul.f32 %v3613_v9, %v3613_v9  ;;  %v2734_v22 = vsel %vm591_vm1, %v3613_v9, 0.0 }
 0x1ae   : > { %2703 = vst.msk [vmem:[%s3946_s12 + $0x70] sm:$0xff] %vm591_vm1, %v3614_v13  ;;  %v2732_v18 = vsel %vm591_vm1, %v3614_v13, 0.0  ;;  %v2756_v19 = vmul.f32 %v3614_v13, %v3614_v13 }
 0x1af   : > { %v2733_v20 = vadd.f32 %v2732_v18, %v2731_v15  ;;  %v2784_v21 = vadd.f32 %v2783_v16, %v2782_v14  ;;  %v2787_v26 = vsel %vm591_vm1, %v2757_v17, 0.0 }
 0x1b0   : > { %v2785_v23 = vsel %vm591_vm1, %v2756_v19, 0.0 }
 0x1b1   : > { %v2735_v24 = vadd.f32 %v2734_v22, %v2733_v20  ;;  %v2786_v25 = vadd.f32 %v2785_v23, %v2784_v21 }
 0x1b3   : > { %v2736_v27 = vrot.slane %v2735_v24, 4  ;;  %v2788_v28 = vadd.f32 %v2787_v26, %v2786_v25 }
 0x1b5   : > { %v2737_v29 = vadd.f32 %v2736_v27, %v2735_v24  ;;  %v2789_v30 = vrot.slane %v2788_v28, 4 }
 0x1b7   : > { %v2738_v31 = vrot.slane %v2737_v29, 2  ;;  %v2790_v32 = vadd.f32 %v2789_v30, %v2788_v28 }
 0x1b9   : > { %v2739_v33 = vadd.f32 %v2738_v31, %v2737_v29  ;;  %v2791_v34 = vrot.slane %v2790_v32, 2  ;;  %2797 = sbr.rel (%p3038_p10) target bundleno = 450 (0x1c2), region = 64 }
 0x1bb   : > { %v2740_v35 = vrot.slane %v2739_v33, 1  ;;  %v2792_v36 = vadd.f32 %v2791_v34, %v2790_v32 }
 0x1bd   : > { %v2741_v37 = vadd.f32 %v2740_v35, %v2739_v33  ;;  %v2793_v38 = vrot.slane %v2792_v36, 1 }
 0x1bf   : > { %v2794_v39 = vadd.f32 %v2793_v38, %v2792_v36  ;;  %2798 = vst.msk [vmem:[%s3984_s23] sm:$0x1] (!%p3038_p10), %vm491_vm0, %v2741_v37 }
 0x1c1   : > { %2799 = vst.msk [vmem:[%s4021_s24] sm:$0x1] %vm491_vm0, %v2794_v39 }
 0x1c2 PF: > { %2802 = sbr.rel (%p3039_p11) target bundleno = 461 (0x1cd), region = 68 }
 0x1c8   : > { %v2803_v40 = vld [vmem:[%s3984_s23] sm:$0x1] (!%p3039_p11) }
 0x1c9   : > { %v2806_v41 = vld [vmem:[%s4021_s24] sm:$0x1]  ;;  %v2804_v42 = vadd.f32 %v2803_v40, %v2741_v37 }
 0x1ca   : > { %v2807_v43 = vadd.f32 %v2806_v41, %v2794_v39 }
 0x1cb   : > { %2805 = vst.msk [vmem:[%s3984_s23] sm:$0x1] %vm491_vm0, %v2804_v42 }
 0x1cc   : > { %2808 = vst.msk [vmem:[%s4021_s24] sm:$0x1] %vm491_vm0, %v2807_v43 }
 0x1cd PF: > { %s19_s9 = sadd.s32 1, %s3808_s9   ;;  %s4573_s27 = smov %s3800_s29 }
 0x1ce   : > { %p16_p0 = scmp.ge.s32.totalorder %s19_s9, 6   ;;  %s4574_s28 = smov %s3804_s30 }
 0x1cf   : > { %s4575_s29 = smov %s4578_s10  ;;  %s4576_s30 = smov %s4582_s11 }
 0x1d0   :  { %18 = sbr.rel (!%p16_p0) target bundleno = 3 (0x3), region = 140 }

// kernel: double_conv.3
= control target key start
LH: loop header
LB: loop body
LE: loop exit
PB: predicated region body
PF: predicated region fallthrough
CT: control target
= control target key end

     0   :  { %s3790_s25 = smov 0   ;;  %s3792_s26 = smov 0   ;;  %s4449_s0 = inlined_call_operand.vmem [shape: f32[1,4], index: 0, kind: input, shape index: {}]   ;;  %s4450_s1 = inlined_call_operand.vmem [shape: f32[1,4], index: 1, kind: input, shape index: {}]   ;;  %s4451_s2 = inlined_call_operand.vmem [shape: f32[2,16,16,4], index: 2, kind: input, shape index: {}, may-alias: {2,3,4}]   ;;  %s4452_s3 = inlined_call_operand.vmem [shape: f32[2,16,16,4], index: 3, kind: input, shape index: {}, may-alias: {2,3,4}]   ;;  %s4453_s4 = inlined_call_operand.vmem [shape: f32[2,16,16,4], index: 4, kind: input, shape index: {}, may-alias: {2,3,4}]   ;;  %s4454_s5 = inlined_call_operand.vmem [shape: f32[9,4,8], index: 5, kind: input, shape index: {}]   ;;  %s4455_s6 = inlined_call_operand.vmem [shape: f32[2,16,16,8], index: 6, kind: output, shape index: {0}]   ;;  %s4456_s7 = inlined_call_operand.vmem [shape: f32[2,1,8], index: 7, kind: output, shape index: {1}]   ;;  %s4457_s8 = inlined_call_operand.vmem [shape: f32[2,1,8], index: 8, kind: output, shape index: {2}]  }
   0x1   :  { %4458 = sst [smem:[#allocation3_spill]] %s4451_s2  ;;  %s3794_s27 = smov 0  }
   0x2   :  { %s3796_s28 = smov 0   ;;  %s3798_s29 = smov 0  }
   0x3 LB: > { %s28_s30 = sadd.s32 1, %s3732_s27  ;;  %s31_s9 = sadd.s32 1, %s3736_s28  ;;  %s3740_s29 = sphi %s3798_s29, %s19_s29   ;;  %s3736_s28 = sphi %s3796_s28, %s4464_s28   ;;  %s3732_s27 = sphi %s3794_s27, %s4463_s27   ;;  %s3728_s26 = sphi %s3792_s26, %s4462_s26   ;;  %s3724_s25 = sphi %s3790_s25, %s4461_s25  }
   0x4   : > { %p29_p0 = scmp.ge.s32.totalorder %s28_s30, 2  ;;  %p2939_p1 = scmp.ge.s32.totalorder %s3740_s29, 1 }
   0x5   : > { %p353_p2 = scmp.lt.s32.totalorder %s3740_s29, 5 }
   0x6   : > { %s4466_s30 = smov (%p29_p0, %s28_s30), 0  ;;  %s4468_s9 = smov (!%p29_p0, %s31_s9), %s3736_s28 }
   0x7   : > { %p354_p3 = pnand %p2939_p1, %p353_p2  ;;  %p33_p4 = scmp.ge.s32.totalorder %s4468_s9, 2 }
   0x8   : > { %vm491_vm0 = vcmask (!%p354_p3), 24576   ;;  %s3825_s10 = sshll.u32 (!%p354_p3), %s3724_s25, 3  ;;  %p430_p5 = scmp.lt.s32.totalorder (!%p354_p3), %s3728_s26, 1  ;;  %v3742_v0 = vmov (!%p354_p3), 0.0   ;;  %vm529_vm1 = vcmask (!%p354_p3), 31744  }
   0x9   : > { %s4470_s9 = smov (%p33_p4, %s4468_s9), 0  ;;  %357 = sbr.rel (%p354_p3) target bundleno = 452 (0x1c4), region = 44 }
   0xa   : > { %492 = vst.msk [vmem:[#allocation2] sm:$0x1] (!%p354_p3), %vm491_vm0, %v3742_v0  ;;  %493 = vst.msk [vmem:[#allocation2 + $0x18] sm:$0x1] (!%p354_p3), %vm491_vm0, %v3742_v0  ;;  %p432_p6 = scmp.lt.s32.totalorder (!%p354_p3), %s3825_s10, 15  ;;  %s2945_s11 = sadd.s32 (!%p354_p3), 4294967295, %s3825_s10 }
   0xb   : > { %494 = vst.msk [vmem:[#allocation2 + $0x30] sm:$0x1] (!%p354_p3), %vm491_vm0, %v3742_v0  ;;  %495 = vst.msk [vmem:[#allocation2 + $0x48] sm:$0x1] (!%p354_p3), %vm491_vm0, %v3742_v0  ;;  %p442_p7 = scmp.gt.s32.totalorder (!%p354_p3), %s2945_s11, 0  ;;  %p2946_p8 = scmp.lt.s32.totalorder (!%p354_p3), %s2945_s11, 15 }
   0xc   : > { %496 = vst.msk [vmem:[#allocation2 + $0x60] sm:$0x1] (!%p354_p3), %vm491_vm0, %v3742_v0  ;;  %497 = vst.msk [vmem:[#allocation2 + $0x78] sm:$0x1] (!%p354_p3), %vm491_vm0, %v3742_v0  ;;  %s3141_s16 = sadd.s32 (!%p354_p3), 8, %s3825_s10  ;;  %s4460_s2 = sld [smem:[#allocation3_spill]] (!%p354_p3) }
   0xd   : > { %498 = vst.msk [vmem:[#allocation2 + $0x90] sm:$0x1] (!%p354_p3), %vm491_vm0, %v3742_v0  ;;  %499 = vst.msk [vmem:[#allocation2 + $0xa8] sm:$0x1] (!%p354_p3), %vm491_vm0, %v3742_v0  ;;  %p3861_p9 = scmp.lt.s32.totalorder (!%p354_p3), %s3141_s16, 15  ;;  %p2965_p10 = scmp.ne.s32.totalorder (!%p354_p3), %s3724_s25, 0 }
   0xe   : > { %500 = vst.msk [vmem:[#allocation2 + $0xc0] sm:$0x1] (!%p354_p3), %vm491_vm0, %v3742_v0  ;;  %501 = vst.msk [vmem:[#allocation2 + $0xd8] sm:$0x1] (!%p354_p3), %vm491_vm0, %v3742_v0 }
   0xf   : > { %502 = vst.msk [vmem:[#allocation2 + $0x11] sm:$0x1] (!%p354_p3), %vm491_vm0, %v3742_v0  ;;  %503 = vst.msk [vmem:[#allocation2 + $0x29] sm:$0x1] (!%p354_p3), %vm491_vm0, %v3742_v0 }
  0x10   : > { %504 = vst.msk [vmem:[#allocation2 + $0x41] sm:$0x1] %vm491_vm0, %v3742_v0  ;;  %505 = vst.msk [vmem:[#allocation2 + $0x59] sm:$0x1] %vm491_vm0, %v3742_v0  ;;  %s4472_s26 = smov (!%p430_p5, %s3728_s26), 1  ;;  %s4474_s16 = smov (!%p3861_p9, %s3141_s16), 15 }
  0x11   : > { %506 = vst.msk [vmem:[#allocation2 + $0x71] sm:$0x1] %vm491_vm0, %v3742_v0  ;;  %507 = vst.msk [vmem:[#allocation2 + $0x89] sm:$0x1] %vm491_vm0, %v3742_v0  ;;  %s433_s12 = scalar_select %p432_p6, %s3825_s10, 15 }
  0x12   : > { %508 = vst.msk [vmem:[#allocation2 + $0xa1] sm:$0x1] %vm491_vm0, %v3742_v0  ;;  %509 = vst.msk [vmem:[#allocation2 + $0xb9] sm:$0x1] %vm491_vm0, %v3742_v0  ;;  %s3857_s13 = sshll.u32 %s4472_s26, 5  ;;  %s4478_s16 = smov (!%p3861_p9, %s4474_s16), 15 }
  0x13   : > { %510 = vst.msk [vmem:[#allocation2 + $0xd1] sm:$0x1] %vm491_vm0, %v3742_v0  ;;  %511 = vst.msk [vmem:[#allocation2 + $0xe9] sm:$0x1] %vm491_vm0, %v3742_v0  ;;  %s2941_s14 = sshll.u32 %s433_s12, 1  ;;  %s3908_s12 = scalar_lea.vmem %s4456_s7, %s4472_s26  ;;  %v3743_v17 = vmov (!%p2965_p10), 0.0  }
  0x14   : > { %s436_s15 = sadd.s32 %s3857_s13, %s2941_s14  ;;  %550 = vst.msk [vmem:[#allocation2 + $0x1] sm:$0xff] (!%p2965_p10), %vm529_vm1, %v3743_v17  ;;  %551 = vst.msk [vmem:[#allocation2 + $0x9] sm:$0xff] (!%p2965_p10), %vm529_vm1, %v3743_v17 }
  0x15   : > { %s2943_s17 = sshll.u32 %s436_s15, 3  ;;  %s2958_s15 = sshll.u32 %s4478_s16, 1 }
  0x16   : > { %s3868_s21 = scalar_lea.vmem %s4460_s2, %s2943_s17  ;;  %s3873_s0 = scalar_lea.vmem %s4455_s6, %s2943_s17 }
  0x17   : > { %s443_s24 = scalar_select %p442_p7, %s2945_s11, 0  ;;  %v512_v1 = vld [vmem:[%s3868_s21] sm:$0xff]  ;;  %v513_v2 = vld [vmem:[%s3868_s21 + $0x8] sm:$0xff]  ;;  %v514_v3 = vld [vmem:[%s3868_s21 + $0x10] sm:$0xff] }
  0x18   : > { %530 = vst.msk [vmem:[#allocation2 + $0x19] sm:$0xff] %vm529_vm1, %v512_v1  ;;  %531 = vst.msk [vmem:[#allocation2 + $0x21] sm:$0xff] %vm529_vm1, %v513_v2  ;;  %v515_v4 = vld [vmem:[%s3868_s21 + $0x18] sm:$0xff]  ;;  %v516_v5 = vld [vmem:[%s3868_s21 + $0x20] sm:$0xff]  ;;  %s467_s18 = sadd.s32 %s2958_s15, %s3857_s13  ;;  %s3933_s2 = scalar_lea.vmem %s4457_s8, %s4472_s26 }
  0x19   : > { %532 = vst.msk [vmem:[#allocation2 + $0x31] sm:$0xff] %vm529_vm1, %v514_v3  ;;  %v517_v6 = vld [vmem:[%s3868_s21 + $0x28] sm:$0xff]  ;;  %s4476_s24 = smov (!%p2946_p8, %s443_s24), 15  ;;  %533 = vst.msk [vmem:[#allocation2 + $0x39] sm:$0xff] %vm529_vm1, %v515_v4  ;;  %v518_v7 = vld [vmem:[%s3868_s21 + $0x30] sm:$0xff]  ;;  %s2960_s23 = sshll.u32 %s467_s18, 3 }
  0x1a   : > { %534 = vst.msk [vmem:[#allocation2 + $0x49] sm:$0xff] %vm529_vm1, %v516_v5  ;;  %535 = vst.msk [vmem:[#allocation2 + $0x51] sm:$0xff] %vm529_vm1, %v517_v6  ;;  %v519_v8 = vld [vmem:[%s3868_s21 + $0x38] sm:$0xff]  ;;  %v520_v9 = vld [vmem:[%s3868_s21 + $0x40] sm:$0xff]  ;;  %s2951_s1 = sshll.u32 %s4476_s24, 1  ;;  %s469_s16 = scalar_lea.vmem %s4453_s4, %s2960_s23 }
  0x1b   : > { %536 = vst.msk [vmem:[#allocation2 + $0x61] sm:$0xff] %vm529_vm1, %v518_v7  ;;  %537 = vst.msk [vmem:[#allocation2 + $0x69] sm:$0xff] %vm529_vm1, %v519_v8  ;;  %v521_v10 = vld [vmem:[%s3868_s21 + $0x48] sm:$0xff]  ;;  %v522_v11 = vld [vmem:[%s3868_s21 + $0x50] sm:$0xff]  ;;  %s450_s14 = sadd.s32 %s2951_s1, %s3857_s13  ;;  %549 = sbr.rel (%p2965_p10) target bundleno = 34 (0x22), region = 48 }
  0x1c   : > { %538 = vst.msk [vmem:[#allocation2 + $0x79] sm:$0xff] %vm529_vm1, %v520_v9  ;;  %v523_v12 = vld [vmem:[%s3868_s21 + $0x58] sm:$0xff]  ;;  %539 = vst.msk [vmem:[#allocation2 + $0x81] sm:$0xff] %vm529_vm1, %v521_v10  ;;  %v524_v13 = vld [vmem:[%s3868_s21 + $0x60] sm:$0xff]  ;;  %s2953_s17 = sshll.u32 %s450_s14, 3 }
  0x1d   : > { %540 = vst.msk [vmem:[#allocation2 + $0x91] sm:$0xff] %vm529_vm1, %v522_v11  ;;  %541 = vst.msk [vmem:[#allocation2 + $0x99] sm:$0xff] %vm529_vm1, %v523_v12  ;;  %v525_v14 = vld [vmem:[%s3868_s21 + $0x68] sm:$0xff]  ;;  %v526_v15 = vld [vmem:[%s3868_s21 + $0x70] sm:$0xff]  ;;  %s452_s22 = scalar_lea.vmem %s4452_s3, %s2953_s17 }
  0x1e   : > { %542 = vst.msk [vmem:[#allocation2 + $0xa9] sm:$0xff] %vm529_vm1, %v524_v13  ;;  %543 = vst.msk [vmem:[#allocation2 + $0xb1] sm:$0xff] %vm529_vm1, %v525_v14  ;;  %v527_v16 = vld [vmem:[%s3868_s21 + $0x78] sm:$0xff] }
  0x1f   : > { %544 = vst.msk [vmem:[#allocation2 + $0xc1] sm:$0xff] %vm529_vm1, %v526_v15  ;;  %545 = vst.msk [vmem:[#allocation2 + $0xc9] sm:$0xff] %vm529_vm1, %v527_v16 }
  0x22 PF: > { %p2966_p11 = scmp.le.s32.totalorder %s3724_s25, 0 }
  0x23   : > { %v556_v18 = vld [vmem:[%s452_s22] sm:$0xff] (!%p2966_p11)  ;;  %v557_v19 = vld [vmem:[%s452_s22 + $0x8] sm:$0xff] (!%p2966_p11) }
  0x24   : > { %555 = sbr.rel (%p2966_p11) target bundleno = 43 (0x2b), region = 52  ;;  %558 = vst.msk [vmem:[#allocation2 + $0x1] sm:$0xff] (!%p2966_p11), %vm529_vm1, %v556_v18  ;;  %559 = vst.msk [vmem:[#allocation2 + $0x9] sm:$0xff] (!%p2966_p11), %vm529_vm1, %v557_v19 }
  0x2b PF: > { %p2967_p12 = scmp.ne.s32.totalorder %s3724_s25, 1 }
  0x2c   : > { %v3744_v20 = vmov (!%p2967_p12), 0.0  }
  0x2d   : > { %563 = sbr.rel (%p2967_p12) target bundleno = 52 (0x34), region = 56  ;;  %565 = vst.msk [vmem:[#allocation2 + $0xd9] sm:$0xff] (!%p2967_p12), %vm529_vm1, %v3744_v20  ;;  %566 = vst.msk [vmem:[#allocation2 + $0xe1] sm:$0xff] (!%p2967_p12), %vm529_vm1, %v3744_v20 }
  0x34 PF: > { %p2968_p13 = scmp.ge.s32.totalorder %s3724_s25, 1 }
  0x35   : > { %v571_v21 = vld [vmem:[%s469_s16] sm:$0xff] (!%p2968_p13)  ;;  %v572_v22 = vld [vmem:[%s469_s16 + $0x8] sm:$0xff] (!%p2968_p13) }
  0x36   : > { %570 = sbr.rel (%p2968_p13) target bundleno = 61 (0x3d), region = 60  ;;  %574 = vst.msk [vmem:[#allocation2 + $0xd9] sm:$0xff] (!%p2968_p13), %vm529_vm1, %v571_v21  ;;  %575 = vst.msk [vmem:[#allocation2 + $0xe1] sm:$0xff] (!%p2968_p13), %vm529_vm1, %v572_v22 }
  0x3d PF: > { %v2969_v23 = vld [vmem:[%s4454_s5 + $0x4] sm:$0xf]  ;;  %vm659_vm2 = vcmask 1043456   ;;  %v3957_v24 = vld [vmem:[%s4454_s5 + $0x10] sm:$0xf]  ;;  %v1464_v26 = vld [vmem:[#allocation2 + $0x19] sm:$0xff] }
  0x3e   : > { %v593_v25 = vld [vmem:[#allocation2 + $0x1] sm:$0xff]  ;;  %3295 = vmatprep.subr.msk.mxu1 %vm659_vm2, %v2969_v23  ;;  %3399 = vmatprep.subr.msk.mxu0 %vm659_vm2, %v3957_v24  ;;  %v594_v27 = vld [vmem:[#allocation2 + $0x9] sm:$0xff]  ;;  %v3058_v30 = vld [vmem:[%s4454_s5 + $0x14] sm:$0xf]  ;;  %vm2615_vm3 = vcmask 64512   ;;  %vm2725_vm4 = vcmask (!%p2965_p10), 57344  }
  0x3f   : > { %v592_v28 = vld [vmem:[%s4454_s5] sm:$0xf]  ;;  %3296 = vmatpush3.msk.msra.mxu1 %vm659_vm2, %v2969_v23  ;;  %3297 = vmatprep.mubr.msk.f32.mxu1 %vm529_vm1, %v593_v25  ;;  %v3975_v31 = vld [vmem:[#allocation2 + $0x31] sm:$0xff]  ;;  %v3989_v34 = vld [vmem:[#allocation2 + $0x49] sm:$0xff] }
  0x40   : > { %v1465_v29 = vld [vmem:[#allocation2 + $0x21] sm:$0xff]  ;;  %3400 = vmatpush3.msk.msra.mxu0 %vm659_vm2, %v3957_v24  ;;  %3401 = vmatprep.mubr.msk.f32.mxu0 %vm529_vm1, %v1464_v26  ;;  %v3076_v32 = vld [vmem:[%s4454_s5 + $0x18] sm:$0xf]  ;;  %v4015_v38 = vld [vmem:[#allocation2 + $0x69] sm:$0xff] }
  0x41   : > { %3298 = vmatmul.mubr.msk.f32.vlgmr.msra.gmra.mrb[0].mxu1 %vm529_vm1, %v594_v27  ;;  %3321 = vmatprep.subr.msk.mxu1 %vm659_vm2, %v592_v28  ;;  %v3984_v33 = vld [vmem:[#allocation2 + $0x39] sm:$0xff]  ;;  %v3999_v35 = vld [vmem:[#allocation2 + $0x51] sm:$0xff]  ;;  %v3004_v36 = vld [vmem:[%s4454_s5 + $0x8] sm:$0xf] }
  0x42   : > { %3402 = vmatmul.mubr.msk.f32.vlgmr.msra.gmra.mrb[0].mxu0 %vm529_vm1, %v1465_v29  ;;  %3425 = vmatprep.subr.msk.mxu0 %vm659_vm2, %v3058_v30  ;;  %v4004_v37 = vld [vmem:[#allocation2 + $0x61] sm:$0xff]  ;;  %v4029_v41 = vld [vmem:[#allocation2 + $0x79] sm:$0xff]  ;;  %v4051_v46 = vld [vmem:[#allocation2 + $0x91] sm:$0xff] }
  0x43   : > { %3322 = vmatpush3.msk.msra.mxu1 %vm659_vm2, %v592_v28  ;;  %3426 = vmatpush3.msk.msra.mxu0 %vm659_vm2, %v3058_v30  ;;  %v4017_v39 = vld [vmem:[#allocation2 + $0x1a] sm:$0xff]  ;;  %v4027_v40 = vld [vmem:[#allocation2 + $0x22] sm:$0xff]  ;;  %v4031_v42 = vld [vmem:[#allocation2 + $0x32] sm:$0xff] }
  0x44   : > { %3300 = vmatprep.mubr.msk.f32.mxu1 %vm529_vm1, %v1464_v26  ;;  %3404 = vmatprep.mubr.msk.f32.mxu0 %vm529_vm1, %v3975_v31  ;;  %v4038_v43 = vld [vmem:[%s4454_s5 + $0x1c] sm:$0xf]  ;;  %v4044_v44 = vld [vmem:[#allocation2 + $0x81] sm:$0xff]  ;;  %v4053_v47 = vld [vmem:[#allocation2 + $0x4a] sm:$0xff] }
  0x45   : > { %3301 = vmatmul.mubr.msk.f32.gmra.mrb[2].mxu1 %vm529_vm1, %v1465_v29  ;;  %3451 = vmatprep.subr.msk.mxu0 %vm659_vm2, %v3076_v32  ;;  %v4049_v45 = vld [vmem:[#allocation2 + $0x3a] sm:$0xff]  ;;  %v4067_v49 = vld [vmem:[#allocation2 + $0x52] sm:$0xff]  ;;  %v4069_v50 = vld [vmem:[#allocation2 + $0xa9] sm:$0xff] }
  0x46   : > { %3405 = vmatmul.mubr.msk.f32.gmra.mrb[2].mxu0 %vm529_vm1, %v3984_v33  ;;  %3303 = vmatprep.mubr.msk.f32.mxu1 %vm529_vm1, %v3975_v31  ;;  %v4063_v48 = vld [vmem:[#allocation2 + $0x99] sm:$0xff]  ;;  %v4071_v51 = vld [vmem:[#allocation2 + $0x62] sm:$0xff]  ;;  %v4079_v52 = vld [vmem:[#allocation2 + $0xb1] sm:$0xff] }
  0x47   : > { %3407 = vmatprep.mubr.msk.f32.mxu0 %vm529_vm1, %v3989_v34  ;;  %3347 = vmatprep.subr.msk.mxu1 %vm659_vm2, %v3004_v36  ;;  %v4083_v53 = vld [vmem:[#allocation2 + $0x6a] sm:$0xff]  ;;  %v576_v54 = vld [vmem:[#allocation2] sm:$0xff]  ;;  %v4096_v58 = vld [vmem:[#allocation2 + $0x18] sm:$0xff] }
  0x48   : > { %v4085_v55 = vld [vmem:[#allocation2 + $0x7a] sm:$0xff]  ;;  %v577_v56 = vld [vmem:[#allocation2 + $0x8] sm:$0xff]  ;;  %v4098_v59 = vld [vmem:[#allocation2 + $0x92] sm:$0xff] }
  0x49   : > { %3304 = vmatmul.mubr.msk.f32.gmra.mrb[4].mxu1 %vm529_vm1, %v3984_v33  ;;  %v4094_v57 = vld [vmem:[#allocation2 + $0x82] sm:$0xff]  ;;  %v3022_v60 = vld [vmem:[%s4454_s5 + $0xc] sm:$0xf]  ;;  %v4113_v62 = vld [vmem:[#allocation2 + $0x9a] sm:$0xff] }
  0x4a   : > { %3408 = vmatmul.mubr.msk.f32.gmra.mrb[4].mxu0 %vm529_vm1, %v3999_v35  ;;  %3306 = vmatprep.mubr.msk.f32.mxu1 %vm529_vm1, %v3989_v34  ;;  %v4107_v61 = vld [vmem:[#allocation2 + $0x20] sm:$0xff]  ;;  %v4115_v63 = vld [vmem:[#allocation2 + $0x30] sm:$0xff]  ;;  %v4126_v1 = vld [vmem:[#allocation2 + $0x38] sm:$0xff] }
  0x4b   : > { %3410 = vmatprep.mubr.msk.f32.mxu0 %vm529_vm1, %v4004_v37  ;;  %v4117_v0 = vld [vmem:[#allocation2 + $0xaa] sm:$0xff]  ;;  %v4130_v2 = vld [vmem:[#allocation2 + $0xb2] sm:$0xff]  ;;  %v4134_v4 = vld [vmem:[#allocation2 + $0xc2] sm:$0xff] }
  0x4c   : > { %v4132_v3 = vld [vmem:[#allocation2 + $0x48] sm:$0xff]  ;;  %v4142_v5 = vld [vmem:[#allocation2 + $0x50] sm:$0xff]  ;;  %v4148_v7 = vld [vmem:[#allocation2 + $0x60] sm:$0xff] }
  0x4d   : > { %3307 = vmatmul.mubr.msk.f32.gmra.mrb[6].mxu1 %vm529_vm1, %v3999_v35  ;;  %v4146_v6 = vld [vmem:[#allocation2 + $0xca] sm:$0xff]  ;;  %v4160_v9 = vld [vmem:[#allocation2 + $0x78] sm:$0xff]  ;;  %v3112_v10 = vld [vmem:[%s4454_s5 + $0x20] sm:$0xf] }
  0x4e   : > { %3411 = vmatmul.mubr.msk.f32.gmra.mrb[6].mxu0 %vm529_vm1, %v4015_v38  ;;  %3309 = vmatprep.mubr.msk.f32.mxu1 %vm529_vm1, %v4004_v37  ;;  %v4156_v8 = vld [vmem:[#allocation2 + $0x68] sm:$0xff]  ;;  %v4171_v11 = vld [vmem:[#allocation2 + $0x80] sm:$0xff]  ;;  %v4177_v12 = vld [vmem:[#allocation2 + $0x90] sm:$0xff] }
  0x4f   : > { %3427 = vmatprep.mubr.msk.f32.mxu0 %vm529_vm1, %v4017_v39  ;;  %v4186_v13 = vld [vmem:[#allocation2 + $0x98] sm:$0xff]  ;;  %v4190_v14 = vld [vmem:[#allocation2 + $0xa8] sm:$0xff]  ;;  %v4198_v15 = vld [vmem:[#allocation2 + $0xb0] sm:$0xff] }
  0x50   : > { %v1004_v16 = vld [vmem:[#allocation2 + $0x2] sm:$0xff]  ;;  %v1005_v17 = vld [vmem:[#allocation2 + $0xa] sm:$0xff]  ;;  %v1939_v20 = vld [vmem:[#allocation2 + $0xd8] sm:$0xff] }
  0x51   : > { %3310 = vmatmul.mubr.msk.f32.gmra.mrb[8].mxu1 %vm529_vm1, %v4015_v38  ;;  %v4217_v18 = vld [vmem:[#allocation2 + $0xc0] sm:$0xff]  ;;  %v1938_v19 = vld [vmem:[#allocation2 + $0xc8] sm:$0xff] }
  0x52   : > { %3428 = vmatmul.mubr.msk.f32.vlgmr.msra.gmra.mrb[0].mxu0 %vm529_vm1, %v4027_v40  ;;  %3312 = vmatprep.mubr.msk.f32.mxu1 %vm529_vm1, %v4029_v41  ;;  %v1940_v21 = vld [vmem:[#allocation2 + $0xe0] sm:$0xff]  ;;  %v2168_v23 = vld [vmem:[#allocation2 + $0xc9] sm:$0xff] }
  0x53   : > { %3452 = vmatpush3.msk.msra.mxu0 %vm659_vm2, %v3076_v32  ;;  %3430 = vmatprep.mubr.msk.f32.mxu0 %vm529_vm1, %v4031_v42  ;;  %v2167_v22 = vld [vmem:[#allocation2 + $0xc1] sm:$0xff] }
  0x54   : > { %3477 = vmatprep.subr.msk.mxu0 %vm659_vm2, %v4038_v43  ;;  %v2170_v25 = vld [vmem:[#allocation2 + $0xe1] sm:$0xff] }
  0x55   : > { %3313 = vmatmul.mubr.msk.f32.gmra.mrb[10].mxu1 %vm529_vm1, %v4044_v44  ;;  %v2399_v26 = vld [vmem:[#allocation2 + $0xda] sm:$0xff]  ;;  %v2400_v27 = vld [vmem:[#allocation2 + $0xe2] sm:$0xff] }
  0x56   : > { %3431 = vmatmul.mubr.msk.f32.gmra.mrb[2].mxu0 %vm529_vm1, %v4049_v45  ;;  %3315 = vmatprep.mubr.msk.f32.mxu1 %vm529_vm1, %v4051_v46 }
  0x57   : > { %3433 = vmatprep.mubr.msk.f32.mxu0 %vm529_vm1, %v4053_v47 }
  0x59   : > { %3316 = vmatmul.mubr.msk.f32.gmra.mrb[12].mxu1 %vm529_vm1, %v4063_v48 }
  0x5a   : > { %3434 = vmatmul.mubr.msk.f32.gmra.mrb[4].mxu0 %vm529_vm1, %v4067_v49  ;;  %3318 = vmatprep.mubr.msk.f32.mxu1 %vm529_vm1, %v4069_v50 }
  0x5b   : > { %3436 = vmatprep.mubr.msk.f32.mxu0 %vm529_vm1, %v4071_v51 }
  0x5d   : > { %3319 = vmatmul.mubr.msk.f32.gmra.mrb[14].mxu1 %vm529_vm1, %v4079_v52 }
  0x5e   : > { %3437 = vmatmul.mubr.msk.f32.gmra.mrb[6].mxu0 %vm529_vm1, %v4083_v53  ;;  %3323 = vmatprep.mubr.msk.f32.mxu1 %vm529_vm1, %v576_v54 }
  0x5f   : > { %3439 = vmatprep.mubr.msk.f32.mxu0 %vm529_vm1, %v4085_v55 }
  0x61   : > { %3324 = vmatmul.mubr.msk.f32.vlgmr.msra.gmra.mrb[0].mxu1 %vm529_vm1, %v577_v56 }
  0x62   : > { %3440 = vmatmul.mubr.msk.f32.gmra.mrb[8].mxu0 %vm529_vm1, %v4094_v57  ;;  %3348 = vmatpush3.msk.msra.mxu1 %vm659_vm2, %v3004_v36 }
  0x63   : > { %3326 = vmatprep.mubr.msk.f32.mxu1 %vm529_vm1, %v4096_v58  ;;  %3442 = vmatprep.mubr.msk.f32.mxu0 %vm529_vm1, %v4098_v59 }
  0x64   : > { %3373 = vmatprep.subr.msk.mxu1 %vm659_vm2, %v3022_v60 }
  0x65   : > { %3327 = vmatmul.mubr.msk.f32.gmra.mrb[2].mxu1 %vm529_vm1, %v4107_v61 }
  0x66   : > { %3443 = vmatmul.mubr.msk.f32.gmra.mrb[10].mxu0 %vm529_vm1, %v4113_v62  ;;  %3329 = vmatprep.mubr.msk.f32.mxu1 %vm529_vm1, %v4115_v63 }
  0x67   : > { %3445 = vmatprep.mubr.msk.f32.mxu0 %vm529_vm1, %v4117_v0 }
  0x69   : > { %3330 = vmatmul.mubr.msk.f32.gmra.mrb[4].mxu1 %vm529_vm1, %v4126_v1 }
  0x6a   : > { %3446 = vmatmul.mubr.msk.f32.gmra.mrb[12].mxu0 %vm529_vm1, %v4130_v2  ;;  %3332 = vmatprep.mubr.msk.f32.mxu1 %vm529_vm1, %v4132_v3 }
  0x6b   : > { %3448 = vmatprep.mubr.msk.f32.mxu0 %vm529_vm1, %v4134_v4 }
  0x6d   : > { %3333 = vmatmul.mubr.msk.f32.gmra.mrb[6].mxu1 %vm529_vm1, %v4142_v5 }
  0x6e   : > { %3449 = vmatmul.mubr.msk.f32.gmra.mrb[14].mxu0 %vm529_vm1, %v4146_v6  ;;  %3335 = vmatprep.mubr.msk.f32.mxu1 %vm529_vm1, %v4148_v7 }
  0x6f   : > { %3453 = vmatprep.mubr.msk.f32.mxu0 %vm529_vm1, %v4115_v63 }
  0x71   : > { %3336 = vmatmul.mubr.msk.f32.gmra.mrb[8].mxu1 %vm529_vm1, %v4156_v8 }
  0x72   : > { %3454 = vmatmul.mubr.msk.f32.vlgmr.msra.gmra.mrb[0].mxu0 %vm529_vm1, %v4126_v1  ;;  %3338 = vmatprep.mubr.msk.f32.mxu1 %vm529_vm1, %v4160_v9 }
  0x73   : > { %3478 = vmatpush3.msk.msra.mxu0 %vm659_vm2, %v4038_v43  ;;  %3456 = vmatprep.mubr.msk.f32.mxu0 %vm529_vm1, %v4132_v3 }
  0x74   : > { %3503 = vmatprep.subr.msk.mxu0 %vm659_vm2, %v3112_v10 }
  0x75   : > { %3339 = vmatmul.mubr.msk.f32.gmra.mrb[10].mxu1 %vm529_vm1, %v4171_v11 }
  0x76   : > { %3457 = vmatmul.mubr.msk.f32.gmra.mrb[2].mxu0 %vm529_vm1, %v4142_v5  ;;  %3341 = vmatprep.mubr.msk.f32.mxu1 %vm529_vm1, %v4177_v12 }
  0x77   : > { %3459 = vmatprep.mubr.msk.f32.mxu0 %vm529_vm1, %v4148_v7 }
  0x79   : > { %3342 = vmatmul.mubr.msk.f32.gmra.mrb[12].mxu1 %vm529_vm1, %v4186_v13 }
  0x7a   : > { %3460 = vmatmul.mubr.msk.f32.gmra.mrb[4].mxu0 %vm529_vm1, %v4156_v8  ;;  %3344 = vmatprep.mubr.msk.f32.mxu1 %vm529_vm1, %v4190_v14 }
  0x7b   : > { %3462 = vmatprep.mubr.msk.f32.mxu0 %vm529_vm1, %v4160_v9 }
  0x7d   : > { %3345 = vmatmul.mubr.msk.f32.gmra.mrb[14].mxu1 %vm529_vm1, %v4198_v15 }
  0x7e   : > { %3463 = vmatmul.mubr.msk.f32.gmra.mrb[6].mxu0 %vm529_vm1, %v4171_v11  ;;  %3349 = vmatprep.mubr.msk.f32.mxu1 %vm529_vm1, %v1004_v16 }
  0x7f   : > { %3465 = vmatprep.mubr.msk.f32.mxu0 %vm529_vm1, %v4177_v12 }
  0x81   : > { %3350 = vmatmul.mubr.msk.f32.vlgmr.msra.gmra.mrb[0].mxu1 %vm529_vm1, %v1005_v17 }
  0x82   : > { %3466 = vmatmul.mubr.msk.f32.gmra.mrb[8].mxu0 %vm529_vm1, %v4186_v13  ;;  %3374 = vmatpush3.msk.msra.mxu1 %vm659_vm2, %v3022_v60 }
  0x83   : > { %3352 = vmatprep.mubr.msk.f32.mxu1 %vm529_vm1, %v4017_v39  ;;  %3468 = vmatprep.mubr.msk.f32.mxu0 %vm529_vm1, %v4190_v14 }
  0x84   : > { %3529 = vmatprep.subr.msk.mxu1 %vm659_vm2, %v3957_v24 }
  0x85   : > { %3353 = vmatmul.mubr.msk.f32.gmra.mrb[2].mxu1 %vm529_vm1, %v4027_v40 }
  0x86   : > { %3469 = vmatmul.mubr.msk.f32.gmra.mrb[10].mxu0 %vm529_vm1, %v4198_v15  ;;  %3355 = vmatprep.mubr.msk.f32.mxu1 %vm529_vm1, %v4031_v42 }
  0x87   : > { %3471 = vmatprep.mubr.msk.f32.mxu0 %vm529_vm1, %v4217_v18 }
  0x89   : > { %3356 = vmatmul.mubr.msk.f32.gmra.mrb[4].mxu1 %vm529_vm1, %v4049_v45 }
  0x8a   : > { %3472 = vmatmul.mubr.msk.f32.gmra.mrb[12].mxu0 %vm529_vm1, %v1938_v19  ;;  %3358 = vmatprep.mubr.msk.f32.mxu1 %vm529_vm1, %v4053_v47 }
  0x8b   : > { %3474 = vmatprep.mubr.msk.f32.mxu0 %vm529_vm1, %v1939_v20 }
  0x8d   : > { %3359 = vmatmul.mubr.msk.f32.gmra.mrb[6].mxu1 %vm529_vm1, %v4067_v49 }
  0x8e   : > { %3475 = vmatmul.mubr.msk.f32.gmra.mrb[14].mxu0 %vm529_vm1, %v1940_v21  ;;  %3361 = vmatprep.mubr.msk.f32.mxu1 %vm529_vm1, %v4071_v51 }
  0x8f   : > { %3479 = vmatprep.mubr.msk.f32.mxu0 %vm529_vm1, %v3975_v31 }
  0x91   : > { %3362 = vmatmul.mubr.msk.f32.gmra.mrb[8].mxu1 %vm529_vm1, %v4083_v53 }
  0x92   : > { %3480 = vmatmul.mubr.msk.f32.vlgmr.msra.gmra.mrb[0].mxu0 %vm529_vm1, %v3984_v33  ;;  %3364 = vmatprep.mubr.msk.f32.mxu1 %vm529_vm1, %v4085_v55 }
  0x93   : > { %3504 = vmatpush3.msk.msra.mxu0 %vm659_vm2, %v3112_v10  ;;  %3482 = vmatprep.mubr.msk.f32.mxu0 %vm529_vm1, %v3989_v34 }
  0x95   : > { %3365 = vmatmul.mubr.msk.f32.gmra.mrb[10].mxu1 %vm529_vm1, %v4094_v57 }
  0x96   : > { %3483 = vmatmul.mubr.msk.f32.gmra.mrb[2].mxu0 %vm529_vm1, %v3999_v35  ;;  %3367 = vmatprep.mubr.msk.f32.mxu1 %vm529_vm1, %v4098_v59 }
  0x97   : > { %3485 = vmatprep.mubr.msk.f32.mxu0 %vm529_vm1, %v4004_v37 }
  0x99   : > { %3368 = vmatmul.mubr.msk.f32.gmra.mrb[12].mxu1 %vm529_vm1, %v4113_v62 }
  0x9a   : > { %3486 = vmatmul.mubr.msk.f32.gmra.mrb[4].mxu0 %vm529_vm1, %v4015_v38  ;;  %3370 = vmatprep.mubr.msk.f32.mxu1 %vm529_vm1, %v4117_v0 }
  0x9b   : > { %3488 = vmatprep.mubr.msk.f32.mxu0 %vm529_vm1, %v4029_v41 }
  0x9d   : > { %3371 = vmatmul.mubr.msk.f32.gmra.mrb[14].mxu1 %vm529_vm1, %v4130_v2 }
  0x9e   : > { %3489 = vmatmul.mubr.msk.f32.gmra.mrb[6].mxu0 %vm529_vm1, %v4044_v44  ;;  %3375 = vmatprep.mubr.msk.f32.mxu1 %vm529_vm1, %v4096_v58 }
  0x9f   : > { %3491 = vmatprep.mubr.msk.f32.mxu0 %vm529_vm1, %v4051_v46 }
  0xa1   : > { %3376 = vmatmul.mubr.msk.f32.vlgmr.msra.gmra.mrb[0].mxu1 %vm529_vm1, %v4107_v61 }
  0xa2   : > { %3492 = vmatmul.mubr.msk.f32.gmra.mrb[8].mxu0 %vm529_vm1, %v4063_v48  ;;  %3530 = vmatpush3.msk.msra.mxu1 %vm659_vm2, %v3957_v24  ;;  %v2169_v24 = vld [vmem:[#allocation2 + $0xd9] sm:$0xff] }
  0xa3   : > { %3378 = vmatprep.mubr.msk.f32.mxu1 %vm529_vm1, %v4115_v63  ;;  %3494 = vmatprep.mubr.msk.f32.mxu0 %vm529_vm1, %v4069_v50 }
  0xa5   : > { %3379 = vmatmul.mubr.msk.f32.gmra.mrb[2].mxu1 %vm529_vm1, %v4126_v1 }
  0xa6   : > { %3495 = vmatmul.mubr.msk.f32.gmra.mrb[10].mxu0 %vm529_vm1, %v4079_v52  ;;  %3381 = vmatprep.mubr.msk.f32.mxu1 %vm529_vm1, %v4132_v3 }
  0xa7   : > { %3497 = vmatprep.mubr.msk.f32.mxu0 %vm529_vm1, %v2167_v22 }
  0xa9   : > { %3382 = vmatmul.mubr.msk.f32.gmra.mrb[4].mxu1 %vm529_vm1, %v4142_v5 }
  0xaa   : > { %3498 = vmatmul.mubr.msk.f32.gmra.mrb[12].mxu0 %vm529_vm1, %v2168_v23  ;;  %3384 = vmatprep.mubr.msk.f32.mxu1 %vm529_vm1, %v4148_v7 }
  0xab   : > { %3500 = vmatprep.mubr.msk.f32.mxu0 %vm529_vm1, %v2169_v24 }
  0xad   : > { %3385 = vmatmul.mubr.msk.f32.gmra.mrb[6].mxu1 %vm529_vm1, %v4156_v8 }
  0xae   : > { %3501 = vmatmul.mubr.msk.f32.gmra.mrb[14].mxu0 %vm529_vm1, %v2170_v25  ;;  %3387 = vmatprep.mubr.msk.f32.mxu1 %vm529_vm1, %v4160_v9 }
  0xaf   : > { %3505 = vmatprep.mubr.msk.f32.mxu0 %vm529_vm1, %v4031_v42 }
  0xb1   : > { %3388 = vmatmul.mubr.msk.f32.gmra.mrb[8].mxu1 %vm529_vm1, %v4171_v11 }
  0xb2   : > { %3506 = vmatmul.mubr.msk.f32.vlgmr.msra.gmra.mrb[0].mxu0 %vm529_vm1, %v4049_v45  ;;  %3390 = vmatprep.mubr.msk.f32.mxu1 %vm529_vm1, %v4177_v12 }
  0xb3   : > { %3508 = vmatprep.mubr.msk.f32.mxu0 %vm529_vm1, %v4053_v47 }
  0xb5   : > { %3391 = vmatmul.mubr.msk.f32.gmra.mrb[10].mxu1 %vm529_vm1, %v4186_v13 }
  0xb6   : > { %3509 = vmatmul.mubr.msk.f32.gmra.mrb[2].mxu0 %vm529_vm1, %v4067_v49  ;;  %3393 = vmatprep.mubr.msk.f32.mxu1 %vm529_vm1, %v4190_v14 }
  0xb7   : > { %3511 = vmatprep.mubr.msk.f32.mxu0 %vm529_vm1, %v4071_v51 }
  0xb9   : > { %3394 = vmatmul.mubr.msk.f32.gmra.mrb[12].mxu1 %vm529_vm1, %v4198_v15 }
  0xba   : > { %3512 = vmatmul.mubr.msk.f32.gmra.mrb[4].mxu0 %vm529_vm1, %v4083_v53  ;;  %3396 = vmatprep.mubr.msk.f32.mxu1 %vm529_vm1, %v4217_v18 }
  0xbb   : > { %3514 = vmatprep.mubr.msk.f32.mxu0 %vm529_vm1, %v4085_v55 }
  0xbd   : > { %3397 = vmatmul.mubr.msk.f32.gmra.mrb[14].mxu1 %vm529_vm1, %v1938_v19 }
  0xbe   : > { %3515 = vmatmul.mubr.msk.f32.gmra.mrb[6].mxu0 %vm529_vm1, %v4094_v57  ;;  %3413 = vmatprep.mubr.msk.f32.mxu1 %vm529_vm1, %v4029_v41 }
  0xbf   : > { %3517 = vmatprep.mubr.msk.f32.mxu0 %vm529_vm1, %v4098_v59 }
  0xc1   : > { %3414 = vmatmul.mubr.msk.f32.vlgmr.msra.gmra.mrb[8].mxu1 %vm529_vm1, %v4044_v44 }
  0xc2   : > { %3518 = vmatmul.mubr.msk.f32.gmra.mrb[8].mxu0 %vm529_vm1, %v4113_v62  ;;  %3416 = vmatprep.mubr.msk.f32.mxu1 %vm529_vm1, %v4051_v46 }
  0xc3   : > { %3520 = vmatprep.mubr.msk.f32.mxu0 %vm529_vm1, %v4117_v0 }
  0xc5   : > { %3417 = vmatmul.mubr.msk.f32.gmra.mrb[10].mxu1 %vm529_vm1, %v4063_v48 }
  0xc6   : > { %3521 = vmatmul.mubr.msk.f32.gmra.mrb[10].mxu0 %vm529_vm1, %v4130_v2  ;;  %3419 = vmatprep.mubr.msk.f32.mxu1 %vm529_vm1, %v4069_v50 }
  0xc7   : > { %3523 = vmatprep.mubr.msk.f32.mxu0 %vm529_vm1, %v4134_v4 }
  0xc9   : > { %3420 = vmatmul.mubr.msk.f32.gmra.mrb[12].mxu1 %vm529_vm1, %v4079_v52 }
  0xca   : > { %3524 = vmatmul.mubr.msk.f32.gmra.mrb[12].mxu0 %vm529_vm1, %v4146_v6  ;;  %3422 = vmatprep.mubr.msk.f32.mxu1 %vm529_vm1, %v2167_v22 }
  0xcb   : > { %3526 = vmatprep.mubr.msk.f32.mxu0 %vm529_vm1, %v2399_v26 }
  0xcd   : > { %3423 = vmatmul.mubr.msk.f32.gmra.mrb[14].mxu1 %vm529_vm1, %v2168_v23 }
  0xce   : > { %3527 = vmatmul.mubr.msk.f32.gmra.mrb[14].mxu0 %vm529_vm1, %v2400_v27 }
 0x174   : > { %v3377_v28 = vpop.f32.mrb[0].mxu1 }
 0x175   : > { %v1369_v29 = vpop.f32.mrb[1].mxu1 }
 0x178   : > { %v3380_v30 = vpop.f32.mrb[2].mxu1 }
 0x179   : > { %v1379_v31 = vpop.f32.mrb[3].mxu1 }
 0x17c   : > { %v3383_v32 = vpop.f32.mrb[4].mxu1 }
 0x17d   : > { %v1389_v33 = vpop.f32.mrb[5].mxu1 }
 0x180   : > { %v3386_v34 = vpop.f32.mrb[6].mxu1 }
 0x181   : > { %v1399_v35 = vpop.f32.mrb[7].mxu1 }
 0x185   : > { %v3507_v36 = vpop.f32.mrb[0].mxu0 }
 0x186   : > { %v3531_v37 = vadd.f32 %v3507_v36, %v3377_v28  ;;  %v2520_v38 = vpop.f32.mrb[1].mxu0 }
 0x187   : > { %v3532_v39 = vadd.f32 %v2520_v38, %v1369_v29 }
 0x188   : > { %2617 = vst.msk [vmem:[%s3873_s0 + $0x8] sm:$0xff] %vm2615_vm3, %v3531_v37  ;;  %v2633_v40 = vsel %vm2615_vm3, %v3531_v37, 0.0  ;;  %v2670_v41 = vmul.f32 %v3531_v37, %v3531_v37 }
 0x189   : > { %2616 = vst.msk [vmem:[%s3873_s0] sm:$0xff] %vm2615_vm3, %v3532_v39  ;;  %v2632_v42 = vsel %vm2615_vm3, %v3532_v39, 0.0  ;;  %v2669_v43 = vmul.f32 %v3532_v39, %v3532_v39  ;;  %v3510_v44 = vpop.f32.mrb[2].mxu0 }
 0x18a   : > { %v2686_v45 = vsel %vm2615_vm3, %v2670_v41, 0.0  ;;  %v2634_v46 = vadd.f32 %v2633_v40, %v2632_v42  ;;  %v3533_v47 = vadd.f32 %v3510_v44, %v3380_v30  ;;  %v2530_v48 = vpop.f32.mrb[3].mxu0 }
 0x18b   : > { %v2685_v49 = vsel %vm2615_vm3, %v2669_v43, 0.0  ;;  %v3534_v50 = vadd.f32 %v2530_v48, %v1379_v31 }
 0x18c   : > { %v2687_v51 = vadd.f32 %v2686_v45, %v2685_v49  ;;  %2619 = vst.msk [vmem:[%s3873_s0 + $0x18] sm:$0xff] %vm2615_vm3, %v3533_v47  ;;  %v2672_v52 = vmul.f32 %v3533_v47, %v3533_v47  ;;  %v2637_v59 = vsel %vm2615_vm3, %v3533_v47, 0.0 }
 0x18d   : > { %2618 = vst.msk [vmem:[%s3873_s0 + $0x10] sm:$0xff] %vm2615_vm3, %v3534_v50  ;;  %v2635_v53 = vsel %vm2615_vm3, %v3534_v50, 0.0  ;;  %v2671_v54 = vmul.f32 %v3534_v50, %v3534_v50  ;;  %v3513_v55 = vpop.f32.mrb[4].mxu0 }
 0x18e   : > { %v2636_v56 = vadd.f32 %v2635_v53, %v2634_v46  ;;  %v3535_v57 = vadd.f32 %v3513_v55, %v3383_v32  ;;  %v2540_v58 = vpop.f32.mrb[5].mxu0  ;;  %v2690_v0 = vsel %vm2615_vm3, %v2672_v52, 0.0 }
 0x18f   : > { %v2688_v60 = vsel %vm2615_vm3, %v2671_v54, 0.0  ;;  %v3536_v61 = vadd.f32 %v2540_v58, %v1389_v33 }
 0x190   : > { %v2689_v62 = vadd.f32 %v2688_v60, %v2687_v51  ;;  %2621 = vst.msk [vmem:[%s3873_s0 + $0x28] sm:$0xff] %vm2615_vm3, %v3535_v57  ;;  %v2638_v63 = vadd.f32 %v2637_v59, %v2636_v56  ;;  %v2674_v1 = vmul.f32 %v3535_v57, %v3535_v57  ;;  %v2641_v9 = vsel %vm2615_vm3, %v3535_v57, 0.0 }
 0x191   : > { %2620 = vst.msk [vmem:[%s3873_s0 + $0x20] sm:$0xff] %vm2615_vm3, %v3536_v61  ;;  %v2639_v2 = vsel %vm2615_vm3, %v3536_v61, 0.0  ;;  %v2673_v3 = vmul.f32 %v3536_v61, %v3536_v61  ;;  %v3516_v4 = vpop.f32.mrb[6].mxu0 }
 0x192   : > { %v2640_v5 = vadd.f32 %v2639_v2, %v2638_v63  ;;  %v2691_v6 = vadd.f32 %v2690_v0, %v2689_v62  ;;  %v3537_v7 = vadd.f32 %v3516_v4, %v3386_v34  ;;  %v2550_v8 = vpop.f32.mrb[7].mxu0  ;;  %v2694_v15 = vsel %vm2615_vm3, %v2674_v1, 0.0 }
 0x193   : > { %v2692_v10 = vsel %vm2615_vm3, %v2673_v3, 0.0  ;;  %v3538_v11 = vadd.f32 %v2550_v8, %v1399_v35 }
 0x194   : > { %v2693_v12 = vadd.f32 %v2692_v10, %v2691_v6  ;;  %2623 = vst.msk [vmem:[%s3873_s0 + $0x38] sm:$0xff] %vm2615_vm3, %v3537_v7  ;;  %v2642_v13 = vadd.f32 %v2641_v9, %v2640_v5  ;;  %v3415_v14 = vpop.f32.mrb[8].mxu1  ;;  %v2676_v16 = vmul.f32 %v3537_v7, %v3537_v7  ;;  %v2645_v25 = vsel %vm2615_vm3, %v3537_v7, 0.0 }
 0x195   : > { %2622 = vst.msk [vmem:[%s3873_s0 + $0x30] sm:$0xff] %vm2615_vm3, %v3538_v11  ;;  %v2643_v17 = vsel %vm2615_vm3, %v3538_v11, 0.0  ;;  %v2675_v18 = vmul.f32 %v3538_v11, %v3538_v11  ;;  %v3519_v19 = vpop.f32.mrb[8].mxu0  ;;  %v1639_v20 = vpop.f32.mrb[9].mxu1 }
 0x196   : > { %v2644_v21 = vadd.f32 %v2643_v17, %v2642_v13  ;;  %v2695_v22 = vadd.f32 %v2694_v15, %v2693_v12  ;;  %v3539_v23 = vadd.f32 %v3519_v19, %v3415_v14  ;;  %v2560_v24 = vpop.f32.mrb[9].mxu0  ;;  %v2698_v31 = vsel %vm2615_vm3, %v2676_v16, 0.0 }
 0x197   : > { %v2696_v26 = vsel %vm2615_vm3, %v2675_v18, 0.0  ;;  %v3540_v27 = vadd.f32 %v2560_v24, %v1639_v20 }
 0x198   : > { %v2697_v28 = vadd.f32 %v2696_v26, %v2695_v22  ;;  %2625 = vst.msk [vmem:[%s3873_s0 + $0x48] sm:$0xff] %vm2615_vm3, %v3539_v23  ;;  %v2646_v29 = vadd.f32 %v2645_v25, %v2644_v21  ;;  %v3418_v30 = vpop.f32.mrb[10].mxu1  ;;  %v2678_v32 = vmul.f32 %v3539_v23, %v3539_v23  ;;  %v2649_v41 = vsel %vm2615_vm3, %v3539_v23, 0.0 }
 0x199   : > { %2624 = vst.msk [vmem:[%s3873_s0 + $0x40] sm:$0xff] %vm2615_vm3, %v3540_v27  ;;  %v2647_v33 = vsel %vm2615_vm3, %v3540_v27, 0.0  ;;  %v2677_v34 = vmul.f32 %v3540_v27, %v3540_v27  ;;  %v3522_v35 = vpop.f32.mrb[10].mxu0  ;;  %v1649_v36 = vpop.f32.mrb[11].mxu1 }
 0x19a   : > { %v2648_v37 = vadd.f32 %v2647_v33, %v2646_v29  ;;  %v2699_v38 = vadd.f32 %v2698_v31, %v2697_v28  ;;  %v3541_v39 = vadd.f32 %v3522_v35, %v3418_v30  ;;  %v2570_v40 = vpop.f32.mrb[11].mxu0  ;;  %v2702_v47 = vsel %vm2615_vm3, %v2678_v32, 0.0 }
 0x19b   : > { %v2700_v42 = vsel %vm2615_vm3, %v2677_v34, 0.0  ;;  %v3542_v43 = vadd.f32 %v2570_v40, %v1649_v36 }
 0x19c   : > { %v2701_v44 = vadd.f32 %v2700_v42, %v2699_v38  ;;  %2627 = vst.msk [vmem:[%s3873_s0 + $0x58] sm:$0xff] %vm2615_vm3, %v3541_v39  ;;  %v2650_v45 = vadd.f32 %v2649_v41, %v2648_v37  ;;  %v3421_v46 = vpop.f32.mrb[12].mxu1  ;;  %v2680_v48 = vmul.f32 %v3541_v39, %v3541_v39  ;;  %v2653_v57 = vsel %vm2615_vm3, %v3541_v39, 0.0 }
 0x19d   : > { %2626 = vst.msk [vmem:[%s3873_s0 + $0x50] sm:$0xff] %vm2615_vm3, %v3542_v43  ;;  %v2651_v49 = vsel %vm2615_vm3, %v3542_v43, 0.0  ;;  %v2679_v50 = vmul.f32 %v3542_v43, %v3542_v43  ;;  %v3525_v51 = vpop.f32.mrb[12].mxu0  ;;  %v1659_v52 = vpop.f32.mrb[13].mxu1 }
 0x19e   : > { %v2652_v53 = vadd.f32 %v2651_v49, %v2650_v45  ;;  %v2703_v54 = vadd.f32 %v2702_v47, %v2701_v44  ;;  %v3543_v55 = vadd.f32 %v3525_v51, %v3421_v46  ;;  %v2580_v56 = vpop.f32.mrb[13].mxu0  ;;  %v2706_v63 = vsel %vm2615_vm3, %v2680_v48, 0.0 }
 0x19f   : > { %v2704_v58 = vsel %vm2615_vm3, %v2679_v50, 0.0  ;;  %v3544_v59 = vadd.f32 %v2580_v56, %v1659_v52 }
 0x1a0   : > { %v2705_v60 = vadd.f32 %v2704_v58, %v2703_v54  ;;  %2629 = vst.msk [vmem:[%s3873_s0 + $0x68] sm:$0xff] %vm2615_vm3, %v3543_v55  ;;  %v2654_v61 = vadd.f32 %v2653_v57, %v2652_v53  ;;  %v3424_v62 = vpop.f32.mrb[14].mxu1  ;;  %v2682_v0 = vmul.f32 %v3543_v55, %v3543_v55  ;;  %v2657_v9 = vsel %vm2615_vm3, %v3543_v55, 0.0 }
 0x1a1   : > { %2628 = vst.msk [vmem:[%s3873_s0 + $0x60] sm:$0xff] %vm2615_vm3, %v3544_v59  ;;  %v2655_v1 = vsel %vm2615_vm3, %v3544_v59, 0.0  ;;  %v2681_v2 = vmul.f32 %v3544_v59, %v3544_v59  ;;  %v3528_v3 = vpop.f32.mrb[14].mxu0  ;;  %v1669_v4 = vpop.f32.mrb[15].mxu1 }
 0x1a2   : > { %v2656_v5 = vadd.f32 %v2655_v1, %v2654_v61  ;;  %v2707_v6 = vadd.f32 %v2706_v63, %v2705_v60  ;;  %v3545_v7 = vadd.f32 %v3528_v3, %v3424_v62  ;;  %v2590_v8 = vpop.f32.mrb[15].mxu0  ;;  %v2710_v14 = vsel %vm2615_vm3, %v2682_v0, 0.0 }
 0x1a3   : > { %v2708_v10 = vsel %vm2615_vm3, %v2681_v2, 0.0  ;;  %v3546_v11 = vadd.f32 %v2590_v8, %v1669_v4 }
 0x1a4   : > { %v2709_v12 = vadd.f32 %v2708_v10, %v2707_v6  ;;  %2631 = vst.msk [vmem:[%s3873_s0 + $0x78] sm:$0xff] %vm2615_vm3, %v3545_v7  ;;  %v2658_v13 = vadd.f32 %v2657_v9, %v2656_v5  ;;  %v2684_v15 = vmul.f32 %v3545_v7, %v3545_v7  ;;  %v2661_v20 = vsel %vm2615_vm3, %v3545_v7, 0.0 }
 0x1a5   : > { %2630 = vst.msk [vmem:[%s3873_s0 + $0x70] sm:$0xff] %vm2615_vm3, %v3546_v11  ;;  %v2659_v16 = vsel %vm2615_vm3, %v3546_v11, 0.0  ;;  %v2683_v17 = vmul.f32 %v3546_v11, %v3546_v11 }
 0x1a6   : > { %v2660_v18 = vadd.f32 %v2659_v16, %v2658_v13  ;;  %v2711_v19 = vadd.f32 %v2710_v14, %v2709_v12  ;;  %v2714_v24 = vsel %vm2615_vm3, %v2684_v15, 0.0 }
 0x1a7   : > { %v2712_v21 = vsel %vm2615_vm3, %v2683_v17, 0.0 }
 0x1a8   : > { %v2662_v22 = vadd.f32 %v2661_v20, %v2660_v18  ;;  %v2713_v23 = vadd.f32 %v2712_v21, %v2711_v19 }
 0x1aa   : > { %v2663_v25 = vrot.slane %v2662_v22, 4  ;;  %v2715_v26 = vadd.f32 %v2714_v24, %v2713_v23 }
 0x1ac   : > { %v2664_v27 = vadd.f32 %v2663_v25, %v2662_v22  ;;  %v2716_v28 = vrot.slane %v2715_v26, 4 }
 0x1ae   : > { %v2665_v29 = vrot.slane %v2664_v27, 2  ;;  %v2717_v30 = vadd.f32 %v2716_v28, %v2715_v26 }
 0x1b0   : > { %v2666_v31 = vadd.f32 %v2665_v29, %v2664_v27  ;;  %v2718_v32 = vrot.slane %v2717_v30, 2  ;;  %2724 = sbr.rel (%p2965_p10) target bundleno = 441 (0x1b9), region = 64 }
 0x1b2   : > { %v2667_v33 = vrot.slane %v2666_v31, 1  ;;  %v2719_v34 = vadd.f32 %v2718_v32, %v2717_v30 }
 0x1b4   : > { %v2668_v35 = vadd.f32 %v2667_v33, %v2666_v31  ;;  %v2720_v36 = vrot.slane %v2719_v34, 1 }
 0x1b6   : > { %v2721_v37 = vadd.f32 %v2720_v36, %v2719_v34  ;;  %2726 = vst.msk [vmem:[%s3908_s12] sm:$0x1] (!%p2965_p10), %vm2725_vm4, %v2668_v35 }
 0x1b8   : > { %2727 = vst.msk [vmem:[%s3933_s2] sm:$0x1] %vm2725_vm4, %v2721_v37 }
 0x1b9 PF: > { %2730 = sbr.rel (%p2966_p11) target bundleno = 452 (0x1c4), region = 68  ;;  %vm2733_vm5 = vcmask (!%p2966_p11), 57344  }
 0x1bf   : > { %v2731_v38 = vld [vmem:[%s3908_s12] sm:$0x1] (!%p2966_p11) }
 0x1c0   : > { %v2735_v39 = vld [vmem:[%s3933_s2] sm:$0x1]  ;;  %v2732_v40 = vadd.f32 %v2731_v38, %v2668_v35 }
 0x1c1   : > { %v2736_v41 = vadd.f32 %v2735_v39, %v2721_v37 }
 0x1c2   : > { %2734 = vst.msk [vmem:[%s3908_s12] sm:$0x1] %vm2733_vm5, %v2732_v40 }
 0x1c3   : > { %2737 = vst.msk [vmem:[%s3933_s2] sm:$0x1] %vm2733_vm5, %v2736_v41 }
 0x1c4 PF: > { %s19_s29 = sadd.s32 1, %s3740_s29   ;;  %s4461_s25 = smov %s3732_s27 }
 0x1c5   : > { %p16_p0 = scmp.ge.s32.totalorder %s19_s29, 6   ;;  %s4462_s26 = smov %s3736_s28 }
 0x1c6   : > { %s4463_s27 = smov %s4466_s30  ;;  %s4464_s28 = smov %s4470_s9 }
 0x1c7   :  { %18 = sbr.rel (!%p16_p0) target bundleno = 3 (0x3), region = 140 }

</bundles_post_ra>
